<compile_context>
chip_gen: v7x
topology: tpu7x:2x2x1
jax: 0.10.0
libtpu: 0.0.40
codegen_flags: <defaults>
</compile_context>

<pallas_src>
import functools

import jax
import jax.numpy as jnp
from jax import lax
from jax.experimental import pallas as pl
from jax.experimental.pallas import tpu as pltpu


def _cnn_kernel(x_ref, w1_ref, b1_ref, w2_ref, b2_ref, w3_ref, b3_ref, out_ref,
                *, H, W, C1, C2, Bw):
    """One grid step processes Bw // W images, fused onto the lane axis.

    x_ref  : (H, Bw)      f32   input rows; lane = local_batch * W + w
    w1_ref : (9, C1, Bw)  f32   conv1 weights (tap kh*3+kw), lane-broadcast
    b1_ref : (C1, Bw)     f32   conv1 bias, lane-broadcast
    w2_ref : (C2, 9*C1)   bf16  conv2 weights; col = kh*3*C1 + kw*C1 + cin
    b2_ref : (C2, Bw)     f32   conv2 bias, lane-broadcast
    w3_ref : (C2, Bw)     f32   conv3 weight * (1/H), lane-broadcast
    b3_ref : (1, 1)       f32   conv3 bias (SMEM scalar)
    out_ref: (1, 1, Bw)   f32   lane-dense output row
    """
    f32 = jnp.float32
    x = x_ref[...]                                            # (H, Bw)

    # Per-image horizontal-shift validity masks on the fused lane axis.
    col = lax.broadcasted_iota(jnp.int32, (1, Bw), 1)
    wpos = col % W
    m_l = wpos != 0                                           # w-1 exists
    m_r = wpos != (W - 1)                                     # w+1 exists

    def hshift(a, dw):
        """Value at column w+dw within each image, zero outside the image."""
        if dw == 0:
            return a
        if dw == -1:
            return jnp.where(m_l, pltpu.roll(a, 1, axis=1), 0.0)
        return jnp.where(m_r, pltpu.roll(a, Bw - 1, axis=1), 0.0)

    # Three horizontally pre-shifted copies of the input block (registers).
    xs = (hshift(x, -1), x, hshift(x, 1))                     # each (H, Bw)

    b1 = b1_ref[...]                                          # (C1, Bw)
    b2 = b2_ref[...]                                          # (C2, Bw)
    w2 = w2_ref[...]                                          # (C2, 9*C1) bf16

    def conv2_input_slab(v):
        """(3*C1, Bw) bf16 slab of dw-shifted conv1 outputs at padded row v."""
        if v == 0 or v == H + 1:                              # conv2 zero-pad rows
            return jnp.zeros((3 * C1, Bw), jnp.bfloat16)
        r = v - 1                                             # conv1 output row
        acc = b1
        for kh in range(3):
            rr = r + kh - 1
            if rr < 0 or rr >= H:                             # conv1 zero-pad rows
                continue
            rows = (xs[0][rr:rr + 1, :], xs[1][rr:rr + 1, :], xs[2][rr:rr + 1, :])
            for kw in range(3):
                # (C1, Bw) * (1, Bw): lane-aligned FMA, weight pre-broadcast.
                acc = acc + w1_ref[kh * 3 + kw] * rows[kw]
        h1r = jnp.maximum(acc, 0.0)                           # (C1, Bw) f32
        slab = jnp.concatenate([hshift(h1r, -1), h1r, hshift(h1r, 1)], axis=0)
        return slab.astype(jnp.bfloat16)                      # (3*C1, Bw)

    # conv2 + ReLU + sum-over-H pooling, fused.  One (C2,144)x(144,Bw) bf16
    # MXU matmul (f32 acc) per output row; 3-slab rolling window in registers.
    pool = jnp.zeros((C2, Bw), f32)
    slabs = {}
    for h in range(H):
        for v in (h, h + 1, h + 2):
            if v not in slabs:
                slabs[v] = conv2_input_slab(v)
        patch = jnp.concatenate([slabs[h], slabs[h + 1], slabs[h + 2]], axis=0)
        acc = jnp.dot(w2, patch, preferred_element_type=jnp.float32)  # (C2, Bw)
        pool = pool + jnp.maximum(acc + b2, 0.0)
        del slabs[h]                                          # end of live range

    # conv3 (1x1, C2 -> 1): VPU multiply + sublane reduce.  1/H already folded
    # into w3, so `pool` (a sum over H) directly yields the average pool.
    row = jnp.sum(pool * w3_ref[...], axis=0, keepdims=True) + b3_ref[0, 0]
    out_ref[...] = row[None]                                  # (1, 1, Bw)


def cnn_pallas(x, w1, b1, w2, b2, w3, b3, *, block_b=None):
    """x: (B, H, W) f32.  Weights in torch layout:
       w1 (C1,1,3,3), b1 (C1,), w2 (C2,C1,3,3), b2 (C2,), w3 (1,C2,1), b3 (1,).
       Returns (B, W) f32."""
    B, H, W = x.shape
    C1, C2 = w1.shape[0], w2.shape[0]

    if block_b is None:
        # Target a 128-lane fused (batch*W) axis.  The kernel is register
        # resident, so larger blocks only add spill pressure; more batch means
        # more (cheap, ~0.35us) grid steps, which also feeds v7x megacore.
        block_b = max(1, min(B, max(1, 128 // W)))
    Bw = block_b * W
    n_blocks = pl.cdiv(B, block_b)
    Bp = n_blocks * block_b
    if Bp != B:
        x = jnp.concatenate([x, jnp.zeros((Bp - B, H, W), x.dtype)], axis=0)
    # TODO(synk): a ragged tail block would avoid up to block_b-1 wasted planes.

    # Layout plumbing (cheap XLA ops): fuse batch*W onto the minor axis.
    x_t = jnp.transpose(x, (1, 0, 2)).reshape(H, Bp * W).astype(jnp.float32)

    # Kernel-layout weights (broadcasts hoisted to trace time).
    w1k = jnp.broadcast_to(w1.reshape(C1, 9).T[:, :, None], (9, C1, Bw)).astype(jnp.float32)
    b1k = jnp.broadcast_to(b1[:, None], (C1, Bw)).astype(jnp.float32)
    w2k = jnp.transpose(w2, (0, 2, 3, 1)).reshape(C2, 9 * C1).astype(jnp.bfloat16)
    b2k = jnp.broadcast_to(b2[:, None], (C2, Bw)).astype(jnp.float32)
    w3k = jnp.broadcast_to(w3[0, :, 0][:, None] / H, (C2, Bw)).astype(jnp.float32)
    b3k = b3.reshape(1, 1).astype(jnp.float32)

    flops = 2 * Bp * H * W * (9 * C1 + 9 * C1 * C2 + C2)
    bytes_accessed = (x_t.size + n_blocks * Bw) * 4 + w1k.size * 4 + w2k.size * 2 \
        + (b1k.size + b2k.size + w3k.size + 1) * 4

    kernel = functools.partial(_cnn_kernel, H=H, W=W, C1=C1, C2=C2, Bw=Bw)
    out = pl.pallas_call(
        kernel,
        out_shape=jax.ShapeDtypeStruct((n_blocks, 1, Bw), jnp.float32),
        grid=(n_blocks,),
        in_specs=[
            pl.BlockSpec((H, Bw), lambda b: (0, b)),
            pl.BlockSpec((9, C1, Bw), lambda b: (0, 0, 0)),
            pl.BlockSpec((C1, Bw), lambda b: (0, 0)),
            pl.BlockSpec((C2, 9 * C1), lambda b: (0, 0)),
            pl.BlockSpec((C2, Bw), lambda b: (0, 0)),
            pl.BlockSpec((C2, Bw), lambda b: (0, 0)),
            pl.BlockSpec(memory_space=pltpu.MemorySpace.SMEM),
        ],
        out_specs=pl.BlockSpec((1, 1, Bw), lambda b: (b, 0, 0)),
        compiler_params=pltpu.CompilerParams(
            dimension_semantics=("parallel",),
        ),
        cost_estimate=pl.CostEstimate(
            flops=flops, transcendentals=0, bytes_accessed=bytes_accessed),
    )(x_t, w1k, b1k, w2k, b2k, w3k, b3k)

    # (n_blocks, 1, block_b*W) -> (Bp, W); lane order is (local_batch, w).
    return out.reshape(Bp, W)[:B]


def cnn_ref(x, w1, b1, w2, b2, w3, b3):
    """Pure-JAX f32 reference (cross-correlation, pad=1), torch-layout weights."""
    B, H, W = x.shape
    C1, C2 = w1.shape[0], w2.shape[0]
    hp = jax.lax.Precision.HIGHEST
    xp = jnp.pad(x, ((0, 0), (1, 1), (1, 1)))
    h1 = jnp.zeros((B, C1, H, W), jnp.float32)
    for kh in range(3):
        for kw in range(3):
            h1 = h1 + (xp[:, None, kh:kh + H, kw:kw + W]
                       * w1[:, 0, kh, kw][None, :, None, None])
    h1 = jax.nn.relu(h1 + b1[None, :, None, None])
    h1p = jnp.pad(h1, ((0, 0), (0, 0), (1, 1), (1, 1)))
    h2 = jnp.zeros((B, C2, H, W), jnp.float32)
    for kh in range(3):
        for kw in range(3):
            h2 = h2 + jnp.einsum('bchw,oc->bohw',
                                 h1p[:, :, kh:kh + H, kw:kw + W],
                                 w2[:, :, kh, kw], precision=hp)
    h2 = jax.nn.relu(h2 + b2[None, :, None, None])
    pooled = jnp.mean(h2, axis=2)                             # (B, C2, W)
    out = jnp.einsum('bcw,c->bw', pooled, w3[0, :, 0], precision=hp) + b3[0]
    return out


def init_params(key):
    """Deterministic init matching the PyTorch layer shapes (torch layout)."""
    k1, k2, k3, k4, k5, k6 = jax.random.split(key, 6)
    C1, C2 = 16, 32
    bnd1 = 1.0 / (1 * 3 * 3) ** 0.5
    w1 = jax.random.uniform(k1, (C1, 1, 3, 3), jnp.float32, -bnd1, bnd1)
    b1 = jax.random.uniform(k2, (C1,), jnp.float32, -bnd1, bnd1)
    bnd2 = 1.0 / (C1 * 3 * 3) ** 0.5
    w2 = jax.random.uniform(k3, (C2, C1, 3, 3), jnp.float32, -bnd2, bnd2)
    b2 = jax.random.uniform(k4, (C2,), jnp.float32, -bnd2, bnd2)
    bnd3 = 1.0 / C2 ** 0.5
    w3 = jax.random.uniform(k5, (1, C2, 1), jnp.float32, -bnd3, bnd3)
    b3 = jax.random.uniform(k6, (1,), jnp.float32, -bnd3, bnd3)
    return w1, b1, w2, b2, w3, b3


if __name__ == "__main__":
    key = jax.random.PRNGKey(0)
    kx, kp = jax.random.split(key)
    B, H, W = 10, 16, 16                       # exercises 2 grid steps + batch pad
    x = jax.random.normal(kx, (B, H, W), jnp.float32)
    params = init_params(kp)

    out = jax.block_until_ready(jax.jit(cnn_pallas)(x, *params))
    assert out.shape == (B, W), out.shape

    ref = cnn_ref(x, *params)
    if not jnp.allclose(out, ref, rtol=2e-2, atol=2e-2):
        err = float(jnp.max(jnp.abs(out - ref)))
        raise AssertionError(f"Pallas output does not match reference (max err {err})")

    print("KERNEL_OK")
</pallas_src>

<mosaic_0001>
module attributes {stable_mosaic.version = 11 : i64} {
  func.func @_cnn_kernel(%arg0: i32, %arg1: memref<16x128xf32, #tpu.memory_space<vmem>>, %arg2: memref<9x16x128xf32, #tpu.memory_space<vmem>>, %arg3: memref<16x128xf32, #tpu.memory_space<vmem>>, %arg4: memref<32x144xbf16, #tpu.memory_space<vmem>>, %arg5: memref<32x128xf32, #tpu.memory_space<vmem>>, %arg6: memref<32x128xf32, #tpu.memory_space<vmem>>, %arg7: memref<1x1xf32, #tpu.memory_space<smem>>, %arg8: memref<1x1x128xf32, #tpu.memory_space<vmem>>) attributes {dimension_semantics = [#tpu.dimension_semantics<parallel>], iteration_bounds = array<i64: 2>, scalar_prefetch = 0 : i64, scratch_operands = 0 : i64, tpu.core_type = #tpu.core_type<tc>, window_params = [{transform_indices = @transform_0, window_bounds = array<i64: 16, 128>}, {pipeline_mode = #tpu.pipeline_mode<synchronous>, transform_indices = @transform_1, window_bounds = array<i64: 9, 16, 128>}, {pipeline_mode = #tpu.pipeline_mode<synchronous>, transform_indices = @transform_2, window_bounds = array<i64: 16, 128>}, {pipeline_mode = #tpu.pipeline_mode<synchronous>, transform_indices = @transform_3, window_bounds = array<i64: 32, 144>}, {pipeline_mode = #tpu.pipeline_mode<synchronous>, transform_indices = @transform_4, window_bounds = array<i64: 32, 128>}, {pipeline_mode = #tpu.pipeline_mode<synchronous>, transform_indices = @transform_5, window_bounds = array<i64: 32, 128>}, {transform_indices = @transform_6, window_bounds = array<i64: 1, 1>}, {transform_indices = @transform_7, window_bounds = array<i64: 1, 1, 128>}]} {
    %c0 = arith.constant 0 : index
    %c0_0 = arith.constant 0 : index
    %0 = vector.load %arg1[%c0, %c0_0] : memref<16x128xf32, #tpu.memory_space<vmem>>, vector<16x128xf32>
    %1 = tpu.iota {dimensions = array<i32: 1>} : vector<1x128xi32>
    %c16_i32 = arith.constant 16 : i32
    %c0_i32 = arith.constant 0 : i32
    %2 = arith.cmpi eq, %c16_i32, %c0_i32 : i32
    %c1_i32 = arith.constant 1 : i32
    %3 = arith.select %2, %c1_i32, %c16_i32 : i32
    %4 = vector.broadcast %3 : i32 to vector<1x128xi32>
    %5 = arith.remsi %1, %4 : vector<1x128xi32>
    %c0_i32_1 = arith.constant 0 : i32
    %6 = vector.broadcast %c0_i32_1 : i32 to vector<1x128xi32>
    %7 = arith.cmpi ne, %5, %6 : vector<1x128xi32>
    %c0_i32_2 = arith.constant 0 : i32
    %8 = vector.broadcast %c0_i32_2 : i32 to vector<1x128xi32>
    %9 = arith.cmpi slt, %5, %8 : vector<1x128xi32>
    %c0_i32_3 = arith.constant 0 : i32
    %10 = arith.cmpi slt, %3, %c0_i32_3 : i32
    %11 = vector.broadcast %10 : i1 to vector<1x128xi1>
    %12 = vector.broadcast %11 : vector<1x128xi1> to vector<1x128xi1>
    %13 = arith.xori %9, %12 : vector<1x128xi1>
    %14 = arith.andi %13, %7 : vector<1x128xi1>
    %15 = vector.broadcast %3 : i32 to vector<1x128xi32>
    %16 = arith.addi %5, %15 : vector<1x128xi32>
    %17 = arith.select %14, %16, %5 : vector<1x128xi1>, vector<1x128xi32>
    %c0_i32_4 = arith.constant 0 : i32
    %18 = vector.broadcast %c0_i32_4 : i32 to vector<1x128xi32>
    %19 = arith.cmpi ne, %17, %18 : vector<1x128xi32>
    %c15_i32 = arith.constant 15 : i32
    %20 = vector.broadcast %c15_i32 : i32 to vector<1x128xi32>
    %21 = arith.cmpi ne, %17, %20 : vector<1x128xi32>
    %c1_i32_5 = arith.constant 1 : i32
    %22 = tpu.dynamic_rotate %0 by %c1_i32_5 dim 1 : vector<16x128xf32>, i32 -> vector<16x128xf32>
    %cst = arith.constant 0.000000e+00 : f32
    %23 = vector.shape_cast %19 : vector<1x128xi1> to vector<1x128xi1>
    %24 = vector.broadcast %23 : vector<1x128xi1> to vector<16x128xi1>
    %25 = vector.broadcast %cst : f32 to vector<16x128xf32>
    %26 = arith.select %24, %22, %25 : vector<16x128xi1>, vector<16x128xf32>
    %c127_i32 = arith.constant 127 : i32
    %27 = tpu.dynamic_rotate %0 by %c127_i32 dim 1 : vector<16x128xf32>, i32 -> vector<16x128xf32>
    %cst_6 = arith.constant 0.000000e+00 : f32
    %28 = vector.shape_cast %21 : vector<1x128xi1> to vector<1x128xi1>
    %29 = vector.broadcast %28 : vector<1x128xi1> to vector<16x128xi1>
    %30 = vector.broadcast %cst_6 : f32 to vector<16x128xf32>
    %31 = arith.select %29, %27, %30 : vector<16x128xi1>, vector<16x128xf32>
    %c0_7 = arith.constant 0 : index
    %c0_8 = arith.constant 0 : index
    %32 = vector.load %arg3[%c0_7, %c0_8] : memref<16x128xf32, #tpu.memory_space<vmem>>, vector<16x128xf32>
    %c0_9 = arith.constant 0 : index
    %c0_10 = arith.constant 0 : index
    %33 = vector.load %arg5[%c0_9, %c0_10] : memref<32x128xf32, #tpu.memory_space<vmem>>, vector<32x128xf32>
    %c0_11 = arith.constant 0 : index
    %c0_12 = arith.constant 0 : index
    %34 = vector.load %arg4[%c0_11, %c0_12] : memref<32x144xbf16, #tpu.memory_space<vmem>>, vector<32x144xbf16>
    %cst_13 = arith.constant 0.000000e+00 : f32
    %35 = vector.broadcast %cst_13 : f32 to vector<32x128xf32>
    %cst_14 = arith.constant 0.000000e+00 : bf16
    %36 = vector.broadcast %cst_14 : bf16 to vector<48x128xbf16>
    %37 = vector.extract_strided_slice %26 {offsets = [0, 0], sizes = [1, 128], strides = [1, 1]} : vector<16x128xf32> to vector<1x128xf32>
    %38 = vector.extract_strided_slice %0 {offsets = [0, 0], sizes = [1, 128], strides = [1, 1]} : vector<16x128xf32> to vector<1x128xf32>
    %39 = vector.extract_strided_slice %31 {offsets = [0, 0], sizes = [1, 128], strides = [1, 1]} : vector<16x128xf32> to vector<1x128xf32>
    %c3 = arith.constant 3 : index
    %c0_15 = arith.constant 0 : index
    %c0_16 = arith.constant 0 : index
    %40 = vector.load %arg2[%c3, %c0_15, %c0_16] : memref<9x16x128xf32, #tpu.memory_space<vmem>>, vector<1x16x128xf32>
    %41 = vector.shape_cast %40 : vector<1x16x128xf32> to vector<16x128xf32>
    %42 = vector.broadcast %37 : vector<1x128xf32> to vector<16x128xf32>
    %43 = arith.mulf %41, %42 : vector<16x128xf32>
    %44 = arith.addf %32, %43 : vector<16x128xf32>
    %c4 = arith.constant 4 : index
    %c0_17 = arith.constant 0 : index
    %c0_18 = arith.constant 0 : index
    %45 = vector.load %arg2[%c4, %c0_17, %c0_18] : memref<9x16x128xf32, #tpu.memory_space<vmem>>, vector<1x16x128xf32>
    %46 = vector.shape_cast %45 : vector<1x16x128xf32> to vector<16x128xf32>
    %47 = vector.broadcast %38 : vector<1x128xf32> to vector<16x128xf32>
    %48 = arith.mulf %46, %47 : vector<16x128xf32>
    %49 = arith.addf %44, %48 : vector<16x128xf32>
    %c5 = arith.constant 5 : index
    %c0_19 = arith.constant 0 : index
    %c0_20 = arith.constant 0 : index
    %50 = vector.load %arg2[%c5, %c0_19, %c0_20] : memref<9x16x128xf32, #tpu.memory_space<vmem>>, vector<1x16x128xf32>
    %51 = vector.shape_cast %50 : vector<1x16x128xf32> to vector<16x128xf32>
    %52 = vector.broadcast %39 : vector<1x128xf32> to vector<16x128xf32>
    %53 = arith.mulf %51, %52 : vector<16x128xf32>
    %54 = arith.addf %49, %53 : vector<16x128xf32>
    %55 = vector.extract_strided_slice %26 {offsets = [1, 0], sizes = [1, 128], strides = [1, 1]} : vector<16x128xf32> to vector<1x128xf32>
    %56 = vector.extract_strided_slice %0 {offsets = [1, 0], sizes = [1, 128], strides = [1, 1]} : vector<16x128xf32> to vector<1x128xf32>
    %57 = vector.extract_strided_slice %31 {offsets = [1, 0], sizes = [1, 128], strides = [1, 1]} : vector<16x128xf32> to vector<1x128xf32>
    %c6 = arith.constant 6 : index
    %c0_21 = arith.constant 0 : index
    %c0_22 = arith.constant 0 : index
    %58 = vector.load %arg2[%c6, %c0_21, %c0_22] : memref<9x16x128xf32, #tpu.memory_space<vmem>>, vector<1x16x128xf32>
    %59 = vector.shape_cast %58 : vector<1x16x128xf32> to vector<16x128xf32>
    %60 = vector.broadcast %55 : vector<1x128xf32> to vector<16x128xf32>
    %61 = arith.mulf %59, %60 : vector<16x128xf32>
    %62 = arith.addf %54, %61 : vector<16x128xf32>
    %c7 = arith.constant 7 : index
    %c0_23 = arith.constant 0 : index
    %c0_24 = arith.constant 0 : index
    %63 = vector.load %arg2[%c7, %c0_23, %c0_24] : memref<9x16x128xf32, #tpu.memory_space<vmem>>, vector<1x16x128xf32>
    %64 = vector.shape_cast %63 : vector<1x16x128xf32> to vector<16x128xf32>
    %65 = vector.broadcast %56 : vector<1x128xf32> to vector<16x128xf32>
    %66 = arith.mulf %64, %65 : vector<16x128xf32>
    %67 = arith.addf %62, %66 : vector<16x128xf32>
    %c8 = arith.constant 8 : index
    %c0_25 = arith.constant 0 : index
    %c0_26 = arith.constant 0 : index
    %68 = vector.load %arg2[%c8, %c0_25, %c0_26] : memref<9x16x128xf32, #tpu.memory_space<vmem>>, vector<1x16x128xf32>
    %69 = vector.shape_cast %68 : vector<1x16x128xf32> to vector<16x128xf32>
    %70 = vector.broadcast %57 : vector<1x128xf32> to vector<16x128xf32>
    %71 = arith.mulf %69, %70 : vector<16x128xf32>
    %72 = arith.addf %67, %71 : vector<16x128xf32>
    %cst_27 = arith.constant 0.000000e+00 : f32
    %73 = vector.broadcast %cst_27 : f32 to vector<16x128xf32>
    %74 = arith.maximumf %72, %73 : vector<16x128xf32>
    %c1_i32_28 = arith.constant 1 : i32
    %75 = tpu.dynamic_rotate %74 by %c1_i32_28 dim 1 : vector<16x128xf32>, i32 -> vector<16x128xf32>
    %cst_29 = arith.constant 0.000000e+00 : f32
    %76 = vector.shape_cast %19 : vector<1x128xi1> to vector<1x128xi1>
    %77 = vector.broadcast %76 : vector<1x128xi1> to vector<16x128xi1>
    %78 = vector.broadcast %cst_29 : f32 to vector<16x128xf32>
    %79 = arith.select %77, %75, %78 : vector<16x128xi1>, vector<16x128xf32>
    %c127_i32_30 = arith.constant 127 : i32
    %80 = tpu.dynamic_rotate %74 by %c127_i32_30 dim 1 : vector<16x128xf32>, i32 -> vector<16x128xf32>
    %cst_31 = arith.constant 0.000000e+00 : f32
    %81 = vector.shape_cast %21 : vector<1x128xi1> to vector<1x128xi1>
    %82 = vector.broadcast %81 : vector<1x128xi1> to vector<16x128xi1>
    %83 = vector.broadcast %cst_31 : f32 to vector<16x128xf32>
    %84 = arith.select %82, %80, %83 : vector<16x128xi1>, vector<16x128xf32>
    %85 = tpu.concatenate %79, %74, %84 in 0 : vector<16x128xf32>, vector<16x128xf32>, vector<16x128xf32> -> vector<48x128xf32>
    %86 = arith.truncf %85 : vector<48x128xf32> to vector<48x128xbf16>
    %87 = vector.extract_strided_slice %26 {offsets = [0, 0], sizes = [1, 128], strides = [1, 1]} : vector<16x128xf32> to vector<1x128xf32>
    %88 = vector.extract_strided_slice %0 {offsets = [0, 0], sizes = [1, 128], strides = [1, 1]} : vector<16x128xf32> to vector<1x128xf32>
    %89 = vector.extract_strided_slice %31 {offsets = [0, 0], sizes = [1, 128], strides = [1, 1]} : vector<16x128xf32> to vector<1x128xf32>
    %c0_32 = arith.constant 0 : index
    %c0_33 = arith.constant 0 : index
    %c0_34 = arith.constant 0 : index
    %90 = vector.load %arg2[%c0_32, %c0_33, %c0_34] : memref<9x16x128xf32, #tpu.memory_space<vmem>>, vector<1x16x128xf32>
    %91 = vector.shape_cast %90 : vector<1x16x128xf32> to vector<16x128xf32>
    %92 = vector.broadcast %87 : vector<1x128xf32> to vector<16x128xf32>
    %93 = arith.mulf %91, %92 : vector<16x128xf32>
    %94 = arith.addf %32, %93 : vector<16x128xf32>
    %c1 = arith.constant 1 : index
    %c0_35 = arith.constant 0 : index
    %c0_36 = arith.constant 0 : index
    %95 = vector.load %arg2[%c1, %c0_35, %c0_36] : memref<9x16x128xf32, #tpu.memory_space<vmem>>, vector<1x16x128xf32>
    %96 = vector.shape_cast %95 : vector<1x16x128xf32> to vector<16x128xf32>
    %97 = vector.broadcast %88 : vector<1x128xf32> to vector<16x128xf32>
    %98 = arith.mulf %96, %97 : vector<16x128xf32>
    %99 = arith.addf %94, %98 : vector<16x128xf32>
    %c2 = arith.constant 2 : index
    %c0_37 = arith.constant 0 : index
    %c0_38 = arith.constant 0 : index
    %100 = vector.load %arg2[%c2, %c0_37, %c0_38] : memref<9x16x128xf32, #tpu.memory_space<vmem>>, vector<1x16x128xf32>
    %101 = vector.shape_cast %100 : vector<1x16x128xf32> to vector<16x128xf32>
    %102 = vector.broadcast %89 : vector<1x128xf32> to vector<16x128xf32>
    %103 = arith.mulf %101, %102 : vector<16x128xf32>
    %104 = arith.addf %99, %103 : vector<16x128xf32>
    %105 = vector.extract_strided_slice %26 {offsets = [1, 0], sizes = [1, 128], strides = [1, 1]} : vector<16x128xf32> to vector<1x128xf32>
    %106 = vector.extract_strided_slice %0 {offsets = [1, 0], sizes = [1, 128], strides = [1, 1]} : vector<16x128xf32> to vector<1x128xf32>
    %107 = vector.extract_strided_slice %31 {offsets = [1, 0], sizes = [1, 128], strides = [1, 1]} : vector<16x128xf32> to vector<1x128xf32>
    %c3_39 = arith.constant 3 : index
    %c0_40 = arith.constant 0 : index
    %c0_41 = arith.constant 0 : index
    %108 = vector.load %arg2[%c3_39, %c0_40, %c0_41] : memref<9x16x128xf32, #tpu.memory_space<vmem>>, vector<1x16x128xf32>
    %109 = vector.shape_cast %108 : vector<1x16x128xf32> to vector<16x128xf32>
    %110 = vector.broadcast %105 : vector<1x128xf32> to vector<16x128xf32>
    %111 = arith.mulf %109, %110 : vector<16x128xf32>
    %112 = arith.addf %104, %111 : vector<16x128xf32>
    %c4_42 = arith.constant 4 : index
    %c0_43 = arith.constant 0 : index
    %c0_44 = arith.constant 0 : index
    %113 = vector.load %arg2[%c4_42, %c0_43, %c0_44] : memref<9x16x128xf32, #tpu.memory_space<vmem>>, vector<1x16x128xf32>
    %114 = vector.shape_cast %113 : vector<1x16x128xf32> to vector<16x128xf32>
    %115 = vector.broadcast %106 : vector<1x128xf32> to vector<16x128xf32>
    %116 = arith.mulf %114, %115 : vector<16x128xf32>
    %117 = arith.addf %112, %116 : vector<16x128xf32>
    %c5_45 = arith.constant 5 : index
    %c0_46 = arith.constant 0 : index
    %c0_47 = arith.constant 0 : index
    %118 = vector.load %arg2[%c5_45, %c0_46, %c0_47] : memref<9x16x128xf32, #tpu.memory_space<vmem>>, vector<1x16x128xf32>
    %119 = vector.shape_cast %118 : vector<1x16x128xf32> to vector<16x128xf32>
    %120 = vector.broadcast %107 : vector<1x128xf32> to vector<16x128xf32>
    %121 = arith.mulf %119, %120 : vector<16x128xf32>
    %122 = arith.addf %117, %121 : vector<16x128xf32>
    %123 = vector.extract_strided_slice %26 {offsets = [2, 0], sizes = [1, 128], strides = [1, 1]} : vector<16x128xf32> to vector<1x128xf32>
    %124 = vector.extract_strided_slice %0 {offsets = [2, 0], sizes = [1, 128], strides = [1, 1]} : vector<16x128xf32> to vector<1x128xf32>
    %125 = vector.extract_strided_slice %31 {offsets = [2, 0], sizes = [1, 128], strides = [1, 1]} : vector<16x128xf32> to vector<1x128xf32>
    %c6_48 = arith.constant 6 : index
    %c0_49 = arith.constant 0 : index
    %c0_50 = arith.constant 0 : index
    %126 = vector.load %arg2[%c6_48, %c0_49, %c0_50] : memref<9x16x128xf32, #tpu.memory_space<vmem>>, vector<1x16x128xf32>
    %127 = vector.shape_cast %126 : vector<1x16x128xf32> to vector<16x128xf32>
    %128 = vector.broadcast %123 : vector<1x128xf32> to vector<16x128xf32>
    %129 = arith.mulf %127, %128 : vector<16x128xf32>
    %130 = arith.addf %122, %129 : vector<16x128xf32>
    %c7_51 = arith.constant 7 : index
    %c0_52 = arith.constant 0 : index
    %c0_53 = arith.constant 0 : index
    %131 = vector.load %arg2[%c7_51, %c0_52, %c0_53] : memref<9x16x128xf32, #tpu.memory_space<vmem>>, vector<1x16x128xf32>
    %132 = vector.shape_cast %131 : vector<1x16x128xf32> to vector<16x128xf32>
    %133 = vector.broadcast %124 : vector<1x128xf32> to vector<16x128xf32>
    %134 = arith.mulf %132, %133 : vector<16x128xf32>
    %135 = arith.addf %130, %134 : vector<16x128xf32>
    %c8_54 = arith.constant 8 : index
    %c0_55 = arith.constant 0 : index
    %c0_56 = arith.constant 0 : index
    %136 = vector.load %arg2[%c8_54, %c0_55, %c0_56] : memref<9x16x128xf32, #tpu.memory_space<vmem>>, vector<1x16x128xf32>
    %137 = vector.shape_cast %136 : vector<1x16x128xf32> to vector<16x128xf32>
    %138 = vector.broadcast %125 : vector<1x128xf32> to vector<16x128xf32>
    %139 = arith.mulf %137, %138 : vector<16x128xf32>
    %140 = arith.addf %135, %139 : vector<16x128xf32>
    %cst_57 = arith.constant 0.000000e+00 : f32
    %141 = vector.broadcast %cst_57 : f32 to vector<16x128xf32>
    %142 = arith.maximumf %140, %141 : vector<16x128xf32>
    %c1_i32_58 = arith.constant 1 : i32
    %143 = tpu.dynamic_rotate %142 by %c1_i32_58 dim 1 : vector<16x128xf32>, i32 -> vector<16x128xf32>
    %cst_59 = arith.constant 0.000000e+00 : f32
    %144 = vector.shape_cast %19 : vector<1x128xi1> to vector<1x128xi1>
    %145 = vector.broadcast %144 : vector<1x128xi1> to vector<16x128xi1>
    %146 = vector.broadcast %cst_59 : f32 to vector<16x128xf32>
    %147 = arith.select %145, %143, %146 : vector<16x128xi1>, vector<16x128xf32>
    %c127_i32_60 = arith.constant 127 : i32
    %148 = tpu.dynamic_rotate %142 by %c127_i32_60 dim 1 : vector<16x128xf32>, i32 -> vector<16x128xf32>
    %cst_61 = arith.constant 0.000000e+00 : f32
    %149 = vector.shape_cast %21 : vector<1x128xi1> to vector<1x128xi1>
    %150 = vector.broadcast %149 : vector<1x128xi1> to vector<16x128xi1>
    %151 = vector.broadcast %cst_61 : f32 to vector<16x128xf32>
    %152 = arith.select %150, %148, %151 : vector<16x128xi1>, vector<16x128xf32>
    %153 = tpu.concatenate %147, %142, %152 in 0 : vector<16x128xf32>, vector<16x128xf32>, vector<16x128xf32> -> vector<48x128xf32>
    %154 = arith.truncf %153 : vector<48x128xf32> to vector<48x128xbf16>
    %155 = tpu.concatenate %36, %86, %154 in 0 : vector<48x128xbf16>, vector<48x128xbf16>, vector<48x128xbf16> -> vector<144x128xbf16>
    %cst_62 = arith.constant dense<0.000000e+00> : vector<32x128xf32>
    %156 = tpu.matmul %34, %155, %cst_62 {dimension_numbers = #tpu.dot_dimension_numbers<[1], [0], [0], [1], [0, 0, 1, 1], [], []>} : vector<32x144xbf16>, vector<144x128xbf16>, vector<32x128xf32> -> vector<32x128xf32>
    %157 = arith.addf %156, %33 : vector<32x128xf32>
    %cst_63 = arith.constant 0.000000e+00 : f32
    %158 = vector.broadcast %cst_63 : f32 to vector<32x128xf32>
    %159 = arith.maximumf %157, %158 : vector<32x128xf32>
    %160 = arith.addf %35, %159 : vector<32x128xf32>
    %161 = vector.extract_strided_slice %26 {offsets = [1, 0], sizes = [1, 128], strides = [1, 1]} : vector<16x128xf32> to vector<1x128xf32>
    %162 = vector.extract_strided_slice %0 {offsets = [1, 0], sizes = [1, 128], strides = [1, 1]} : vector<16x128xf32> to vector<1x128xf32>
    %163 = vector.extract_strided_slice %31 {offsets = [1, 0], sizes = [1, 128], strides = [1, 1]} : vector<16x128xf32> to vector<1x128xf32>
    %c0_64 = arith.constant 0 : index
    %c0_65 = arith.constant 0 : index
    %c0_66 = arith.constant 0 : index
    %164 = vector.load %arg2[%c0_64, %c0_65, %c0_66] : memref<9x16x128xf32, #tpu.memory_space<vmem>>, vector<1x16x128xf32>
    %165 = vector.shape_cast %164 : vector<1x16x128xf32> to vector<16x128xf32>
    %166 = vector.broadcast %161 : vector<1x128xf32> to vector<16x128xf32>
    %167 = arith.mulf %165, %166 : vector<16x128xf32>
    %168 = arith.addf %32, %167 : vector<16x128xf32>
    %c1_67 = arith.constant 1 : index
    %c0_68 = arith.constant 0 : index
    %c0_69 = arith.constant 0 : index
    %169 = vector.load %arg2[%c1_67, %c0_68, %c0_69] : memref<9x16x128xf32, #tpu.memory_space<vmem>>, vector<1x16x128xf32>
    %170 = vector.shape_cast %169 : vector<1x16x128xf32> to vector<16x128xf32>
    %171 = vector.broadcast %162 : vector<1x128xf32> to vector<16x128xf32>
    %172 = arith.mulf %170, %171 : vector<16x128xf32>
    %173 = arith.addf %168, %172 : vector<16x128xf32>
    %c2_70 = arith.constant 2 : index
    %c0_71 = arith.constant 0 : index
    %c0_72 = arith.constant 0 : index
    %174 = vector.load %arg2[%c2_70, %c0_71, %c0_72] : memref<9x16x128xf32, #tpu.memory_space<vmem>>, vector<1x16x128xf32>
    %175 = vector.shape_cast %174 : vector<1x16x128xf32> to vector<16x128xf32>
    %176 = vector.broadcast %163 : vector<1x128xf32> to vector<16x128xf32>
    %177 = arith.mulf %175, %176 : vector<16x128xf32>
    %178 = arith.addf %173, %177 : vector<16x128xf32>
    %179 = vector.extract_strided_slice %26 {offsets = [2, 0], sizes = [1, 128], strides = [1, 1]} : vector<16x128xf32> to vector<1x128xf32>
    %180 = vector.extract_strided_slice %0 {offsets = [2, 0], sizes = [1, 128], strides = [1, 1]} : vector<16x128xf32> to vector<1x128xf32>
    %181 = vector.extract_strided_slice %31 {offsets = [2, 0], sizes = [1, 128], strides = [1, 1]} : vector<16x128xf32> to vector<1x128xf32>
    %c3_73 = arith.constant 3 : index
    %c0_74 = arith.constant 0 : index
    %c0_75 = arith.constant 0 : index
    %182 = vector.load %arg2[%c3_73, %c0_74, %c0_75] : memref<9x16x128xf32, #tpu.memory_space<vmem>>, vector<1x16x128xf32>
    %183 = vector.shape_cast %182 : vector<1x16x128xf32> to vector<16x128xf32>
    %184 = vector.broadcast %179 : vector<1x128xf32> to vector<16x128xf32>
    %185 = arith.mulf %183, %184 : vector<16x128xf32>
    %186 = arith.addf %178, %185 : vector<16x128xf32>
    %c4_76 = arith.constant 4 : index
    %c0_77 = arith.constant 0 : index
    %c0_78 = arith.constant 0 : index
    %187 = vector.load %arg2[%c4_76, %c0_77, %c0_78] : memref<9x16x128xf32, #tpu.memory_space<vmem>>, vector<1x16x128xf32>
    %188 = vector.shape_cast %187 : vector<1x16x128xf32> to vector<16x128xf32>
    %189 = vector.broadcast %180 : vector<1x128xf32> to vector<16x128xf32>
    %190 = arith.mulf %188, %189 : vector<16x128xf32>
    %191 = arith.addf %186, %190 : vector<16x128xf32>
    %c5_79 = arith.constant 5 : index
    %c0_80 = arith.constant 0 : index
    %c0_81 = arith.constant 0 : index
    %192 = vector.load %arg2[%c5_79, %c0_80, %c0_81] : memref<9x16x128xf32, #tpu.memory_space<vmem>>, vector<1x16x128xf32>
    %193 = vector.shape_cast %192 : vector<1x16x128xf32> to vector<16x128xf32>
    %194 = vector.broadcast %181 : vector<1x128xf32> to vector<16x128xf32>
    %195 = arith.mulf %193, %194 : vector<16x128xf32>
    %196 = arith.addf %191, %195 : vector<16x128xf32>
    %197 = vector.extract_strided_slice %26 {offsets = [3, 0], sizes = [1, 128], strides = [1, 1]} : vector<16x128xf32> to vector<1x128xf32>
    %198 = vector.extract_strided_slice %0 {offsets = [3, 0], sizes = [1, 128], strides = [1, 1]} : vector<16x128xf32> to vector<1x128xf32>
    %199 = vector.extract_strided_slice %31 {offsets = [3, 0], sizes = [1, 128], strides = [1, 1]} : vector<16x128xf32> to vector<1x128xf32>
    %c6_82 = arith.constant 6 : index
    %c0_83 = arith.constant 0 : index
    %c0_84 = arith.constant 0 : index
    %200 = vector.load %arg2[%c6_82, %c0_83, %c0_84] : memref<9x16x128xf32, #tpu.memory_space<vmem>>, vector<1x16x128xf32>
    %201 = vector.shape_cast %200 : vector<1x16x128xf32> to vector<16x128xf32>
    %202 = vector.broadcast %197 : vector<1x128xf32> to vector<16x128xf32>
    %203 = arith.mulf %201, %202 : vector<16x128xf32>
    %204 = arith.addf %196, %203 : vector<16x128xf32>
    %c7_85 = arith.constant 7 : index
    %c0_86 = arith.constant 0 : index
    %c0_87 = arith.constant 0 : index
    %205 = vector.load %arg2[%c7_85, %c0_86, %c0_87] : memref<9x16x128xf32, #tpu.memory_space<vmem>>, vector<1x16x128xf32>
    %206 = vector.shape_cast %205 : vector<1x16x128xf32> to vector<16x128xf32>
    %207 = vector.broadcast %198 : vector<1x128xf32> to vector<16x128xf32>
    %208 = arith.mulf %206, %207 : vector<16x128xf32>
    %209 = arith.addf %204, %208 : vector<16x128xf32>
    %c8_88 = arith.constant 8 : index
    %c0_89 = arith.constant 0 : index
    %c0_90 = arith.constant 0 : index
    %210 = vector.load %arg2[%c8_88, %c0_89, %c0_90] : memref<9x16x128xf32, #tpu.memory_space<vmem>>, vector<1x16x128xf32>
    %211 = vector.shape_cast %210 : vector<1x16x128xf32> to vector<16x128xf32>
    %212 = vector.broadcast %199 : vector<1x128xf32> to vector<16x128xf32>
    %213 = arith.mulf %211, %212 : vector<16x128xf32>
    %214 = arith.addf %209, %213 : vector<16x128xf32>
    %cst_91 = arith.constant 0.000000e+00 : f32
    %215 = vector.broadcast %cst_91 : f32 to vector<16x128xf32>
    %216 = arith.maximumf %214, %215 : vector<16x128xf32>
    %c1_i32_92 = arith.constant 1 : i32
    %217 = tpu.dynamic_rotate %216 by %c1_i32_92 dim 1 : vector<16x128xf32>, i32 -> vector<16x128xf32>
    %cst_93 = arith.constant 0.000000e+00 : f32
    %218 = vector.shape_cast %19 : vector<1x128xi1> to vector<1x128xi1>
    %219 = vector.broadcast %218 : vector<1x128xi1> to vector<16x128xi1>
    %220 = vector.broadcast %cst_93 : f32 to vector<16x128xf32>
    %221 = arith.select %219, %217, %220 : vector<16x128xi1>, vector<16x128xf32>
    %c127_i32_94 = arith.constant 127 : i32
    %222 = tpu.dynamic_rotate %216 by %c127_i32_94 dim 1 : vector<16x128xf32>, i32 -> vector<16x128xf32>
    %cst_95 = arith.constant 0.000000e+00 : f32
    %223 = vector.shape_cast %21 : vector<1x128xi1> to vector<1x128xi1>
    %224 = vector.broadcast %223 : vector<1x128xi1> to vector<16x128xi1>
    %225 = vector.broadcast %cst_95 : f32 to vector<16x128xf32>
    %226 = arith.select %224, %222, %225 : vector<16x128xi1>, vector<16x128xf32>
    %227 = tpu.concatenate %221, %216, %226 in 0 : vector<16x128xf32>, vector<16x128xf32>, vector<16x128xf32> -> vector<48x128xf32>
    %228 = arith.truncf %227 : vector<48x128xf32> to vector<48x128xbf16>
    %229 = tpu.concatenate %86, %154, %228 in 0 : vector<48x128xbf16>, vector<48x128xbf16>, vector<48x128xbf16> -> vector<144x128xbf16>
    %cst_96 = arith.constant dense<0.000000e+00> : vector<32x128xf32>
    %230 = tpu.matmul %34, %229, %cst_96 {dimension_numbers = #tpu.dot_dimension_numbers<[1], [0], [0], [1], [0, 0, 1, 1], [], []>} : vector<32x144xbf16>, vector<144x128xbf16>, vector<32x128xf32> -> vector<32x128xf32>
    %231 = arith.addf %230, %33 : vector<32x128xf32>
    %cst_97 = arith.constant 0.000000e+00 : f32
    %232 = vector.broadcast %cst_97 : f32 to vector<32x128xf32>
    %233 = arith.maximumf %231, %232 : vector<32x128xf32>
    %234 = arith.addf %160, %233 : vector<32x128xf32>
    %235 = vector.extract_strided_slice %26 {offsets = [2, 0], sizes = [1, 128], strides = [1, 1]} : vector<16x128xf32> to vector<1x128xf32>
    %236 = vector.extract_strided_slice %0 {offsets = [2, 0], sizes = [1, 128], strides = [1, 1]} : vector<16x128xf32> to vector<1x128xf32>
    %237 = vector.extract_strided_slice %31 {offsets = [2, 0], sizes = [1, 128], strides = [1, 1]} : vector<16x128xf32> to vector<1x128xf32>
    %c0_98 = arith.constant 0 : index
    %c0_99 = arith.constant 0 : index
    %c0_100 = arith.constant 0 : index
    %238 = vector.load %arg2[%c0_98, %c0_99, %c0_100] : memref<9x16x128xf32, #tpu.memory_space<vmem>>, vector<1x16x128xf32>
    %239 = vector.shape_cast %238 : vector<1x16x128xf32> to vector<16x128xf32>
    %240 = vector.broadcast %235 : vector<1x128xf32> to vector<16x128xf32>
    %241 = arith.mulf %239, %240 : vector<16x128xf32>
    %242 = arith.addf %32, %241 : vector<16x128xf32>
    %c1_101 = arith.constant 1 : index
    %c0_102 = arith.constant 0 : index
    %c0_103 = arith.constant 0 : index
    %243 = vector.load %arg2[%c1_101, %c0_102, %c0_103] : memref<9x16x128xf32, #tpu.memory_space<vmem>>, vector<1x16x128xf32>
    %244 = vector.shape_cast %243 : vector<1x16x128xf32> to vector<16x128xf32>
    %245 = vector.broadcast %236 : vector<1x128xf32> to vector<16x128xf32>
    %246 = arith.mulf %244, %245 : vector<16x128xf32>
    %247 = arith.addf %242, %246 : vector<16x128xf32>
    %c2_104 = arith.constant 2 : index
    %c0_105 = arith.constant 0 : index
    %c0_106 = arith.constant 0 : index
    %248 = vector.load %arg2[%c2_104, %c0_105, %c0_106] : memref<9x16x128xf32, #tpu.memory_space<vmem>>, vector<1x16x128xf32>
    %249 = vector.shape_cast %248 : vector<1x16x128xf32> to vector<16x128xf32>
    %250 = vector.broadcast %237 : vector<1x128xf32> to vector<16x128xf32>
    %251 = arith.mulf %249, %250 : vector<16x128xf32>
    %252 = arith.addf %247, %251 : vector<16x128xf32>
    %253 = vector.extract_strided_slice %26 {offsets = [3, 0], sizes = [1, 128], strides = [1, 1]} : vector<16x128xf32> to vector<1x128xf32>
    %254 = vector.extract_strided_slice %0 {offsets = [3, 0], sizes = [1, 128], strides = [1, 1]} : vector<16x128xf32> to vector<1x128xf32>
    %255 = vector.extract_strided_slice %31 {offsets = [3, 0], sizes = [1, 128], strides = [1, 1]} : vector<16x128xf32> to vector<1x128xf32>
    %c3_107 = arith.constant 3 : index
    %c0_108 = arith.constant 0 : index
    %c0_109 = arith.constant 0 : index
    %256 = vector.load %arg2[%c3_107, %c0_108, %c0_109] : memref<9x16x128xf32, #tpu.memory_space<vmem>>, vector<1x16x128xf32>
    %257 = vector.shape_cast %256 : vector<1x16x128xf32> to vector<16x128xf32>
    %258 = vector.broadcast %253 : vector<1x128xf32> to vector<16x128xf32>
    %259 = arith.mulf %257, %258 : vector<16x128xf32>
    %260 = arith.addf %252, %259 : vector<16x128xf32>
    %c4_110 = arith.constant 4 : index
    %c0_111 = arith.constant 0 : index
    %c0_112 = arith.constant 0 : index
    %261 = vector.load %arg2[%c4_110, %c0_111, %c0_112] : memref<9x16x128xf32, #tpu.memory_space<vmem>>, vector<1x16x128xf32>
    %262 = vector.shape_cast %261 : vector<1x16x128xf32> to vector<16x128xf32>
    %263 = vector.broadcast %254 : vector<1x128xf32> to vector<16x128xf32>
    %264 = arith.mulf %262, %263 : vector<16x128xf32>
    %265 = arith.addf %260, %264 : vector<16x128xf32>
    %c5_113 = arith.constant 5 : index
    %c0_114 = arith.constant 0 : index
    %c0_115 = arith.constant 0 : index
    %266 = vector.load %arg2[%c5_113, %c0_114, %c0_115] : memref<9x16x128xf32, #tpu.memory_space<vmem>>, vector<1x16x128xf32>
    %267 = vector.shape_cast %266 : vector<1x16x128xf32> to vector<16x128xf32>
    %268 = vector.broadcast %255 : vector<1x128xf32> to vector<16x128xf32>
    %269 = arith.mulf %267, %268 : vector<16x128xf32>
    %270 = arith.addf %265, %269 : vector<16x128xf32>
    %271 = vector.extract_strided_slice %26 {offsets = [4, 0], sizes = [1, 128], strides = [1, 1]} : vector<16x128xf32> to vector<1x128xf32>
    %272 = vector.extract_strided_slice %0 {offsets = [4, 0], sizes = [1, 128], strides = [1, 1]} : vector<16x128xf32> to vector<1x128xf32>
    %273 = vector.extract_strided_slice %31 {offsets = [4, 0], sizes = [1, 128], strides = [1, 1]} : vector<16x128xf32> to vector<1x128xf32>
    %c6_116 = arith.constant 6 : index
    %c0_117 = arith.constant 0 : index
    %c0_118 = arith.constant 0 : index
    %274 = vector.load %arg2[%c6_116, %c0_117, %c0_118] : memref<9x16x128xf32, #tpu.memory_space<vmem>>, vector<1x16x128xf32>
    %275 = vector.shape_cast %274 : vector<1x16x128xf32> to vector<16x128xf32>
    %276 = vector.broadcast %271 : vector<1x128xf32> to vector<16x128xf32>
    %277 = arith.mulf %275, %276 : vector<16x128xf32>
    %278 = arith.addf %270, %277 : vector<16x128xf32>
    %c7_119 = arith.constant 7 : index
    %c0_120 = arith.constant 0 : index
    %c0_121 = arith.constant 0 : index
    %279 = vector.load %arg2[%c7_119, %c0_120, %c0_121] : memref<9x16x128xf32, #tpu.memory_space<vmem>>, vector<1x16x128xf32>
    %280 = vector.shape_cast %279 : vector<1x16x128xf32> to vector<16x128xf32>
    %281 = vector.broadcast %272 : vector<1x128xf32> to vector<16x128xf32>
    %282 = arith.mulf %280, %281 : vector<16x128xf32>
    %283 = arith.addf %278, %282 : vector<16x128xf32>
    %c8_122 = arith.constant 8 : index
    %c0_123 = arith.constant 0 : index
    %c0_124 = arith.constant 0 : index
    %284 = vector.load %arg2[%c8_122, %c0_123, %c0_124] : memref<9x16x128xf32, #tpu.memory_space<vmem>>, vector<1x16x128xf32>
    %285 = vector.shape_cast %284 : vector<1x16x128xf32> to vector<16x128xf32>
    %286 = vector.broadcast %273 : vector<1x128xf32> to vector<16x128xf32>
    %287 = arith.mulf %285, %286 : vector<16x128xf32>
    %288 = arith.addf %283, %287 : vector<16x128xf32>
    %cst_125 = arith.constant 0.000000e+00 : f32
    %289 = vector.broadcast %cst_125 : f32 to vector<16x128xf32>
    %290 = arith.maximumf %288, %289 : vector<16x128xf32>
    %c1_i32_126 = arith.constant 1 : i32
    %291 = tpu.dynamic_rotate %290 by %c1_i32_126 dim 1 : vector<16x128xf32>, i32 -> vector<16x128xf32>
    %cst_127 = arith.constant 0.000000e+00 : f32
    %292 = vector.shape_cast %19 : vector<1x128xi1> to vector<1x128xi1>
    %293 = vector.broadcast %292 : vector<1x128xi1> to vector<16x128xi1>
    %294 = vector.broadcast %cst_127 : f32 to vector<16x128xf32>
    %295 = arith.select %293, %291, %294 : vector<16x128xi1>, vector<16x128xf32>
    %c127_i32_128 = arith.constant 127 : i32
    %296 = tpu.dynamic_rotate %290 by %c127_i32_128 dim 1 : vector<16x128xf32>, i32 -> vector<16x128xf32>
    %cst_129 = arith.constant 0.000000e+00 : f32
    %297 = vector.shape_cast %21 : vector<1x128xi1> to vector<1x128xi1>
    %298 = vector.broadcast %297 : vector<1x128xi1> to vector<16x128xi1>
    %299 = vector.broadcast %cst_129 : f32 to vector<16x128xf32>
    %300 = arith.select %298, %296, %299 : vector<16x128xi1>, vector<16x128xf32>
    %301 = tpu.concatenate %295, %290, %300 in 0 : vector<16x128xf32>, vector<16x128xf32>, vector<16x128xf32> -> vector<48x128xf32>
    %302 = arith.truncf %301 : vector<48x128xf32> to vector<48x128xbf16>
    %303 = tpu.concatenate %154, %228, %302 in 0 : vector<48x128xbf16>, vector<48x128xbf16>, vector<48x128xbf16> -> vector<144x128xbf16>
    %cst_130 = arith.constant dense<0.000000e+00> : vector<32x128xf32>
    %304 = tpu.matmul %34, %303, %cst_130 {dimension_numbers = #tpu.dot_dimension_numbers<[1], [0], [0], [1], [0, 0, 1, 1], [], []>} : vector<32x144xbf16>, vector<144x128xbf16>, vector<32x128xf32> -> vector<32x128xf32>
    %305 = arith.addf %304, %33 : vector<32x128xf32>
    %cst_131 = arith.constant 0.000000e+00 : f32
    %306 = vector.broadcast %cst_131 : f32 to vector<32x128xf32>
    %307 = arith.maximumf %305, %306 : vector<32x128xf32>
    %308 = arith.addf %234, %307 : vector<32x128xf32>
    %309 = vector.extract_strided_slice %26 {offsets = [3, 0], sizes = [1, 128], strides = [1, 1]} : vector<16x128xf32> to vector<1x128xf32>
    %310 = vector.extract_strided_slice %0 {offsets = [3, 0], sizes = [1, 128], strides = [1, 1]} : vector<16x128xf32> to vector<1x128xf32>
    %311 = vector.extract_strided_slice %31 {offsets = [3, 0], sizes = [1, 128], strides = [1, 1]} : vector<16x128xf32> to vector<1x128xf32>
    %c0_132 = arith.constant 0 : index
    %c0_133 = arith.constant 0 : index
    %c0_134 = arith.constant 0 : index
    %312 = vector.load %arg2[%c0_132, %c0_133, %c0_134] : memref<9x16x128xf32, #tpu.memory_space<vmem>>, vector<1x16x128xf32>
    %313 = vector.shape_cast %312 : vector<1x16x128xf32> to vector<16x128xf32>
    %314 = vector.broadcast %309 : vector<1x128xf32> to vector<16x128xf32>
    %315 = arith.mulf %313, %314 : vector<16x128xf32>
    %316 = arith.addf %32, %315 : vector<16x128xf32>
    %c1_135 = arith.constant 1 : index
    %c0_136 = arith.constant 0 : index
    %c0_137 = arith.constant 0 : index
    %317 = vector.load %arg2[%c1_135, %c0_136, %c0_137] : memref<9x16x128xf32, #tpu.memory_space<vmem>>, vector<1x16x128xf32>
    %318 = vector.shape_cast %317 : vector<1x16x128xf32> to vector<16x128xf32>
    %319 = vector.broadcast %310 : vector<1x128xf32> to vector<16x128xf32>
    %320 = arith.mulf %318, %319 : vector<16x128xf32>
    %321 = arith.addf %316, %320 : vector<16x128xf32>
    %c2_138 = arith.constant 2 : index
    %c0_139 = arith.constant 0 : index
    %c0_140 = arith.constant 0 : index
    %322 = vector.load %arg2[%c2_138, %c0_139, %c0_140] : memref<9x16x128xf32, #tpu.memory_space<vmem>>, vector<1x16x128xf32>
    %323 = vector.shape_cast %322 : vector<1x16x128xf32> to vector<16x128xf32>
    %324 = vector.broadcast %311 : vector<1x128xf32> to vector<16x128xf32>
    %325 = arith.mulf %323, %324 : vector<16x128xf32>
    %326 = arith.addf %321, %325 : vector<16x128xf32>
    %327 = vector.extract_strided_slice %26 {offsets = [4, 0], sizes = [1, 128], strides = [1, 1]} : vector<16x128xf32> to vector<1x128xf32>
    %328 = vector.extract_strided_slice %0 {offsets = [4, 0], sizes = [1, 128], strides = [1, 1]} : vector<16x128xf32> to vector<1x128xf32>
    %329 = vector.extract_strided_slice %31 {offsets = [4, 0], sizes = [1, 128], strides = [1, 1]} : vector<16x128xf32> to vector<1x128xf32>
    %c3_141 = arith.constant 3 : index
    %c0_142 = arith.constant 0 : index
    %c0_143 = arith.constant 0 : index
    %330 = vector.load %arg2[%c3_141, %c0_142, %c0_143] : memref<9x16x128xf32, #tpu.memory_space<vmem>>, vector<1x16x128xf32>
    %331 = vector.shape_cast %330 : vector<1x16x128xf32> to vector<16x128xf32>
    %332 = vector.broadcast %327 : vector<1x128xf32> to vector<16x128xf32>
    %333 = arith.mulf %331, %332 : vector<16x128xf32>
    %334 = arith.addf %326, %333 : vector<16x128xf32>
    %c4_144 = arith.constant 4 : index
    %c0_145 = arith.constant 0 : index
    %c0_146 = arith.constant 0 : index
    %335 = vector.load %arg2[%c4_144, %c0_145, %c0_146] : memref<9x16x128xf32, #tpu.memory_space<vmem>>, vector<1x16x128xf32>
    %336 = vector.shape_cast %335 : vector<1x16x128xf32> to vector<16x128xf32>
    %337 = vector.broadcast %328 : vector<1x128xf32> to vector<16x128xf32>
    %338 = arith.mulf %336, %337 : vector<16x128xf32>
    %339 = arith.addf %334, %338 : vector<16x128xf32>
    %c5_147 = arith.constant 5 : index
    %c0_148 = arith.constant 0 : index
    %c0_149 = arith.constant 0 : index
    %340 = vector.load %arg2[%c5_147, %c0_148, %c0_149] : memref<9x16x128xf32, #tpu.memory_space<vmem>>, vector<1x16x128xf32>
    %341 = vector.shape_cast %340 : vector<1x16x128xf32> to vector<16x128xf32>
    %342 = vector.broadcast %329 : vector<1x128xf32> to vector<16x128xf32>
    %343 = arith.mulf %341, %342 : vector<16x128xf32>
    %344 = arith.addf %339, %343 : vector<16x128xf32>
    %345 = vector.extract_strided_slice %26 {offsets = [5, 0], sizes = [1, 128], strides = [1, 1]} : vector<16x128xf32> to vector<1x128xf32>
    %346 = vector.extract_strided_slice %0 {offsets = [5, 0], sizes = [1, 128], strides = [1, 1]} : vector<16x128xf32> to vector<1x128xf32>
    %347 = vector.extract_strided_slice %31 {offsets = [5, 0], sizes = [1, 128], strides = [1, 1]} : vector<16x128xf32> to vector<1x128xf32>
    %c6_150 = arith.constant 6 : index
    %c0_151 = arith.constant 0 : index
    %c0_152 = arith.constant 0 : index
    %348 = vector.load %arg2[%c6_150, %c0_151, %c0_152] : memref<9x16x128xf32, #tpu.memory_space<vmem>>, vector<1x16x128xf32>
    %349 = vector.shape_cast %348 : vector<1x16x128xf32> to vector<16x128xf32>
    %350 = vector.broadcast %345 : vector<1x128xf32> to vector<16x128xf32>
    %351 = arith.mulf %349, %350 : vector<16x128xf32>
    %352 = arith.addf %344, %351 : vector<16x128xf32>
    %c7_153 = arith.constant 7 : index
    %c0_154 = arith.constant 0 : index
    %c0_155 = arith.constant 0 : index
    %353 = vector.load %arg2[%c7_153, %c0_154, %c0_155] : memref<9x16x128xf32, #tpu.memory_space<vmem>>, vector<1x16x128xf32>
    %354 = vector.shape_cast %353 : vector<1x16x128xf32> to vector<16x128xf32>
    %355 = vector.broadcast %346 : vector<1x128xf32> to vector<16x128xf32>
    %356 = arith.mulf %354, %355 : vector<16x128xf32>
    %357 = arith.addf %352, %356 : vector<16x128xf32>
    %c8_156 = arith.constant 8 : index
    %c0_157 = arith.constant 0 : index
    %c0_158 = arith.constant 0 : index
    %358 = vector.load %arg2[%c8_156, %c0_157, %c0_158] : memref<9x16x128xf32, #tpu.memory_space<vmem>>, vector<1x16x128xf32>
    %359 = vector.shape_cast %358 : vector<1x16x128xf32> to vector<16x128xf32>
    %360 = vector.broadcast %347 : vector<1x128xf32> to vector<16x128xf32>
    %361 = arith.mulf %359, %360 : vector<16x128xf32>
    %362 = arith.addf %357, %361 : vector<16x128xf32>
    %cst_159 = arith.constant 0.000000e+00 : f32
    %363 = vector.broadcast %cst_159 : f32 to vector<16x128xf32>
    %364 = arith.maximumf %362, %363 : vector<16x128xf32>
    %c1_i32_160 = arith.constant 1 : i32
    %365 = tpu.dynamic_rotate %364 by %c1_i32_160 dim 1 : vector<16x128xf32>, i32 -> vector<16x128xf32>
    %cst_161 = arith.constant 0.000000e+00 : f32
    %366 = vector.shape_cast %19 : vector<1x128xi1> to vector<1x128xi1>
    %367 = vector.broadcast %366 : vector<1x128xi1> to vector<16x128xi1>
    %368 = vector.broadcast %cst_161 : f32 to vector<16x128xf32>
    %369 = arith.select %367, %365, %368 : vector<16x128xi1>, vector<16x128xf32>
    %c127_i32_162 = arith.constant 127 : i32
    %370 = tpu.dynamic_rotate %364 by %c127_i32_162 dim 1 : vector<16x128xf32>, i32 -> vector<16x128xf32>
    %cst_163 = arith.constant 0.000000e+00 : f32
    %371 = vector.shape_cast %21 : vector<1x128xi1> to vector<1x128xi1>
    %372 = vector.broadcast %371 : vector<1x128xi1> to vector<16x128xi1>
    %373 = vector.broadcast %cst_163 : f32 to vector<16x128xf32>
    %374 = arith.select %372, %370, %373 : vector<16x128xi1>, vector<16x128xf32>
    %375 = tpu.concatenate %369, %364, %374 in 0 : vector<16x128xf32>, vector<16x128xf32>, vector<16x128xf32> -> vector<48x128xf32>
    %376 = arith.truncf %375 : vector<48x128xf32> to vector<48x128xbf16>
    %377 = tpu.concatenate %228, %302, %376 in 0 : vector<48x128xbf16>, vector<48x128xbf16>, vector<48x128xbf16> -> vector<144x128xbf16>
    %cst_164 = arith.constant dense<0.000000e+00> : vector<32x128xf32>
    %378 = tpu.matmul %34, %377, %cst_164 {dimension_numbers = #tpu.dot_dimension_numbers<[1], [0], [0], [1], [0, 0, 1, 1], [], []>} : vector<32x144xbf16>, vector<144x128xbf16>, vector<32x128xf32> -> vector<32x128xf32>
    %379 = arith.addf %378, %33 : vector<32x128xf32>
    %cst_165 = arith.constant 0.000000e+00 : f32
    %380 = vector.broadcast %cst_165 : f32 to vector<32x128xf32>
    %381 = arith.maximumf %379, %380 : vector<32x128xf32>
    %382 = arith.addf %308, %381 : vector<32x128xf32>
    %383 = vector.extract_strided_slice %26 {offsets = [4, 0], sizes = [1, 128], strides = [1, 1]} : vector<16x128xf32> to vector<1x128xf32>
    %384 = vector.extract_strided_slice %0 {offsets = [4, 0], sizes = [1, 128], strides = [1, 1]} : vector<16x128xf32> to vector<1x128xf32>
    %385 = vector.extract_strided_slice %31 {offsets = [4, 0], sizes = [1, 128], strides = [1, 1]} : vector<16x128xf32> to vector<1x128xf32>
    %c0_166 = arith.constant 0 : index
    %c0_167 = arith.constant 0 : index
    %c0_168 = arith.constant 0 : index
    %386 = vector.load %arg2[%c0_166, %c0_167, %c0_168] : memref<9x16x128xf32, #tpu.memory_space<vmem>>, vector<1x16x128xf32>
    %387 = vector.shape_cast %386 : vector<1x16x128xf32> to vector<16x128xf32>
    %388 = vector.broadcast %383 : vector<1x128xf32> to vector<16x128xf32>
    %389 = arith.mulf %387, %388 : vector<16x128xf32>
    %390 = arith.addf %32, %389 : vector<16x128xf32>
    %c1_169 = arith.constant 1 : index
    %c0_170 = arith.constant 0 : index
    %c0_171 = arith.constant 0 : index
    %391 = vector.load %arg2[%c1_169, %c0_170, %c0_171] : memref<9x16x128xf32, #tpu.memory_space<vmem>>, vector<1x16x128xf32>
    %392 = vector.shape_cast %391 : vector<1x16x128xf32> to vector<16x128xf32>
    %393 = vector.broadcast %384 : vector<1x128xf32> to vector<16x128xf32>
    %394 = arith.mulf %392, %393 : vector<16x128xf32>
    %395 = arith.addf %390, %394 : vector<16x128xf32>
    %c2_172 = arith.constant 2 : index
    %c0_173 = arith.constant 0 : index
    %c0_174 = arith.constant 0 : index
    %396 = vector.load %arg2[%c2_172, %c0_173, %c0_174] : memref<9x16x128xf32, #tpu.memory_space<vmem>>, vector<1x16x128xf32>
    %397 = vector.shape_cast %396 : vector<1x16x128xf32> to vector<16x128xf32>
    %398 = vector.broadcast %385 : vector<1x128xf32> to vector<16x128xf32>
    %399 = arith.mulf %397, %398 : vector<16x128xf32>
    %400 = arith.addf %395, %399 : vector<16x128xf32>
    %401 = vector.extract_strided_slice %26 {offsets = [5, 0], sizes = [1, 128], strides = [1, 1]} : vector<16x128xf32> to vector<1x128xf32>
    %402 = vector.extract_strided_slice %0 {offsets = [5, 0], sizes = [1, 128], strides = [1, 1]} : vector<16x128xf32> to vector<1x128xf32>
    %403 = vector.extract_strided_slice %31 {offsets = [5, 0], sizes = [1, 128], strides = [1, 1]} : vector<16x128xf32> to vector<1x128xf32>
    %c3_175 = arith.constant 3 : index
    %c0_176 = arith.constant 0 : index
    %c0_177 = arith.constant 0 : index
    %404 = vector.load %arg2[%c3_175, %c0_176, %c0_177] : memref<9x16x128xf32, #tpu.memory_space<vmem>>, vector<1x16x128xf32>
    %405 = vector.shape_cast %404 : vector<1x16x128xf32> to vector<16x128xf32>
    %406 = vector.broadcast %401 : vector<1x128xf32> to vector<16x128xf32>
    %407 = arith.mulf %405, %406 : vector<16x128xf32>
    %408 = arith.addf %400, %407 : vector<16x128xf32>
    %c4_178 = arith.constant 4 : index
    %c0_179 = arith.constant 0 : index
    %c0_180 = arith.constant 0 : index
    %409 = vector.load %arg2[%c4_178, %c0_179, %c0_180] : memref<9x16x128xf32, #tpu.memory_space<vmem>>, vector<1x16x128xf32>
    %410 = vector.shape_cast %409 : vector<1x16x128xf32> to vector<16x128xf32>
    %411 = vector.broadcast %402 : vector<1x128xf32> to vector<16x128xf32>
    %412 = arith.mulf %410, %411 : vector<16x128xf32>
    %413 = arith.addf %408, %412 : vector<16x128xf32>
    %c5_181 = arith.constant 5 : index
    %c0_182 = arith.constant 0 : index
    %c0_183 = arith.constant 0 : index
    %414 = vector.load %arg2[%c5_181, %c0_182, %c0_183] : memref<9x16x128xf32, #tpu.memory_space<vmem>>, vector<1x16x128xf32>
    %415 = vector.shape_cast %414 : vector<1x16x128xf32> to vector<16x128xf32>
    %416 = vector.broadcast %403 : vector<1x128xf32> to vector<16x128xf32>
    %417 = arith.mulf %415, %416 : vector<16x128xf32>
    %418 = arith.addf %413, %417 : vector<16x128xf32>
    %419 = vector.extract_strided_slice %26 {offsets = [6, 0], sizes = [1, 128], strides = [1, 1]} : vector<16x128xf32> to vector<1x128xf32>
    %420 = vector.extract_strided_slice %0 {offsets = [6, 0], sizes = [1, 128], strides = [1, 1]} : vector<16x128xf32> to vector<1x128xf32>
    %421 = vector.extract_strided_slice %31 {offsets = [6, 0], sizes = [1, 128], strides = [1, 1]} : vector<16x128xf32> to vector<1x128xf32>
    %c6_184 = arith.constant 6 : index
    %c0_185 = arith.constant 0 : index
    %c0_186 = arith.constant 0 : index
    %422 = vector.load %arg2[%c6_184, %c0_185, %c0_186] : memref<9x16x128xf32, #tpu.memory_space<vmem>>, vector<1x16x128xf32>
    %423 = vector.shape_cast %422 : vector<1x16x128xf32> to vector<16x128xf32>
    %424 = vector.broadcast %419 : vector<1x128xf32> to vector<16x128xf32>
    %425 = arith.mulf %423, %424 : vector<16x128xf32>
    %426 = arith.addf %418, %425 : vector<16x128xf32>
    %c7_187 = arith.constant 7 : index
    %c0_188 = arith.constant 0 : index
    %c0_189 = arith.constant 0 : index
    %427 = vector.load %arg2[%c7_187, %c0_188, %c0_189] : memref<9x16x128xf32, #tpu.memory_space<vmem>>, vector<1x16x128xf32>
    %428 = vector.shape_cast %427 : vector<1x16x128xf32> to vector<16x128xf32>
    %429 = vector.broadcast %420 : vector<1x128xf32> to vector<16x128xf32>
    %430 = arith.mulf %428, %429 : vector<16x128xf32>
    %431 = arith.addf %426, %430 : vector<16x128xf32>
    %c8_190 = arith.constant 8 : index
    %c0_191 = arith.constant 0 : index
    %c0_192 = arith.constant 0 : index
    %432 = vector.load %arg2[%c8_190, %c0_191, %c0_192] : memref<9x16x128xf32, #tpu.memory_space<vmem>>, vector<1x16x128xf32>
    %433 = vector.shape_cast %432 : vector<1x16x128xf32> to vector<16x128xf32>
    %434 = vector.broadcast %421 : vector<1x128xf32> to vector<16x128xf32>
    %435 = arith.mulf %433, %434 : vector<16x128xf32>
    %436 = arith.addf %431, %435 : vector<16x128xf32>
    %cst_193 = arith.constant 0.000000e+00 : f32
    %437 = vector.broadcast %cst_193 : f32 to vector<16x128xf32>
    %438 = arith.maximumf %436, %437 : vector<16x128xf32>
    %c1_i32_194 = arith.constant 1 : i32
    %439 = tpu.dynamic_rotate %438 by %c1_i32_194 dim 1 : vector<16x128xf32>, i32 -> vector<16x128xf32>
    %cst_195 = arith.constant 0.000000e+00 : f32
    %440 = vector.shape_cast %19 : vector<1x128xi1> to vector<1x128xi1>
    %441 = vector.broadcast %440 : vector<1x128xi1> to vector<16x128xi1>
    %442 = vector.broadcast %cst_195 : f32 to vector<16x128xf32>
    %443 = arith.select %441, %439, %442 : vector<16x128xi1>, vector<16x128xf32>
    %c127_i32_196 = arith.constant 127 : i32
    %444 = tpu.dynamic_rotate %438 by %c127_i32_196 dim 1 : vector<16x128xf32>, i32 -> vector<16x128xf32>
    %cst_197 = arith.constant 0.000000e+00 : f32
    %445 = vector.shape_cast %21 : vector<1x128xi1> to vector<1x128xi1>
    %446 = vector.broadcast %445 : vector<1x128xi1> to vector<16x128xi1>
    %447 = vector.broadcast %cst_197 : f32 to vector<16x128xf32>
    %448 = arith.select %446, %444, %447 : vector<16x128xi1>, vector<16x128xf32>
    %449 = tpu.concatenate %443, %438, %448 in 0 : vector<16x128xf32>, vector<16x128xf32>, vector<16x128xf32> -> vector<48x128xf32>
    %450 = arith.truncf %449 : vector<48x128xf32> to vector<48x128xbf16>
    %451 = tpu.concatenate %302, %376, %450 in 0 : vector<48x128xbf16>, vector<48x128xbf16>, vector<48x128xbf16> -> vector<144x128xbf16>
    %cst_198 = arith.constant dense<0.000000e+00> : vector<32x128xf32>
    %452 = tpu.matmul %34, %451, %cst_198 {dimension_numbers = #tpu.dot_dimension_numbers<[1], [0], [0], [1], [0, 0, 1, 1], [], []>} : vector<32x144xbf16>, vector<144x128xbf16>, vector<32x128xf32> -> vector<32x128xf32>
    %453 = arith.addf %452, %33 : vector<32x128xf32>
    %cst_199 = arith.constant 0.000000e+00 : f32
    %454 = vector.broadcast %cst_199 : f32 to vector<32x128xf32>
    %455 = arith.maximumf %453, %454 : vector<32x128xf32>
    %456 = arith.addf %382, %455 : vector<32x128xf32>
    %457 = vector.extract_strided_slice %26 {offsets = [5, 0], sizes = [1, 128], strides = [1, 1]} : vector<16x128xf32> to vector<1x128xf32>
    %458 = vector.extract_strided_slice %0 {offsets = [5, 0], sizes = [1, 128], strides = [1, 1]} : vector<16x128xf32> to vector<1x128xf32>
    %459 = vector.extract_strided_slice %31 {offsets = [5, 0], sizes = [1, 128], strides = [1, 1]} : vector<16x128xf32> to vector<1x128xf32>
    %c0_200 = arith.constant 0 : index
    %c0_201 = arith.constant 0 : index
    %c0_202 = arith.constant 0 : index
    %460 = vector.load %arg2[%c0_200, %c0_201, %c0_202] : memref<9x16x128xf32, #tpu.memory_space<vmem>>, vector<1x16x128xf32>
    %461 = vector.shape_cast %460 : vector<1x16x128xf32> to vector<16x128xf32>
    %462 = vector.broadcast %457 : vector<1x128xf32> to vector<16x128xf32>
    %463 = arith.mulf %461, %462 : vector<16x128xf32>
    %464 = arith.addf %32, %463 : vector<16x128xf32>
    %c1_203 = arith.constant 1 : index
    %c0_204 = arith.constant 0 : index
    %c0_205 = arith.constant 0 : index
    %465 = vector.load %arg2[%c1_203, %c0_204, %c0_205] : memref<9x16x128xf32, #tpu.memory_space<vmem>>, vector<1x16x128xf32>
    %466 = vector.shape_cast %465 : vector<1x16x128xf32> to vector<16x128xf32>
    %467 = vector.broadcast %458 : vector<1x128xf32> to vector<16x128xf32>
    %468 = arith.mulf %466, %467 : vector<16x128xf32>
    %469 = arith.addf %464, %468 : vector<16x128xf32>
    %c2_206 = arith.constant 2 : index
    %c0_207 = arith.constant 0 : index
    %c0_208 = arith.constant 0 : index
    %470 = vector.load %arg2[%c2_206, %c0_207, %c0_208] : memref<9x16x128xf32, #tpu.memory_space<vmem>>, vector<1x16x128xf32>
    %471 = vector.shape_cast %470 : vector<1x16x128xf32> to vector<16x128xf32>
    %472 = vector.broadcast %459 : vector<1x128xf32> to vector<16x128xf32>
    %473 = arith.mulf %471, %472 : vector<16x128xf32>
    %474 = arith.addf %469, %473 : vector<16x128xf32>
    %475 = vector.extract_strided_slice %26 {offsets = [6, 0], sizes = [1, 128], strides = [1, 1]} : vector<16x128xf32> to vector<1x128xf32>
    %476 = vector.extract_strided_slice %0 {offsets = [6, 0], sizes = [1, 128], strides = [1, 1]} : vector<16x128xf32> to vector<1x128xf32>
    %477 = vector.extract_strided_slice %31 {offsets = [6, 0], sizes = [1, 128], strides = [1, 1]} : vector<16x128xf32> to vector<1x128xf32>
    %c3_209 = arith.constant 3 : index
    %c0_210 = arith.constant 0 : index
    %c0_211 = arith.constant 0 : index
    %478 = vector.load %arg2[%c3_209, %c0_210, %c0_211] : memref<9x16x128xf32, #tpu.memory_space<vmem>>, vector<1x16x128xf32>
    %479 = vector.shape_cast %478 : vector<1x16x128xf32> to vector<16x128xf32>
    %480 = vector.broadcast %475 : vector<1x128xf32> to vector<16x128xf32>
    %481 = arith.mulf %479, %480 : vector<16x128xf32>
    %482 = arith.addf %474, %481 : vector<16x128xf32>
    %c4_212 = arith.constant 4 : index
    %c0_213 = arith.constant 0 : index
    %c0_214 = arith.constant 0 : index
    %483 = vector.load %arg2[%c4_212, %c0_213, %c0_214] : memref<9x16x128xf32, #tpu.memory_space<vmem>>, vector<1x16x128xf32>
    %484 = vector.shape_cast %483 : vector<1x16x128xf32> to vector<16x128xf32>
    %485 = vector.broadcast %476 : vector<1x128xf32> to vector<16x128xf32>
    %486 = arith.mulf %484, %485 : vector<16x128xf32>
    %487 = arith.addf %482, %486 : vector<16x128xf32>
    %c5_215 = arith.constant 5 : index
    %c0_216 = arith.constant 0 : index
    %c0_217 = arith.constant 0 : index
    %488 = vector.load %arg2[%c5_215, %c0_216, %c0_217] : memref<9x16x128xf32, #tpu.memory_space<vmem>>, vector<1x16x128xf32>
    %489 = vector.shape_cast %488 : vector<1x16x128xf32> to vector<16x128xf32>
    %490 = vector.broadcast %477 : vector<1x128xf32> to vector<16x128xf32>
    %491 = arith.mulf %489, %490 : vector<16x128xf32>
    %492 = arith.addf %487, %491 : vector<16x128xf32>
    %493 = vector.extract_strided_slice %26 {offsets = [7, 0], sizes = [1, 128], strides = [1, 1]} : vector<16x128xf32> to vector<1x128xf32>
    %494 = vector.extract_strided_slice %0 {offsets = [7, 0], sizes = [1, 128], strides = [1, 1]} : vector<16x128xf32> to vector<1x128xf32>
    %495 = vector.extract_strided_slice %31 {offsets = [7, 0], sizes = [1, 128], strides = [1, 1]} : vector<16x128xf32> to vector<1x128xf32>
    %c6_218 = arith.constant 6 : index
    %c0_219 = arith.constant 0 : index
    %c0_220 = arith.constant 0 : index
    %496 = vector.load %arg2[%c6_218, %c0_219, %c0_220] : memref<9x16x128xf32, #tpu.memory_space<vmem>>, vector<1x16x128xf32>
    %497 = vector.shape_cast %496 : vector<1x16x128xf32> to vector<16x128xf32>
    %498 = vector.broadcast %493 : vector<1x128xf32> to vector<16x128xf32>
    %499 = arith.mulf %497, %498 : vector<16x128xf32>
    %500 = arith.addf %492, %499 : vector<16x128xf32>
    %c7_221 = arith.constant 7 : index
    %c0_222 = arith.constant 0 : index
    %c0_223 = arith.constant 0 : index
    %501 = vector.load %arg2[%c7_221, %c0_222, %c0_223] : memref<9x16x128xf32, #tpu.memory_space<vmem>>, vector<1x16x128xf32>
    %502 = vector.shape_cast %501 : vector<1x16x128xf32> to vector<16x128xf32>
    %503 = vector.broadcast %494 : vector<1x128xf32> to vector<16x128xf32>
    %504 = arith.mulf %502, %503 : vector<16x128xf32>
    %505 = arith.addf %500, %504 : vector<16x128xf32>
    %c8_224 = arith.constant 8 : index
    %c0_225 = arith.constant 0 : index
    %c0_226 = arith.constant 0 : index
    %506 = vector.load %arg2[%c8_224, %c0_225, %c0_226] : memref<9x16x128xf32, #tpu.memory_space<vmem>>, vector<1x16x128xf32>
    %507 = vector.shape_cast %506 : vector<1x16x128xf32> to vector<16x128xf32>
    %508 = vector.broadcast %495 : vector<1x128xf32> to vector<16x128xf32>
    %509 = arith.mulf %507, %508 : vector<16x128xf32>
    %510 = arith.addf %505, %509 : vector<16x128xf32>
    %cst_227 = arith.constant 0.000000e+00 : f32
    %511 = vector.broadcast %cst_227 : f32 to vector<16x128xf32>
    %512 = arith.maximumf %510, %511 : vector<16x128xf32>
    %c1_i32_228 = arith.constant 1 : i32
    %513 = tpu.dynamic_rotate %512 by %c1_i32_228 dim 1 : vector<16x128xf32>, i32 -> vector<16x128xf32>
    %cst_229 = arith.constant 0.000000e+00 : f32
    %514 = vector.shape_cast %19 : vector<1x128xi1> to vector<1x128xi1>
    %515 = vector.broadcast %514 : vector<1x128xi1> to vector<16x128xi1>
    %516 = vector.broadcast %cst_229 : f32 to vector<16x128xf32>
    %517 = arith.select %515, %513, %516 : vector<16x128xi1>, vector<16x128xf32>
    %c127_i32_230 = arith.constant 127 : i32
    %518 = tpu.dynamic_rotate %512 by %c127_i32_230 dim 1 : vector<16x128xf32>, i32 -> vector<16x128xf32>
    %cst_231 = arith.constant 0.000000e+00 : f32
    %519 = vector.shape_cast %21 : vector<1x128xi1> to vector<1x128xi1>
    %520 = vector.broadcast %519 : vector<1x128xi1> to vector<16x128xi1>
    %521 = vector.broadcast %cst_231 : f32 to vector<16x128xf32>
    %522 = arith.select %520, %518, %521 : vector<16x128xi1>, vector<16x128xf32>
    %523 = tpu.concatenate %517, %512, %522 in 0 : vector<16x128xf32>, vector<16x128xf32>, vector<16x128xf32> -> vector<48x128xf32>
    %524 = arith.truncf %523 : vector<48x128xf32> to vector<48x128xbf16>
    %525 = tpu.concatenate %376, %450, %524 in 0 : vector<48x128xbf16>, vector<48x128xbf16>, vector<48x128xbf16> -> vector<144x128xbf16>
    %cst_232 = arith.constant dense<0.000000e+00> : vector<32x128xf32>
    %526 = tpu.matmul %34, %525, %cst_232 {dimension_numbers = #tpu.dot_dimension_numbers<[1], [0], [0], [1], [0, 0, 1, 1], [], []>} : vector<32x144xbf16>, vector<144x128xbf16>, vector<32x128xf32> -> vector<32x128xf32>
    %527 = arith.addf %526, %33 : vector<32x128xf32>
    %cst_233 = arith.constant 0.000000e+00 : f32
    %528 = vector.broadcast %cst_233 : f32 to vector<32x128xf32>
    %529 = arith.maximumf %527, %528 : vector<32x128xf32>
    %530 = arith.addf %456, %529 : vector<32x128xf32>
    %531 = vector.extract_strided_slice %26 {offsets = [6, 0], sizes = [1, 128], strides = [1, 1]} : vector<16x128xf32> to vector<1x128xf32>
    %532 = vector.extract_strided_slice %0 {offsets = [6, 0], sizes = [1, 128], strides = [1, 1]} : vector<16x128xf32> to vector<1x128xf32>
    %533 = vector.extract_strided_slice %31 {offsets = [6, 0], sizes = [1, 128], strides = [1, 1]} : vector<16x128xf32> to vector<1x128xf32>
    %c0_234 = arith.constant 0 : index
    %c0_235 = arith.constant 0 : index
    %c0_236 = arith.constant 0 : index
    %534 = vector.load %arg2[%c0_234, %c0_235, %c0_236] : memref<9x16x128xf32, #tpu.memory_space<vmem>>, vector<1x16x128xf32>
    %535 = vector.shape_cast %534 : vector<1x16x128xf32> to vector<16x128xf32>
    %536 = vector.broadcast %531 : vector<1x128xf32> to vector<16x128xf32>
    %537 = arith.mulf %535, %536 : vector<16x128xf32>
    %538 = arith.addf %32, %537 : vector<16x128xf32>
    %c1_237 = arith.constant 1 : index
    %c0_238 = arith.constant 0 : index
    %c0_239 = arith.constant 0 : index
    %539 = vector.load %arg2[%c1_237, %c0_238, %c0_239] : memref<9x16x128xf32, #tpu.memory_space<vmem>>, vector<1x16x128xf32>
    %540 = vector.shape_cast %539 : vector<1x16x128xf32> to vector<16x128xf32>
    %541 = vector.broadcast %532 : vector<1x128xf32> to vector<16x128xf32>
    %542 = arith.mulf %540, %541 : vector<16x128xf32>
    %543 = arith.addf %538, %542 : vector<16x128xf32>
    %c2_240 = arith.constant 2 : index
    %c0_241 = arith.constant 0 : index
    %c0_242 = arith.constant 0 : index
    %544 = vector.load %arg2[%c2_240, %c0_241, %c0_242] : memref<9x16x128xf32, #tpu.memory_space<vmem>>, vector<1x16x128xf32>
    %545 = vector.shape_cast %544 : vector<1x16x128xf32> to vector<16x128xf32>
    %546 = vector.broadcast %533 : vector<1x128xf32> to vector<16x128xf32>
    %547 = arith.mulf %545, %546 : vector<16x128xf32>
    %548 = arith.addf %543, %547 : vector<16x128xf32>
    %549 = vector.extract_strided_slice %26 {offsets = [7, 0], sizes = [1, 128], strides = [1, 1]} : vector<16x128xf32> to vector<1x128xf32>
    %550 = vector.extract_strided_slice %0 {offsets = [7, 0], sizes = [1, 128], strides = [1, 1]} : vector<16x128xf32> to vector<1x128xf32>
    %551 = vector.extract_strided_slice %31 {offsets = [7, 0], sizes = [1, 128], strides = [1, 1]} : vector<16x128xf32> to vector<1x128xf32>
    %c3_243 = arith.constant 3 : index
    %c0_244 = arith.constant 0 : index
    %c0_245 = arith.constant 0 : index
    %552 = vector.load %arg2[%c3_243, %c0_244, %c0_245] : memref<9x16x128xf32, #tpu.memory_space<vmem>>, vector<1x16x128xf32>
    %553 = vector.shape_cast %552 : vector<1x16x128xf32> to vector<16x128xf32>
    %554 = vector.broadcast %549 : vector<1x128xf32> to vector<16x128xf32>
    %555 = arith.mulf %553, %554 : vector<16x128xf32>
    %556 = arith.addf %548, %555 : vector<16x128xf32>
    %c4_246 = arith.constant 4 : index
    %c0_247 = arith.constant 0 : index
    %c0_248 = arith.constant 0 : index
    %557 = vector.load %arg2[%c4_246, %c0_247, %c0_248] : memref<9x16x128xf32, #tpu.memory_space<vmem>>, vector<1x16x128xf32>
    %558 = vector.shape_cast %557 : vector<1x16x128xf32> to vector<16x128xf32>
    %559 = vector.broadcast %550 : vector<1x128xf32> to vector<16x128xf32>
    %560 = arith.mulf %558, %559 : vector<16x128xf32>
    %561 = arith.addf %556, %560 : vector<16x128xf32>
    %c5_249 = arith.constant 5 : index
    %c0_250 = arith.constant 0 : index
    %c0_251 = arith.constant 0 : index
    %562 = vector.load %arg2[%c5_249, %c0_250, %c0_251] : memref<9x16x128xf32, #tpu.memory_space<vmem>>, vector<1x16x128xf32>
    %563 = vector.shape_cast %562 : vector<1x16x128xf32> to vector<16x128xf32>
    %564 = vector.broadcast %551 : vector<1x128xf32> to vector<16x128xf32>
    %565 = arith.mulf %563, %564 : vector<16x128xf32>
    %566 = arith.addf %561, %565 : vector<16x128xf32>
    %567 = vector.extract_strided_slice %26 {offsets = [8, 0], sizes = [1, 128], strides = [1, 1]} : vector<16x128xf32> to vector<1x128xf32>
    %568 = vector.extract_strided_slice %0 {offsets = [8, 0], sizes = [1, 128], strides = [1, 1]} : vector<16x128xf32> to vector<1x128xf32>
    %569 = vector.extract_strided_slice %31 {offsets = [8, 0], sizes = [1, 128], strides = [1, 1]} : vector<16x128xf32> to vector<1x128xf32>
    %c6_252 = arith.constant 6 : index
    %c0_253 = arith.constant 0 : index
    %c0_254 = arith.constant 0 : index
    %570 = vector.load %arg2[%c6_252, %c0_253, %c0_254] : memref<9x16x128xf32, #tpu.memory_space<vmem>>, vector<1x16x128xf32>
    %571 = vector.shape_cast %570 : vector<1x16x128xf32> to vector<16x128xf32>
    %572 = vector.broadcast %567 : vector<1x128xf32> to vector<16x128xf32>
    %573 = arith.mulf %571, %572 : vector<16x128xf32>
    %574 = arith.addf %566, %573 : vector<16x128xf32>
    %c7_255 = arith.constant 7 : index
    %c0_256 = arith.constant 0 : index
    %c0_257 = arith.constant 0 : index
    %575 = vector.load %arg2[%c7_255, %c0_256, %c0_257] : memref<9x16x128xf32, #tpu.memory_space<vmem>>, vector<1x16x128xf32>
    %576 = vector.shape_cast %575 : vector<1x16x128xf32> to vector<16x128xf32>
    %577 = vector.broadcast %568 : vector<1x128xf32> to vector<16x128xf32>
    %578 = arith.mulf %576, %577 : vector<16x128xf32>
    %579 = arith.addf %574, %578 : vector<16x128xf32>
    %c8_258 = arith.constant 8 : index
    %c0_259 = arith.constant 0 : index
    %c0_260 = arith.constant 0 : index
    %580 = vector.load %arg2[%c8_258, %c0_259, %c0_260] : memref<9x16x128xf32, #tpu.memory_space<vmem>>, vector<1x16x128xf32>
    %581 = vector.shape_cast %580 : vector<1x16x128xf32> to vector<16x128xf32>
    %582 = vector.broadcast %569 : vector<1x128xf32> to vector<16x128xf32>
    %583 = arith.mulf %581, %582 : vector<16x128xf32>
    %584 = arith.addf %579, %583 : vector<16x128xf32>
    %cst_261 = arith.constant 0.000000e+00 : f32
    %585 = vector.broadcast %cst_261 : f32 to vector<16x128xf32>
    %586 = arith.maximumf %584, %585 : vector<16x128xf32>
    %c1_i32_262 = arith.constant 1 : i32
    %587 = tpu.dynamic_rotate %586 by %c1_i32_262 dim 1 : vector<16x128xf32>, i32 -> vector<16x128xf32>
    %cst_263 = arith.constant 0.000000e+00 : f32
    %588 = vector.shape_cast %19 : vector<1x128xi1> to vector<1x128xi1>
    %589 = vector.broadcast %588 : vector<1x128xi1> to vector<16x128xi1>
    %590 = vector.broadcast %cst_263 : f32 to vector<16x128xf32>
    %591 = arith.select %589, %587, %590 : vector<16x128xi1>, vector<16x128xf32>
    %c127_i32_264 = arith.constant 127 : i32
    %592 = tpu.dynamic_rotate %586 by %c127_i32_264 dim 1 : vector<16x128xf32>, i32 -> vector<16x128xf32>
    %cst_265 = arith.constant 0.000000e+00 : f32
    %593 = vector.shape_cast %21 : vector<1x128xi1> to vector<1x128xi1>
    %594 = vector.broadcast %593 : vector<1x128xi1> to vector<16x128xi1>
    %595 = vector.broadcast %cst_265 : f32 to vector<16x128xf32>
    %596 = arith.select %594, %592, %595 : vector<16x128xi1>, vector<16x128xf32>
    %597 = tpu.concatenate %591, %586, %596 in 0 : vector<16x128xf32>, vector<16x128xf32>, vector<16x128xf32> -> vector<48x128xf32>
    %598 = arith.truncf %597 : vector<48x128xf32> to vector<48x128xbf16>
    %599 = tpu.concatenate %450, %524, %598 in 0 : vector<48x128xbf16>, vector<48x128xbf16>, vector<48x128xbf16> -> vector<144x128xbf16>
    %cst_266 = arith.constant dense<0.000000e+00> : vector<32x128xf32>
    %600 = tpu.matmul %34, %599, %cst_266 {dimension_numbers = #tpu.dot_dimension_numbers<[1], [0], [0], [1], [0, 0, 1, 1], [], []>} : vector<32x144xbf16>, vector<144x128xbf16>, vector<32x128xf32> -> vector<32x128xf32>
    %601 = arith.addf %600, %33 : vector<32x128xf32>
    %cst_267 = arith.constant 0.000000e+00 : f32
    %602 = vector.broadcast %cst_267 : f32 to vector<32x128xf32>
    %603 = arith.maximumf %601, %602 : vector<32x128xf32>
    %604 = arith.addf %530, %603 : vector<32x128xf32>
    %605 = vector.extract_strided_slice %26 {offsets = [7, 0], sizes = [1, 128], strides = [1, 1]} : vector<16x128xf32> to vector<1x128xf32>
    %606 = vector.extract_strided_slice %0 {offsets = [7, 0], sizes = [1, 128], strides = [1, 1]} : vector<16x128xf32> to vector<1x128xf32>
    %607 = vector.extract_strided_slice %31 {offsets = [7, 0], sizes = [1, 128], strides = [1, 1]} : vector<16x128xf32> to vector<1x128xf32>
    %c0_268 = arith.constant 0 : index
    %c0_269 = arith.constant 0 : index
    %c0_270 = arith.constant 0 : index
    %608 = vector.load %arg2[%c0_268, %c0_269, %c0_270] : memref<9x16x128xf32, #tpu.memory_space<vmem>>, vector<1x16x128xf32>
    %609 = vector.shape_cast %608 : vector<1x16x128xf32> to vector<16x128xf32>
    %610 = vector.broadcast %605 : vector<1x128xf32> to vector<16x128xf32>
    %611 = arith.mulf %609, %610 : vector<16x128xf32>
    %612 = arith.addf %32, %611 : vector<16x128xf32>
    %c1_271 = arith.constant 1 : index
    %c0_272 = arith.constant 0 : index
    %c0_273 = arith.constant 0 : index
    %613 = vector.load %arg2[%c1_271, %c0_272, %c0_273] : memref<9x16x128xf32, #tpu.memory_space<vmem>>, vector<1x16x128xf32>
    %614 = vector.shape_cast %613 : vector<1x16x128xf32> to vector<16x128xf32>
    %615 = vector.broadcast %606 : vector<1x128xf32> to vector<16x128xf32>
    %616 = arith.mulf %614, %615 : vector<16x128xf32>
    %617 = arith.addf %612, %616 : vector<16x128xf32>
    %c2_274 = arith.constant 2 : index
    %c0_275 = arith.constant 0 : index
    %c0_276 = arith.constant 0 : index
    %618 = vector.load %arg2[%c2_274, %c0_275, %c0_276] : memref<9x16x128xf32, #tpu.memory_space<vmem>>, vector<1x16x128xf32>
    %619 = vector.shape_cast %618 : vector<1x16x128xf32> to vector<16x128xf32>
    %620 = vector.broadcast %607 : vector<1x128xf32> to vector<16x128xf32>
    %621 = arith.mulf %619, %620 : vector<16x128xf32>
    %622 = arith.addf %617, %621 : vector<16x128xf32>
    %623 = vector.extract_strided_slice %26 {offsets = [8, 0], sizes = [1, 128], strides = [1, 1]} : vector<16x128xf32> to vector<1x128xf32>
    %624 = vector.extract_strided_slice %0 {offsets = [8, 0], sizes = [1, 128], strides = [1, 1]} : vector<16x128xf32> to vector<1x128xf32>
    %625 = vector.extract_strided_slice %31 {offsets = [8, 0], sizes = [1, 128], strides = [1, 1]} : vector<16x128xf32> to vector<1x128xf32>
    %c3_277 = arith.constant 3 : index
    %c0_278 = arith.constant 0 : index
    %c0_279 = arith.constant 0 : index
    %626 = vector.load %arg2[%c3_277, %c0_278, %c0_279] : memref<9x16x128xf32, #tpu.memory_space<vmem>>, vector<1x16x128xf32>
    %627 = vector.shape_cast %626 : vector<1x16x128xf32> to vector<16x128xf32>
    %628 = vector.broadcast %623 : vector<1x128xf32> to vector<16x128xf32>
    %629 = arith.mulf %627, %628 : vector<16x128xf32>
    %630 = arith.addf %622, %629 : vector<16x128xf32>
    %c4_280 = arith.constant 4 : index
    %c0_281 = arith.constant 0 : index
    %c0_282 = arith.constant 0 : index
    %631 = vector.load %arg2[%c4_280, %c0_281, %c0_282] : memref<9x16x128xf32, #tpu.memory_space<vmem>>, vector<1x16x128xf32>
    %632 = vector.shape_cast %631 : vector<1x16x128xf32> to vector<16x128xf32>
    %633 = vector.broadcast %624 : vector<1x128xf32> to vector<16x128xf32>
    %634 = arith.mulf %632, %633 : vector<16x128xf32>
    %635 = arith.addf %630, %634 : vector<16x128xf32>
    %c5_283 = arith.constant 5 : index
    %c0_284 = arith.constant 0 : index
    %c0_285 = arith.constant 0 : index
    %636 = vector.load %arg2[%c5_283, %c0_284, %c0_285] : memref<9x16x128xf32, #tpu.memory_space<vmem>>, vector<1x16x128xf32>
    %637 = vector.shape_cast %636 : vector<1x16x128xf32> to vector<16x128xf32>
    %638 = vector.broadcast %625 : vector<1x128xf32> to vector<16x128xf32>
    %639 = arith.mulf %637, %638 : vector<16x128xf32>
    %640 = arith.addf %635, %639 : vector<16x128xf32>
    %641 = vector.extract_strided_slice %26 {offsets = [9, 0], sizes = [1, 128], strides = [1, 1]} : vector<16x128xf32> to vector<1x128xf32>
    %642 = vector.extract_strided_slice %0 {offsets = [9, 0], sizes = [1, 128], strides = [1, 1]} : vector<16x128xf32> to vector<1x128xf32>
    %643 = vector.extract_strided_slice %31 {offsets = [9, 0], sizes = [1, 128], strides = [1, 1]} : vector<16x128xf32> to vector<1x128xf32>
    %c6_286 = arith.constant 6 : index
    %c0_287 = arith.constant 0 : index
    %c0_288 = arith.constant 0 : index
    %644 = vector.load %arg2[%c6_286, %c0_287, %c0_288] : memref<9x16x128xf32, #tpu.memory_space<vmem>>, vector<1x16x128xf32>
    %645 = vector.shape_cast %644 : vector<1x16x128xf32> to vector<16x128xf32>
    %646 = vector.broadcast %641 : vector<1x128xf32> to vector<16x128xf32>
    %647 = arith.mulf %645, %646 : vector<16x128xf32>
    %648 = arith.addf %640, %647 : vector<16x128xf32>
    %c7_289 = arith.constant 7 : index
    %c0_290 = arith.constant 0 : index
    %c0_291 = arith.constant 0 : index
    %649 = vector.load %arg2[%c7_289, %c0_290, %c0_291] : memref<9x16x128xf32, #tpu.memory_space<vmem>>, vector<1x16x128xf32>
    %650 = vector.shape_cast %649 : vector<1x16x128xf32> to vector<16x128xf32>
    %651 = vector.broadcast %642 : vector<1x128xf32> to vector<16x128xf32>
    %652 = arith.mulf %650, %651 : vector<16x128xf32>
    %653 = arith.addf %648, %652 : vector<16x128xf32>
    %c8_292 = arith.constant 8 : index
    %c0_293 = arith.constant 0 : index
    %c0_294 = arith.constant 0 : index
    %654 = vector.load %arg2[%c8_292, %c0_293, %c0_294] : memref<9x16x128xf32, #tpu.memory_space<vmem>>, vector<1x16x128xf32>
    %655 = vector.shape_cast %654 : vector<1x16x128xf32> to vector<16x128xf32>
    %656 = vector.broadcast %643 : vector<1x128xf32> to vector<16x128xf32>
    %657 = arith.mulf %655, %656 : vector<16x128xf32>
    %658 = arith.addf %653, %657 : vector<16x128xf32>
    %cst_295 = arith.constant 0.000000e+00 : f32
    %659 = vector.broadcast %cst_295 : f32 to vector<16x128xf32>
    %660 = arith.maximumf %658, %659 : vector<16x128xf32>
    %c1_i32_296 = arith.constant 1 : i32
    %661 = tpu.dynamic_rotate %660 by %c1_i32_296 dim 1 : vector<16x128xf32>, i32 -> vector<16x128xf32>
    %cst_297 = arith.constant 0.000000e+00 : f32
    %662 = vector.shape_cast %19 : vector<1x128xi1> to vector<1x128xi1>
    %663 = vector.broadcast %662 : vector<1x128xi1> to vector<16x128xi1>
    %664 = vector.broadcast %cst_297 : f32 to vector<16x128xf32>
    %665 = arith.select %663, %661, %664 : vector<16x128xi1>, vector<16x128xf32>
    %c127_i32_298 = arith.constant 127 : i32
    %666 = tpu.dynamic_rotate %660 by %c127_i32_298 dim 1 : vector<16x128xf32>, i32 -> vector<16x128xf32>
    %cst_299 = arith.constant 0.000000e+00 : f32
    %667 = vector.shape_cast %21 : vector<1x128xi1> to vector<1x128xi1>
    %668 = vector.broadcast %667 : vector<1x128xi1> to vector<16x128xi1>
    %669 = vector.broadcast %cst_299 : f32 to vector<16x128xf32>
    %670 = arith.select %668, %666, %669 : vector<16x128xi1>, vector<16x128xf32>
    %671 = tpu.concatenate %665, %660, %670 in 0 : vector<16x128xf32>, vector<16x128xf32>, vector<16x128xf32> -> vector<48x128xf32>
    %672 = arith.truncf %671 : vector<48x128xf32> to vector<48x128xbf16>
    %673 = tpu.concatenate %524, %598, %672 in 0 : vector<48x128xbf16>, vector<48x128xbf16>, vector<48x128xbf16> -> vector<144x128xbf16>
    %cst_300 = arith.constant dense<0.000000e+00> : vector<32x128xf32>
    %674 = tpu.matmul %34, %673, %cst_300 {dimension_numbers = #tpu.dot_dimension_numbers<[1], [0], [0], [1], [0, 0, 1, 1], [], []>} : vector<32x144xbf16>, vector<144x128xbf16>, vector<32x128xf32> -> vector<32x128xf32>
    %675 = arith.addf %674, %33 : vector<32x128xf32>
    %cst_301 = arith.constant 0.000000e+00 : f32
    %676 = vector.broadcast %cst_301 : f32 to vector<32x128xf32>
    %677 = arith.maximumf %675, %676 : vector<32x128xf32>
    %678 = arith.addf %604, %677 : vector<32x128xf32>
    %679 = vector.extract_strided_slice %26 {offsets = [8, 0], sizes = [1, 128], strides = [1, 1]} : vector<16x128xf32> to vector<1x128xf32>
    %680 = vector.extract_strided_slice %0 {offsets = [8, 0], sizes = [1, 128], strides = [1, 1]} : vector<16x128xf32> to vector<1x128xf32>
    %681 = vector.extract_strided_slice %31 {offsets = [8, 0], sizes = [1, 128], strides = [1, 1]} : vector<16x128xf32> to vector<1x128xf32>
    %c0_302 = arith.constant 0 : index
    %c0_303 = arith.constant 0 : index
    %c0_304 = arith.constant 0 : index
    %682 = vector.load %arg2[%c0_302, %c0_303, %c0_304] : memref<9x16x128xf32, #tpu.memory_space<vmem>>, vector<1x16x128xf32>
    %683 = vector.shape_cast %682 : vector<1x16x128xf32> to vector<16x128xf32>
    %684 = vector.broadcast %679 : vector<1x128xf32> to vector<16x128xf32>
    %685 = arith.mulf %683, %684 : vector<16x128xf32>
    %686 = arith.addf %32, %685 : vector<16x128xf32>
    %c1_305 = arith.constant 1 : index
    %c0_306 = arith.constant 0 : index
    %c0_307 = arith.constant 0 : index
    %687 = vector.load %arg2[%c1_305, %c0_306, %c0_307] : memref<9x16x128xf32, #tpu.memory_space<vmem>>, vector<1x16x128xf32>
    %688 = vector.shape_cast %687 : vector<1x16x128xf32> to vector<16x128xf32>
    %689 = vector.broadcast %680 : vector<1x128xf32> to vector<16x128xf32>
    %690 = arith.mulf %688, %689 : vector<16x128xf32>
    %691 = arith.addf %686, %690 : vector<16x128xf32>
    %c2_308 = arith.constant 2 : index
    %c0_309 = arith.constant 0 : index
    %c0_310 = arith.constant 0 : index
    %692 = vector.load %arg2[%c2_308, %c0_309, %c0_310] : memref<9x16x128xf32, #tpu.memory_space<vmem>>, vector<1x16x128xf32>
    %693 = vector.shape_cast %692 : vector<1x16x128xf32> to vector<16x128xf32>
    %694 = vector.broadcast %681 : vector<1x128xf32> to vector<16x128xf32>
    %695 = arith.mulf %693, %694 : vector<16x128xf32>
    %696 = arith.addf %691, %695 : vector<16x128xf32>
    %697 = vector.extract_strided_slice %26 {offsets = [9, 0], sizes = [1, 128], strides = [1, 1]} : vector<16x128xf32> to vector<1x128xf32>
    %698 = vector.extract_strided_slice %0 {offsets = [9, 0], sizes = [1, 128], strides = [1, 1]} : vector<16x128xf32> to vector<1x128xf32>
    %699 = vector.extract_strided_slice %31 {offsets = [9, 0], sizes = [1, 128], strides = [1, 1]} : vector<16x128xf32> to vector<1x128xf32>
    %c3_311 = arith.constant 3 : index
    %c0_312 = arith.constant 0 : index
    %c0_313 = arith.constant 0 : index
    %700 = vector.load %arg2[%c3_311, %c0_312, %c0_313] : memref<9x16x128xf32, #tpu.memory_space<vmem>>, vector<1x16x128xf32>
    %701 = vector.shape_cast %700 : vector<1x16x128xf32> to vector<16x128xf32>
    %702 = vector.broadcast %697 : vector<1x128xf32> to vector<16x128xf32>
    %703 = arith.mulf %701, %702 : vector<16x128xf32>
    %704 = arith.addf %696, %703 : vector<16x128xf32>
    %c4_314 = arith.constant 4 : index
    %c0_315 = arith.constant 0 : index
    %c0_316 = arith.constant 0 : index
    %705 = vector.load %arg2[%c4_314, %c0_315, %c0_316] : memref<9x16x128xf32, #tpu.memory_space<vmem>>, vector<1x16x128xf32>
    %706 = vector.shape_cast %705 : vector<1x16x128xf32> to vector<16x128xf32>
    %707 = vector.broadcast %698 : vector<1x128xf32> to vector<16x128xf32>
    %708 = arith.mulf %706, %707 : vector<16x128xf32>
    %709 = arith.addf %704, %708 : vector<16x128xf32>
    %c5_317 = arith.constant 5 : index
    %c0_318 = arith.constant 0 : index
    %c0_319 = arith.constant 0 : index
    %710 = vector.load %arg2[%c5_317, %c0_318, %c0_319] : memref<9x16x128xf32, #tpu.memory_space<vmem>>, vector<1x16x128xf32>
    %711 = vector.shape_cast %710 : vector<1x16x128xf32> to vector<16x128xf32>
    %712 = vector.broadcast %699 : vector<1x128xf32> to vector<16x128xf32>
    %713 = arith.mulf %711, %712 : vector<16x128xf32>
    %714 = arith.addf %709, %713 : vector<16x128xf32>
    %715 = vector.extract_strided_slice %26 {offsets = [10, 0], sizes = [1, 128], strides = [1, 1]} : vector<16x128xf32> to vector<1x128xf32>
    %716 = vector.extract_strided_slice %0 {offsets = [10, 0], sizes = [1, 128], strides = [1, 1]} : vector<16x128xf32> to vector<1x128xf32>
    %717 = vector.extract_strided_slice %31 {offsets = [10, 0], sizes = [1, 128], strides = [1, 1]} : vector<16x128xf32> to vector<1x128xf32>
    %c6_320 = arith.constant 6 : index
    %c0_321 = arith.constant 0 : index
    %c0_322 = arith.constant 0 : index
    %718 = vector.load %arg2[%c6_320, %c0_321, %c0_322] : memref<9x16x128xf32, #tpu.memory_space<vmem>>, vector<1x16x128xf32>
    %719 = vector.shape_cast %718 : vector<1x16x128xf32> to vector<16x128xf32>
    %720 = vector.broadcast %715 : vector<1x128xf32> to vector<16x128xf32>
    %721 = arith.mulf %719, %720 : vector<16x128xf32>
    %722 = arith.addf %714, %721 : vector<16x128xf32>
    %c7_323 = arith.constant 7 : index
    %c0_324 = arith.constant 0 : index
    %c0_325 = arith.constant 0 : index
    %723 = vector.load %arg2[%c7_323, %c0_324, %c0_325] : memref<9x16x128xf32, #tpu.memory_space<vmem>>, vector<1x16x128xf32>
    %724 = vector.shape_cast %723 : vector<1x16x128xf32> to vector<16x128xf32>
    %725 = vector.broadcast %716 : vector<1x128xf32> to vector<16x128xf32>
    %726 = arith.mulf %724, %725 : vector<16x128xf32>
    %727 = arith.addf %722, %726 : vector<16x128xf32>
    %c8_326 = arith.constant 8 : index
    %c0_327 = arith.constant 0 : index
    %c0_328 = arith.constant 0 : index
    %728 = vector.load %arg2[%c8_326, %c0_327, %c0_328] : memref<9x16x128xf32, #tpu.memory_space<vmem>>, vector<1x16x128xf32>
    %729 = vector.shape_cast %728 : vector<1x16x128xf32> to vector<16x128xf32>
    %730 = vector.broadcast %717 : vector<1x128xf32> to vector<16x128xf32>
    %731 = arith.mulf %729, %730 : vector<16x128xf32>
    %732 = arith.addf %727, %731 : vector<16x128xf32>
    %cst_329 = arith.constant 0.000000e+00 : f32
    %733 = vector.broadcast %cst_329 : f32 to vector<16x128xf32>
    %734 = arith.maximumf %732, %733 : vector<16x128xf32>
    %c1_i32_330 = arith.constant 1 : i32
    %735 = tpu.dynamic_rotate %734 by %c1_i32_330 dim 1 : vector<16x128xf32>, i32 -> vector<16x128xf32>
    %cst_331 = arith.constant 0.000000e+00 : f32
    %736 = vector.shape_cast %19 : vector<1x128xi1> to vector<1x128xi1>
    %737 = vector.broadcast %736 : vector<1x128xi1> to vector<16x128xi1>
    %738 = vector.broadcast %cst_331 : f32 to vector<16x128xf32>
    %739 = arith.select %737, %735, %738 : vector<16x128xi1>, vector<16x128xf32>
    %c127_i32_332 = arith.constant 127 : i32
    %740 = tpu.dynamic_rotate %734 by %c127_i32_332 dim 1 : vector<16x128xf32>, i32 -> vector<16x128xf32>
    %cst_333 = arith.constant 0.000000e+00 : f32
    %741 = vector.shape_cast %21 : vector<1x128xi1> to vector<1x128xi1>
    %742 = vector.broadcast %741 : vector<1x128xi1> to vector<16x128xi1>
    %743 = vector.broadcast %cst_333 : f32 to vector<16x128xf32>
    %744 = arith.select %742, %740, %743 : vector<16x128xi1>, vector<16x128xf32>
    %745 = tpu.concatenate %739, %734, %744 in 0 : vector<16x128xf32>, vector<16x128xf32>, vector<16x128xf32> -> vector<48x128xf32>
    %746 = arith.truncf %745 : vector<48x128xf32> to vector<48x128xbf16>
    %747 = tpu.concatenate %598, %672, %746 in 0 : vector<48x128xbf16>, vector<48x128xbf16>, vector<48x128xbf16> -> vector<144x128xbf16>
    %cst_334 = arith.constant dense<0.000000e+00> : vector<32x128xf32>
    %748 = tpu.matmul %34, %747, %cst_334 {dimension_numbers = #tpu.dot_dimension_numbers<[1], [0], [0], [1], [0, 0, 1, 1], [], []>} : vector<32x144xbf16>, vector<144x128xbf16>, vector<32x128xf32> -> vector<32x128xf32>
    %749 = arith.addf %748, %33 : vector<32x128xf32>
    %cst_335 = arith.constant 0.000000e+00 : f32
    %750 = vector.broadcast %cst_335 : f32 to vector<32x128xf32>
    %751 = arith.maximumf %749, %750 : vector<32x128xf32>
    %752 = arith.addf %678, %751 : vector<32x128xf32>
    %753 = vector.extract_strided_slice %26 {offsets = [9, 0], sizes = [1, 128], strides = [1, 1]} : vector<16x128xf32> to vector<1x128xf32>
    %754 = vector.extract_strided_slice %0 {offsets = [9, 0], sizes = [1, 128], strides = [1, 1]} : vector<16x128xf32> to vector<1x128xf32>
    %755 = vector.extract_strided_slice %31 {offsets = [9, 0], sizes = [1, 128], strides = [1, 1]} : vector<16x128xf32> to vector<1x128xf32>
    %c0_336 = arith.constant 0 : index
    %c0_337 = arith.constant 0 : index
    %c0_338 = arith.constant 0 : index
    %756 = vector.load %arg2[%c0_336, %c0_337, %c0_338] : memref<9x16x128xf32, #tpu.memory_space<vmem>>, vector<1x16x128xf32>
    %757 = vector.shape_cast %756 : vector<1x16x128xf32> to vector<16x128xf32>
    %758 = vector.broadcast %753 : vector<1x128xf32> to vector<16x128xf32>
    %759 = arith.mulf %757, %758 : vector<16x128xf32>
    %760 = arith.addf %32, %759 : vector<16x128xf32>
    %c1_339 = arith.constant 1 : index
    %c0_340 = arith.constant 0 : index
    %c0_341 = arith.constant 0 : index
    %761 = vector.load %arg2[%c1_339, %c0_340, %c0_341] : memref<9x16x128xf32, #tpu.memory_space<vmem>>, vector<1x16x128xf32>
    %762 = vector.shape_cast %761 : vector<1x16x128xf32> to vector<16x128xf32>
    %763 = vector.broadcast %754 : vector<1x128xf32> to vector<16x128xf32>
    %764 = arith.mulf %762, %763 : vector<16x128xf32>
    %765 = arith.addf %760, %764 : vector<16x128xf32>
    %c2_342 = arith.constant 2 : index
    %c0_343 = arith.constant 0 : index
    %c0_344 = arith.constant 0 : index
    %766 = vector.load %arg2[%c2_342, %c0_343, %c0_344] : memref<9x16x128xf32, #tpu.memory_space<vmem>>, vector<1x16x128xf32>
    %767 = vector.shape_cast %766 : vector<1x16x128xf32> to vector<16x128xf32>
    %768 = vector.broadcast %755 : vector<1x128xf32> to vector<16x128xf32>
    %769 = arith.mulf %767, %768 : vector<16x128xf32>
    %770 = arith.addf %765, %769 : vector<16x128xf32>
    %771 = vector.extract_strided_slice %26 {offsets = [10, 0], sizes = [1, 128], strides = [1, 1]} : vector<16x128xf32> to vector<1x128xf32>
    %772 = vector.extract_strided_slice %0 {offsets = [10, 0], sizes = [1, 128], strides = [1, 1]} : vector<16x128xf32> to vector<1x128xf32>
    %773 = vector.extract_strided_slice %31 {offsets = [10, 0], sizes = [1, 128], strides = [1, 1]} : vector<16x128xf32> to vector<1x128xf32>
    %c3_345 = arith.constant 3 : index
    %c0_346 = arith.constant 0 : index
    %c0_347 = arith.constant 0 : index
    %774 = vector.load %arg2[%c3_345, %c0_346, %c0_347] : memref<9x16x128xf32, #tpu.memory_space<vmem>>, vector<1x16x128xf32>
    %775 = vector.shape_cast %774 : vector<1x16x128xf32> to vector<16x128xf32>
    %776 = vector.broadcast %771 : vector<1x128xf32> to vector<16x128xf32>
    %777 = arith.mulf %775, %776 : vector<16x128xf32>
    %778 = arith.addf %770, %777 : vector<16x128xf32>
    %c4_348 = arith.constant 4 : index
    %c0_349 = arith.constant 0 : index
    %c0_350 = arith.constant 0 : index
    %779 = vector.load %arg2[%c4_348, %c0_349, %c0_350] : memref<9x16x128xf32, #tpu.memory_space<vmem>>, vector<1x16x128xf32>
    %780 = vector.shape_cast %779 : vector<1x16x128xf32> to vector<16x128xf32>
    %781 = vector.broadcast %772 : vector<1x128xf32> to vector<16x128xf32>
    %782 = arith.mulf %780, %781 : vector<16x128xf32>
    %783 = arith.addf %778, %782 : vector<16x128xf32>
    %c5_351 = arith.constant 5 : index
    %c0_352 = arith.constant 0 : index
    %c0_353 = arith.constant 0 : index
    %784 = vector.load %arg2[%c5_351, %c0_352, %c0_353] : memref<9x16x128xf32, #tpu.memory_space<vmem>>, vector<1x16x128xf32>
    %785 = vector.shape_cast %784 : vector<1x16x128xf32> to vector<16x128xf32>
    %786 = vector.broadcast %773 : vector<1x128xf32> to vector<16x128xf32>
    %787 = arith.mulf %785, %786 : vector<16x128xf32>
    %788 = arith.addf %783, %787 : vector<16x128xf32>
    %789 = vector.extract_strided_slice %26 {offsets = [11, 0], sizes = [1, 128], strides = [1, 1]} : vector<16x128xf32> to vector<1x128xf32>
    %790 = vector.extract_strided_slice %0 {offsets = [11, 0], sizes = [1, 128], strides = [1, 1]} : vector<16x128xf32> to vector<1x128xf32>
    %791 = vector.extract_strided_slice %31 {offsets = [11, 0], sizes = [1, 128], strides = [1, 1]} : vector<16x128xf32> to vector<1x128xf32>
    %c6_354 = arith.constant 6 : index
    %c0_355 = arith.constant 0 : index
    %c0_356 = arith.constant 0 : index
    %792 = vector.load %arg2[%c6_354, %c0_355, %c0_356] : memref<9x16x128xf32, #tpu.memory_space<vmem>>, vector<1x16x128xf32>
    %793 = vector.shape_cast %792 : vector<1x16x128xf32> to vector<16x128xf32>
    %794 = vector.broadcast %789 : vector<1x128xf32> to vector<16x128xf32>
    %795 = arith.mulf %793, %794 : vector<16x128xf32>
    %796 = arith.addf %788, %795 : vector<16x128xf32>
    %c7_357 = arith.constant 7 : index
    %c0_358 = arith.constant 0 : index
    %c0_359 = arith.constant 0 : index
    %797 = vector.load %arg2[%c7_357, %c0_358, %c0_359] : memref<9x16x128xf32, #tpu.memory_space<vmem>>, vector<1x16x128xf32>
    %798 = vector.shape_cast %797 : vector<1x16x128xf32> to vector<16x128xf32>
    %799 = vector.broadcast %790 : vector<1x128xf32> to vector<16x128xf32>
    %800 = arith.mulf %798, %799 : vector<16x128xf32>
    %801 = arith.addf %796, %800 : vector<16x128xf32>
    %c8_360 = arith.constant 8 : index
    %c0_361 = arith.constant 0 : index
    %c0_362 = arith.constant 0 : index
    %802 = vector.load %arg2[%c8_360, %c0_361, %c0_362] : memref<9x16x128xf32, #tpu.memory_space<vmem>>, vector<1x16x128xf32>
    %803 = vector.shape_cast %802 : vector<1x16x128xf32> to vector<16x128xf32>
    %804 = vector.broadcast %791 : vector<1x128xf32> to vector<16x128xf32>
    %805 = arith.mulf %803, %804 : vector<16x128xf32>
    %806 = arith.addf %801, %805 : vector<16x128xf32>
    %cst_363 = arith.constant 0.000000e+00 : f32
    %807 = vector.broadcast %cst_363 : f32 to vector<16x128xf32>
    %808 = arith.maximumf %806, %807 : vector<16x128xf32>
    %c1_i32_364 = arith.constant 1 : i32
    %809 = tpu.dynamic_rotate %808 by %c1_i32_364 dim 1 : vector<16x128xf32>, i32 -> vector<16x128xf32>
    %cst_365 = arith.constant 0.000000e+00 : f32
    %810 = vector.shape_cast %19 : vector<1x128xi1> to vector<1x128xi1>
    %811 = vector.broadcast %810 : vector<1x128xi1> to vector<16x128xi1>
    %812 = vector.broadcast %cst_365 : f32 to vector<16x128xf32>
    %813 = arith.select %811, %809, %812 : vector<16x128xi1>, vector<16x128xf32>
    %c127_i32_366 = arith.constant 127 : i32
    %814 = tpu.dynamic_rotate %808 by %c127_i32_366 dim 1 : vector<16x128xf32>, i32 -> vector<16x128xf32>
    %cst_367 = arith.constant 0.000000e+00 : f32
    %815 = vector.shape_cast %21 : vector<1x128xi1> to vector<1x128xi1>
    %816 = vector.broadcast %815 : vector<1x128xi1> to vector<16x128xi1>
    %817 = vector.broadcast %cst_367 : f32 to vector<16x128xf32>
    %818 = arith.select %816, %814, %817 : vector<16x128xi1>, vector<16x128xf32>
    %819 = tpu.concatenate %813, %808, %818 in 0 : vector<16x128xf32>, vector<16x128xf32>, vector<16x128xf32> -> vector<48x128xf32>
    %820 = arith.truncf %819 : vector<48x128xf32> to vector<48x128xbf16>
    %821 = tpu.concatenate %672, %746, %820 in 0 : vector<48x128xbf16>, vector<48x128xbf16>, vector<48x128xbf16> -> vector<144x128xbf16>
    %cst_368 = arith.constant dense<0.000000e+00> : vector<32x128xf32>
    %822 = tpu.matmul %34, %821, %cst_368 {dimension_numbers = #tpu.dot_dimension_numbers<[1], [0], [0], [1], [0, 0, 1, 1], [], []>} : vector<32x144xbf16>, vector<144x128xbf16>, vector<32x128xf32> -> vector<32x128xf32>
    %823 = arith.addf %822, %33 : vector<32x128xf32>
    %cst_369 = arith.constant 0.000000e+00 : f32
    %824 = vector.broadcast %cst_369 : f32 to vector<32x128xf32>
    %825 = arith.maximumf %823, %824 : vector<32x128xf32>
    %826 = arith.addf %752, %825 : vector<32x128xf32>
    %827 = vector.extract_strided_slice %26 {offsets = [10, 0], sizes = [1, 128], strides = [1, 1]} : vector<16x128xf32> to vector<1x128xf32>
    %828 = vector.extract_strided_slice %0 {offsets = [10, 0], sizes = [1, 128], strides = [1, 1]} : vector<16x128xf32> to vector<1x128xf32>
    %829 = vector.extract_strided_slice %31 {offsets = [10, 0], sizes = [1, 128], strides = [1, 1]} : vector<16x128xf32> to vector<1x128xf32>
    %c0_370 = arith.constant 0 : index
    %c0_371 = arith.constant 0 : index
    %c0_372 = arith.constant 0 : index
    %830 = vector.load %arg2[%c0_370, %c0_371, %c0_372] : memref<9x16x128xf32, #tpu.memory_space<vmem>>, vector<1x16x128xf32>
    %831 = vector.shape_cast %830 : vector<1x16x128xf32> to vector<16x128xf32>
    %832 = vector.broadcast %827 : vector<1x128xf32> to vector<16x128xf32>
    %833 = arith.mulf %831, %832 : vector<16x128xf32>
    %834 = arith.addf %32, %833 : vector<16x128xf32>
    %c1_373 = arith.constant 1 : index
    %c0_374 = arith.constant 0 : index
    %c0_375 = arith.constant 0 : index
    %835 = vector.load %arg2[%c1_373, %c0_374, %c0_375] : memref<9x16x128xf32, #tpu.memory_space<vmem>>, vector<1x16x128xf32>
    %836 = vector.shape_cast %835 : vector<1x16x128xf32> to vector<16x128xf32>
    %837 = vector.broadcast %828 : vector<1x128xf32> to vector<16x128xf32>
    %838 = arith.mulf %836, %837 : vector<16x128xf32>
    %839 = arith.addf %834, %838 : vector<16x128xf32>
    %c2_376 = arith.constant 2 : index
    %c0_377 = arith.constant 0 : index
    %c0_378 = arith.constant 0 : index
    %840 = vector.load %arg2[%c2_376, %c0_377, %c0_378] : memref<9x16x128xf32, #tpu.memory_space<vmem>>, vector<1x16x128xf32>
    %841 = vector.shape_cast %840 : vector<1x16x128xf32> to vector<16x128xf32>
    %842 = vector.broadcast %829 : vector<1x128xf32> to vector<16x128xf32>
    %843 = arith.mulf %841, %842 : vector<16x128xf32>
    %844 = arith.addf %839, %843 : vector<16x128xf32>
    %845 = vector.extract_strided_slice %26 {offsets = [11, 0], sizes = [1, 128], strides = [1, 1]} : vector<16x128xf32> to vector<1x128xf32>
    %846 = vector.extract_strided_slice %0 {offsets = [11, 0], sizes = [1, 128], strides = [1, 1]} : vector<16x128xf32> to vector<1x128xf32>
    %847 = vector.extract_strided_slice %31 {offsets = [11, 0], sizes = [1, 128], strides = [1, 1]} : vector<16x128xf32> to vector<1x128xf32>
    %c3_379 = arith.constant 3 : index
    %c0_380 = arith.constant 0 : index
    %c0_381 = arith.constant 0 : index
    %848 = vector.load %arg2[%c3_379, %c0_380, %c0_381] : memref<9x16x128xf32, #tpu.memory_space<vmem>>, vector<1x16x128xf32>
    %849 = vector.shape_cast %848 : vector<1x16x128xf32> to vector<16x128xf32>
    %850 = vector.broadcast %845 : vector<1x128xf32> to vector<16x128xf32>
    %851 = arith.mulf %849, %850 : vector<16x128xf32>
    %852 = arith.addf %844, %851 : vector<16x128xf32>
    %c4_382 = arith.constant 4 : index
    %c0_383 = arith.constant 0 : index
    %c0_384 = arith.constant 0 : index
    %853 = vector.load %arg2[%c4_382, %c0_383, %c0_384] : memref<9x16x128xf32, #tpu.memory_space<vmem>>, vector<1x16x128xf32>
    %854 = vector.shape_cast %853 : vector<1x16x128xf32> to vector<16x128xf32>
    %855 = vector.broadcast %846 : vector<1x128xf32> to vector<16x128xf32>
    %856 = arith.mulf %854, %855 : vector<16x128xf32>
    %857 = arith.addf %852, %856 : vector<16x128xf32>
    %c5_385 = arith.constant 5 : index
    %c0_386 = arith.constant 0 : index
    %c0_387 = arith.constant 0 : index
    %858 = vector.load %arg2[%c5_385, %c0_386, %c0_387] : memref<9x16x128xf32, #tpu.memory_space<vmem>>, vector<1x16x128xf32>
    %859 = vector.shape_cast %858 : vector<1x16x128xf32> to vector<16x128xf32>
    %860 = vector.broadcast %847 : vector<1x128xf32> to vector<16x128xf32>
    %861 = arith.mulf %859, %860 : vector<16x128xf32>
    %862 = arith.addf %857, %861 : vector<16x128xf32>
    %863 = vector.extract_strided_slice %26 {offsets = [12, 0], sizes = [1, 128], strides = [1, 1]} : vector<16x128xf32> to vector<1x128xf32>
    %864 = vector.extract_strided_slice %0 {offsets = [12, 0], sizes = [1, 128], strides = [1, 1]} : vector<16x128xf32> to vector<1x128xf32>
    %865 = vector.extract_strided_slice %31 {offsets = [12, 0], sizes = [1, 128], strides = [1, 1]} : vector<16x128xf32> to vector<1x128xf32>
    %c6_388 = arith.constant 6 : index
    %c0_389 = arith.constant 0 : index
    %c0_390 = arith.constant 0 : index
    %866 = vector.load %arg2[%c6_388, %c0_389, %c0_390] : memref<9x16x128xf32, #tpu.memory_space<vmem>>, vector<1x16x128xf32>
    %867 = vector.shape_cast %866 : vector<1x16x128xf32> to vector<16x128xf32>
    %868 = vector.broadcast %863 : vector<1x128xf32> to vector<16x128xf32>
    %869 = arith.mulf %867, %868 : vector<16x128xf32>
    %870 = arith.addf %862, %869 : vector<16x128xf32>
    %c7_391 = arith.constant 7 : index
    %c0_392 = arith.constant 0 : index
    %c0_393 = arith.constant 0 : index
    %871 = vector.load %arg2[%c7_391, %c0_392, %c0_393] : memref<9x16x128xf32, #tpu.memory_space<vmem>>, vector<1x16x128xf32>
    %872 = vector.shape_cast %871 : vector<1x16x128xf32> to vector<16x128xf32>
    %873 = vector.broadcast %864 : vector<1x128xf32> to vector<16x128xf32>
    %874 = arith.mulf %872, %873 : vector<16x128xf32>
    %875 = arith.addf %870, %874 : vector<16x128xf32>
    %c8_394 = arith.constant 8 : index
    %c0_395 = arith.constant 0 : index
    %c0_396 = arith.constant 0 : index
    %876 = vector.load %arg2[%c8_394, %c0_395, %c0_396] : memref<9x16x128xf32, #tpu.memory_space<vmem>>, vector<1x16x128xf32>
    %877 = vector.shape_cast %876 : vector<1x16x128xf32> to vector<16x128xf32>
    %878 = vector.broadcast %865 : vector<1x128xf32> to vector<16x128xf32>
    %879 = arith.mulf %877, %878 : vector<16x128xf32>
    %880 = arith.addf %875, %879 : vector<16x128xf32>
    %cst_397 = arith.constant 0.000000e+00 : f32
    %881 = vector.broadcast %cst_397 : f32 to vector<16x128xf32>
    %882 = arith.maximumf %880, %881 : vector<16x128xf32>
    %c1_i32_398 = arith.constant 1 : i32
    %883 = tpu.dynamic_rotate %882 by %c1_i32_398 dim 1 : vector<16x128xf32>, i32 -> vector<16x128xf32>
    %cst_399 = arith.constant 0.000000e+00 : f32
    %884 = vector.shape_cast %19 : vector<1x128xi1> to vector<1x128xi1>
    %885 = vector.broadcast %884 : vector<1x128xi1> to vector<16x128xi1>
    %886 = vector.broadcast %cst_399 : f32 to vector<16x128xf32>
    %887 = arith.select %885, %883, %886 : vector<16x128xi1>, vector<16x128xf32>
    %c127_i32_400 = arith.constant 127 : i32
    %888 = tpu.dynamic_rotate %882 by %c127_i32_400 dim 1 : vector<16x128xf32>, i32 -> vector<16x128xf32>
    %cst_401 = arith.constant 0.000000e+00 : f32
    %889 = vector.shape_cast %21 : vector<1x128xi1> to vector<1x128xi1>
    %890 = vector.broadcast %889 : vector<1x128xi1> to vector<16x128xi1>
    %891 = vector.broadcast %cst_401 : f32 to vector<16x128xf32>
    %892 = arith.select %890, %888, %891 : vector<16x128xi1>, vector<16x128xf32>
    %893 = tpu.concatenate %887, %882, %892 in 0 : vector<16x128xf32>, vector<16x128xf32>, vector<16x128xf32> -> vector<48x128xf32>
    %894 = arith.truncf %893 : vector<48x128xf32> to vector<48x128xbf16>
    %895 = tpu.concatenate %746, %820, %894 in 0 : vector<48x128xbf16>, vector<48x128xbf16>, vector<48x128xbf16> -> vector<144x128xbf16>
    %cst_402 = arith.constant dense<0.000000e+00> : vector<32x128xf32>
    %896 = tpu.matmul %34, %895, %cst_402 {dimension_numbers = #tpu.dot_dimension_numbers<[1], [0], [0], [1], [0, 0, 1, 1], [], []>} : vector<32x144xbf16>, vector<144x128xbf16>, vector<32x128xf32> -> vector<32x128xf32>
    %897 = arith.addf %896, %33 : vector<32x128xf32>
    %cst_403 = arith.constant 0.000000e+00 : f32
    %898 = vector.broadcast %cst_403 : f32 to vector<32x128xf32>
    %899 = arith.maximumf %897, %898 : vector<32x128xf32>
    %900 = arith.addf %826, %899 : vector<32x128xf32>
    %901 = vector.extract_strided_slice %26 {offsets = [11, 0], sizes = [1, 128], strides = [1, 1]} : vector<16x128xf32> to vector<1x128xf32>
    %902 = vector.extract_strided_slice %0 {offsets = [11, 0], sizes = [1, 128], strides = [1, 1]} : vector<16x128xf32> to vector<1x128xf32>
    %903 = vector.extract_strided_slice %31 {offsets = [11, 0], sizes = [1, 128], strides = [1, 1]} : vector<16x128xf32> to vector<1x128xf32>
    %c0_404 = arith.constant 0 : index
    %c0_405 = arith.constant 0 : index
    %c0_406 = arith.constant 0 : index
    %904 = vector.load %arg2[%c0_404, %c0_405, %c0_406] : memref<9x16x128xf32, #tpu.memory_space<vmem>>, vector<1x16x128xf32>
    %905 = vector.shape_cast %904 : vector<1x16x128xf32> to vector<16x128xf32>
    %906 = vector.broadcast %901 : vector<1x128xf32> to vector<16x128xf32>
    %907 = arith.mulf %905, %906 : vector<16x128xf32>
    %908 = arith.addf %32, %907 : vector<16x128xf32>
    %c1_407 = arith.constant 1 : index
    %c0_408 = arith.constant 0 : index
    %c0_409 = arith.constant 0 : index
    %909 = vector.load %arg2[%c1_407, %c0_408, %c0_409] : memref<9x16x128xf32, #tpu.memory_space<vmem>>, vector<1x16x128xf32>
    %910 = vector.shape_cast %909 : vector<1x16x128xf32> to vector<16x128xf32>
    %911 = vector.broadcast %902 : vector<1x128xf32> to vector<16x128xf32>
    %912 = arith.mulf %910, %911 : vector<16x128xf32>
    %913 = arith.addf %908, %912 : vector<16x128xf32>
    %c2_410 = arith.constant 2 : index
    %c0_411 = arith.constant 0 : index
    %c0_412 = arith.constant 0 : index
    %914 = vector.load %arg2[%c2_410, %c0_411, %c0_412] : memref<9x16x128xf32, #tpu.memory_space<vmem>>, vector<1x16x128xf32>
    %915 = vector.shape_cast %914 : vector<1x16x128xf32> to vector<16x128xf32>
    %916 = vector.broadcast %903 : vector<1x128xf32> to vector<16x128xf32>
    %917 = arith.mulf %915, %916 : vector<16x128xf32>
    %918 = arith.addf %913, %917 : vector<16x128xf32>
    %919 = vector.extract_strided_slice %26 {offsets = [12, 0], sizes = [1, 128], strides = [1, 1]} : vector<16x128xf32> to vector<1x128xf32>
    %920 = vector.extract_strided_slice %0 {offsets = [12, 0], sizes = [1, 128], strides = [1, 1]} : vector<16x128xf32> to vector<1x128xf32>
    %921 = vector.extract_strided_slice %31 {offsets = [12, 0], sizes = [1, 128], strides = [1, 1]} : vector<16x128xf32> to vector<1x128xf32>
    %c3_413 = arith.constant 3 : index
    %c0_414 = arith.constant 0 : index
    %c0_415 = arith.constant 0 : index
    %922 = vector.load %arg2[%c3_413, %c0_414, %c0_415] : memref<9x16x128xf32, #tpu.memory_space<vmem>>, vector<1x16x128xf32>
    %923 = vector.shape_cast %922 : vector<1x16x128xf32> to vector<16x128xf32>
    %924 = vector.broadcast %919 : vector<1x128xf32> to vector<16x128xf32>
    %925 = arith.mulf %923, %924 : vector<16x128xf32>
    %926 = arith.addf %918, %925 : vector<16x128xf32>
    %c4_416 = arith.constant 4 : index
    %c0_417 = arith.constant 0 : index
    %c0_418 = arith.constant 0 : index
    %927 = vector.load %arg2[%c4_416, %c0_417, %c0_418] : memref<9x16x128xf32, #tpu.memory_space<vmem>>, vector<1x16x128xf32>
    %928 = vector.shape_cast %927 : vector<1x16x128xf32> to vector<16x128xf32>
    %929 = vector.broadcast %920 : vector<1x128xf32> to vector<16x128xf32>
    %930 = arith.mulf %928, %929 : vector<16x128xf32>
    %931 = arith.addf %926, %930 : vector<16x128xf32>
    %c5_419 = arith.constant 5 : index
    %c0_420 = arith.constant 0 : index
    %c0_421 = arith.constant 0 : index
    %932 = vector.load %arg2[%c5_419, %c0_420, %c0_421] : memref<9x16x128xf32, #tpu.memory_space<vmem>>, vector<1x16x128xf32>
    %933 = vector.shape_cast %932 : vector<1x16x128xf32> to vector<16x128xf32>
    %934 = vector.broadcast %921 : vector<1x128xf32> to vector<16x128xf32>
    %935 = arith.mulf %933, %934 : vector<16x128xf32>
    %936 = arith.addf %931, %935 : vector<16x128xf32>
    %937 = vector.extract_strided_slice %26 {offsets = [13, 0], sizes = [1, 128], strides = [1, 1]} : vector<16x128xf32> to vector<1x128xf32>
    %938 = vector.extract_strided_slice %0 {offsets = [13, 0], sizes = [1, 128], strides = [1, 1]} : vector<16x128xf32> to vector<1x128xf32>
    %939 = vector.extract_strided_slice %31 {offsets = [13, 0], sizes = [1, 128], strides = [1, 1]} : vector<16x128xf32> to vector<1x128xf32>
    %c6_422 = arith.constant 6 : index
    %c0_423 = arith.constant 0 : index
    %c0_424 = arith.constant 0 : index
    %940 = vector.load %arg2[%c6_422, %c0_423, %c0_424] : memref<9x16x128xf32, #tpu.memory_space<vmem>>, vector<1x16x128xf32>
    %941 = vector.shape_cast %940 : vector<1x16x128xf32> to vector<16x128xf32>
    %942 = vector.broadcast %937 : vector<1x128xf32> to vector<16x128xf32>
    %943 = arith.mulf %941, %942 : vector<16x128xf32>
    %944 = arith.addf %936, %943 : vector<16x128xf32>
    %c7_425 = arith.constant 7 : index
    %c0_426 = arith.constant 0 : index
    %c0_427 = arith.constant 0 : index
    %945 = vector.load %arg2[%c7_425, %c0_426, %c0_427] : memref<9x16x128xf32, #tpu.memory_space<vmem>>, vector<1x16x128xf32>
    %946 = vector.shape_cast %945 : vector<1x16x128xf32> to vector<16x128xf32>
    %947 = vector.broadcast %938 : vector<1x128xf32> to vector<16x128xf32>
    %948 = arith.mulf %946, %947 : vector<16x128xf32>
    %949 = arith.addf %944, %948 : vector<16x128xf32>
    %c8_428 = arith.constant 8 : index
    %c0_429 = arith.constant 0 : index
    %c0_430 = arith.constant 0 : index
    %950 = vector.load %arg2[%c8_428, %c0_429, %c0_430] : memref<9x16x128xf32, #tpu.memory_space<vmem>>, vector<1x16x128xf32>
    %951 = vector.shape_cast %950 : vector<1x16x128xf32> to vector<16x128xf32>
    %952 = vector.broadcast %939 : vector<1x128xf32> to vector<16x128xf32>
    %953 = arith.mulf %951, %952 : vector<16x128xf32>
    %954 = arith.addf %949, %953 : vector<16x128xf32>
    %cst_431 = arith.constant 0.000000e+00 : f32
    %955 = vector.broadcast %cst_431 : f32 to vector<16x128xf32>
    %956 = arith.maximumf %954, %955 : vector<16x128xf32>
    %c1_i32_432 = arith.constant 1 : i32
    %957 = tpu.dynamic_rotate %956 by %c1_i32_432 dim 1 : vector<16x128xf32>, i32 -> vector<16x128xf32>
    %cst_433 = arith.constant 0.000000e+00 : f32
    %958 = vector.shape_cast %19 : vector<1x128xi1> to vector<1x128xi1>
    %959 = vector.broadcast %958 : vector<1x128xi1> to vector<16x128xi1>
    %960 = vector.broadcast %cst_433 : f32 to vector<16x128xf32>
    %961 = arith.select %959, %957, %960 : vector<16x128xi1>, vector<16x128xf32>
    %c127_i32_434 = arith.constant 127 : i32
    %962 = tpu.dynamic_rotate %956 by %c127_i32_434 dim 1 : vector<16x128xf32>, i32 -> vector<16x128xf32>
    %cst_435 = arith.constant 0.000000e+00 : f32
    %963 = vector.shape_cast %21 : vector<1x128xi1> to vector<1x128xi1>
    %964 = vector.broadcast %963 : vector<1x128xi1> to vector<16x128xi1>
    %965 = vector.broadcast %cst_435 : f32 to vector<16x128xf32>
    %966 = arith.select %964, %962, %965 : vector<16x128xi1>, vector<16x128xf32>
    %967 = tpu.concatenate %961, %956, %966 in 0 : vector<16x128xf32>, vector<16x128xf32>, vector<16x128xf32> -> vector<48x128xf32>
    %968 = arith.truncf %967 : vector<48x128xf32> to vector<48x128xbf16>
    %969 = tpu.concatenate %820, %894, %968 in 0 : vector<48x128xbf16>, vector<48x128xbf16>, vector<48x128xbf16> -> vector<144x128xbf16>
    %cst_436 = arith.constant dense<0.000000e+00> : vector<32x128xf32>
    %970 = tpu.matmul %34, %969, %cst_436 {dimension_numbers = #tpu.dot_dimension_numbers<[1], [0], [0], [1], [0, 0, 1, 1], [], []>} : vector<32x144xbf16>, vector<144x128xbf16>, vector<32x128xf32> -> vector<32x128xf32>
    %971 = arith.addf %970, %33 : vector<32x128xf32>
    %cst_437 = arith.constant 0.000000e+00 : f32
    %972 = vector.broadcast %cst_437 : f32 to vector<32x128xf32>
    %973 = arith.maximumf %971, %972 : vector<32x128xf32>
    %974 = arith.addf %900, %973 : vector<32x128xf32>
    %975 = vector.extract_strided_slice %26 {offsets = [12, 0], sizes = [1, 128], strides = [1, 1]} : vector<16x128xf32> to vector<1x128xf32>
    %976 = vector.extract_strided_slice %0 {offsets = [12, 0], sizes = [1, 128], strides = [1, 1]} : vector<16x128xf32> to vector<1x128xf32>
    %977 = vector.extract_strided_slice %31 {offsets = [12, 0], sizes = [1, 128], strides = [1, 1]} : vector<16x128xf32> to vector<1x128xf32>
    %c0_438 = arith.constant 0 : index
    %c0_439 = arith.constant 0 : index
    %c0_440 = arith.constant 0 : index
    %978 = vector.load %arg2[%c0_438, %c0_439, %c0_440] : memref<9x16x128xf32, #tpu.memory_space<vmem>>, vector<1x16x128xf32>
    %979 = vector.shape_cast %978 : vector<1x16x128xf32> to vector<16x128xf32>
    %980 = vector.broadcast %975 : vector<1x128xf32> to vector<16x128xf32>
    %981 = arith.mulf %979, %980 : vector<16x128xf32>
    %982 = arith.addf %32, %981 : vector<16x128xf32>
    %c1_441 = arith.constant 1 : index
    %c0_442 = arith.constant 0 : index
    %c0_443 = arith.constant 0 : index
    %983 = vector.load %arg2[%c1_441, %c0_442, %c0_443] : memref<9x16x128xf32, #tpu.memory_space<vmem>>, vector<1x16x128xf32>
    %984 = vector.shape_cast %983 : vector<1x16x128xf32> to vector<16x128xf32>
    %985 = vector.broadcast %976 : vector<1x128xf32> to vector<16x128xf32>
    %986 = arith.mulf %984, %985 : vector<16x128xf32>
    %987 = arith.addf %982, %986 : vector<16x128xf32>
    %c2_444 = arith.constant 2 : index
    %c0_445 = arith.constant 0 : index
    %c0_446 = arith.constant 0 : index
    %988 = vector.load %arg2[%c2_444, %c0_445, %c0_446] : memref<9x16x128xf32, #tpu.memory_space<vmem>>, vector<1x16x128xf32>
    %989 = vector.shape_cast %988 : vector<1x16x128xf32> to vector<16x128xf32>
    %990 = vector.broadcast %977 : vector<1x128xf32> to vector<16x128xf32>
    %991 = arith.mulf %989, %990 : vector<16x128xf32>
    %992 = arith.addf %987, %991 : vector<16x128xf32>
    %993 = vector.extract_strided_slice %26 {offsets = [13, 0], sizes = [1, 128], strides = [1, 1]} : vector<16x128xf32> to vector<1x128xf32>
    %994 = vector.extract_strided_slice %0 {offsets = [13, 0], sizes = [1, 128], strides = [1, 1]} : vector<16x128xf32> to vector<1x128xf32>
    %995 = vector.extract_strided_slice %31 {offsets = [13, 0], sizes = [1, 128], strides = [1, 1]} : vector<16x128xf32> to vector<1x128xf32>
    %c3_447 = arith.constant 3 : index
    %c0_448 = arith.constant 0 : index
    %c0_449 = arith.constant 0 : index
    %996 = vector.load %arg2[%c3_447, %c0_448, %c0_449] : memref<9x16x128xf32, #tpu.memory_space<vmem>>, vector<1x16x128xf32>
    %997 = vector.shape_cast %996 : vector<1x16x128xf32> to vector<16x128xf32>
    %998 = vector.broadcast %993 : vector<1x128xf32> to vector<16x128xf32>
    %999 = arith.mulf %997, %998 : vector<16x128xf32>
    %1000 = arith.addf %992, %999 : vector<16x128xf32>
    %c4_450 = arith.constant 4 : index
    %c0_451 = arith.constant 0 : index
    %c0_452 = arith.constant 0 : index
    %1001 = vector.load %arg2[%c4_450, %c0_451, %c0_452] : memref<9x16x128xf32, #tpu.memory_space<vmem>>, vector<1x16x128xf32>
    %1002 = vector.shape_cast %1001 : vector<1x16x128xf32> to vector<16x128xf32>
    %1003 = vector.broadcast %994 : vector<1x128xf32> to vector<16x128xf32>
    %1004 = arith.mulf %1002, %1003 : vector<16x128xf32>
    %1005 = arith.addf %1000, %1004 : vector<16x128xf32>
    %c5_453 = arith.constant 5 : index
    %c0_454 = arith.constant 0 : index
    %c0_455 = arith.constant 0 : index
    %1006 = vector.load %arg2[%c5_453, %c0_454, %c0_455] : memref<9x16x128xf32, #tpu.memory_space<vmem>>, vector<1x16x128xf32>
    %1007 = vector.shape_cast %1006 : vector<1x16x128xf32> to vector<16x128xf32>
    %1008 = vector.broadcast %995 : vector<1x128xf32> to vector<16x128xf32>
    %1009 = arith.mulf %1007, %1008 : vector<16x128xf32>
    %1010 = arith.addf %1005, %1009 : vector<16x128xf32>
    %1011 = vector.extract_strided_slice %26 {offsets = [14, 0], sizes = [1, 128], strides = [1, 1]} : vector<16x128xf32> to vector<1x128xf32>
    %1012 = vector.extract_strided_slice %0 {offsets = [14, 0], sizes = [1, 128], strides = [1, 1]} : vector<16x128xf32> to vector<1x128xf32>
    %1013 = vector.extract_strided_slice %31 {offsets = [14, 0], sizes = [1, 128], strides = [1, 1]} : vector<16x128xf32> to vector<1x128xf32>
    %c6_456 = arith.constant 6 : index
    %c0_457 = arith.constant 0 : index
    %c0_458 = arith.constant 0 : index
    %1014 = vector.load %arg2[%c6_456, %c0_457, %c0_458] : memref<9x16x128xf32, #tpu.memory_space<vmem>>, vector<1x16x128xf32>
    %1015 = vector.shape_cast %1014 : vector<1x16x128xf32> to vector<16x128xf32>
    %1016 = vector.broadcast %1011 : vector<1x128xf32> to vector<16x128xf32>
    %1017 = arith.mulf %1015, %1016 : vector<16x128xf32>
    %1018 = arith.addf %1010, %1017 : vector<16x128xf32>
    %c7_459 = arith.constant 7 : index
    %c0_460 = arith.constant 0 : index
    %c0_461 = arith.constant 0 : index
    %1019 = vector.load %arg2[%c7_459, %c0_460, %c0_461] : memref<9x16x128xf32, #tpu.memory_space<vmem>>, vector<1x16x128xf32>
    %1020 = vector.shape_cast %1019 : vector<1x16x128xf32> to vector<16x128xf32>
    %1021 = vector.broadcast %1012 : vector<1x128xf32> to vector<16x128xf32>
    %1022 = arith.mulf %1020, %1021 : vector<16x128xf32>
    %1023 = arith.addf %1018, %1022 : vector<16x128xf32>
    %c8_462 = arith.constant 8 : index
    %c0_463 = arith.constant 0 : index
    %c0_464 = arith.constant 0 : index
    %1024 = vector.load %arg2[%c8_462, %c0_463, %c0_464] : memref<9x16x128xf32, #tpu.memory_space<vmem>>, vector<1x16x128xf32>
    %1025 = vector.shape_cast %1024 : vector<1x16x128xf32> to vector<16x128xf32>
    %1026 = vector.broadcast %1013 : vector<1x128xf32> to vector<16x128xf32>
    %1027 = arith.mulf %1025, %1026 : vector<16x128xf32>
    %1028 = arith.addf %1023, %1027 : vector<16x128xf32>
    %cst_465 = arith.constant 0.000000e+00 : f32
    %1029 = vector.broadcast %cst_465 : f32 to vector<16x128xf32>
    %1030 = arith.maximumf %1028, %1029 : vector<16x128xf32>
    %c1_i32_466 = arith.constant 1 : i32
    %1031 = tpu.dynamic_rotate %1030 by %c1_i32_466 dim 1 : vector<16x128xf32>, i32 -> vector<16x128xf32>
    %cst_467 = arith.constant 0.000000e+00 : f32
    %1032 = vector.shape_cast %19 : vector<1x128xi1> to vector<1x128xi1>
    %1033 = vector.broadcast %1032 : vector<1x128xi1> to vector<16x128xi1>
    %1034 = vector.broadcast %cst_467 : f32 to vector<16x128xf32>
    %1035 = arith.select %1033, %1031, %1034 : vector<16x128xi1>, vector<16x128xf32>
    %c127_i32_468 = arith.constant 127 : i32
    %1036 = tpu.dynamic_rotate %1030 by %c127_i32_468 dim 1 : vector<16x128xf32>, i32 -> vector<16x128xf32>
    %cst_469 = arith.constant 0.000000e+00 : f32
    %1037 = vector.shape_cast %21 : vector<1x128xi1> to vector<1x128xi1>
    %1038 = vector.broadcast %1037 : vector<1x128xi1> to vector<16x128xi1>
    %1039 = vector.broadcast %cst_469 : f32 to vector<16x128xf32>
    %1040 = arith.select %1038, %1036, %1039 : vector<16x128xi1>, vector<16x128xf32>
    %1041 = tpu.concatenate %1035, %1030, %1040 in 0 : vector<16x128xf32>, vector<16x128xf32>, vector<16x128xf32> -> vector<48x128xf32>
    %1042 = arith.truncf %1041 : vector<48x128xf32> to vector<48x128xbf16>
    %1043 = tpu.concatenate %894, %968, %1042 in 0 : vector<48x128xbf16>, vector<48x128xbf16>, vector<48x128xbf16> -> vector<144x128xbf16>
    %cst_470 = arith.constant dense<0.000000e+00> : vector<32x128xf32>
    %1044 = tpu.matmul %34, %1043, %cst_470 {dimension_numbers = #tpu.dot_dimension_numbers<[1], [0], [0], [1], [0, 0, 1, 1], [], []>} : vector<32x144xbf16>, vector<144x128xbf16>, vector<32x128xf32> -> vector<32x128xf32>
    %1045 = arith.addf %1044, %33 : vector<32x128xf32>
    %cst_471 = arith.constant 0.000000e+00 : f32
    %1046 = vector.broadcast %cst_471 : f32 to vector<32x128xf32>
    %1047 = arith.maximumf %1045, %1046 : vector<32x128xf32>
    %1048 = arith.addf %974, %1047 : vector<32x128xf32>
    %1049 = vector.extract_strided_slice %26 {offsets = [13, 0], sizes = [1, 128], strides = [1, 1]} : vector<16x128xf32> to vector<1x128xf32>
    %1050 = vector.extract_strided_slice %0 {offsets = [13, 0], sizes = [1, 128], strides = [1, 1]} : vector<16x128xf32> to vector<1x128xf32>
    %1051 = vector.extract_strided_slice %31 {offsets = [13, 0], sizes = [1, 128], strides = [1, 1]} : vector<16x128xf32> to vector<1x128xf32>
    %c0_472 = arith.constant 0 : index
    %c0_473 = arith.constant 0 : index
    %c0_474 = arith.constant 0 : index
    %1052 = vector.load %arg2[%c0_472, %c0_473, %c0_474] : memref<9x16x128xf32, #tpu.memory_space<vmem>>, vector<1x16x128xf32>
    %1053 = vector.shape_cast %1052 : vector<1x16x128xf32> to vector<16x128xf32>
    %1054 = vector.broadcast %1049 : vector<1x128xf32> to vector<16x128xf32>
    %1055 = arith.mulf %1053, %1054 : vector<16x128xf32>
    %1056 = arith.addf %32, %1055 : vector<16x128xf32>
    %c1_475 = arith.constant 1 : index
    %c0_476 = arith.constant 0 : index
    %c0_477 = arith.constant 0 : index
    %1057 = vector.load %arg2[%c1_475, %c0_476, %c0_477] : memref<9x16x128xf32, #tpu.memory_space<vmem>>, vector<1x16x128xf32>
    %1058 = vector.shape_cast %1057 : vector<1x16x128xf32> to vector<16x128xf32>
    %1059 = vector.broadcast %1050 : vector<1x128xf32> to vector<16x128xf32>
    %1060 = arith.mulf %1058, %1059 : vector<16x128xf32>
    %1061 = arith.addf %1056, %1060 : vector<16x128xf32>
    %c2_478 = arith.constant 2 : index
    %c0_479 = arith.constant 0 : index
    %c0_480 = arith.constant 0 : index
    %1062 = vector.load %arg2[%c2_478, %c0_479, %c0_480] : memref<9x16x128xf32, #tpu.memory_space<vmem>>, vector<1x16x128xf32>
    %1063 = vector.shape_cast %1062 : vector<1x16x128xf32> to vector<16x128xf32>
    %1064 = vector.broadcast %1051 : vector<1x128xf32> to vector<16x128xf32>
    %1065 = arith.mulf %1063, %1064 : vector<16x128xf32>
    %1066 = arith.addf %1061, %1065 : vector<16x128xf32>
    %1067 = vector.extract_strided_slice %26 {offsets = [14, 0], sizes = [1, 128], strides = [1, 1]} : vector<16x128xf32> to vector<1x128xf32>
    %1068 = vector.extract_strided_slice %0 {offsets = [14, 0], sizes = [1, 128], strides = [1, 1]} : vector<16x128xf32> to vector<1x128xf32>
    %1069 = vector.extract_strided_slice %31 {offsets = [14, 0], sizes = [1, 128], strides = [1, 1]} : vector<16x128xf32> to vector<1x128xf32>
    %c3_481 = arith.constant 3 : index
    %c0_482 = arith.constant 0 : index
    %c0_483 = arith.constant 0 : index
    %1070 = vector.load %arg2[%c3_481, %c0_482, %c0_483] : memref<9x16x128xf32, #tpu.memory_space<vmem>>, vector<1x16x128xf32>
    %1071 = vector.shape_cast %1070 : vector<1x16x128xf32> to vector<16x128xf32>
    %1072 = vector.broadcast %1067 : vector<1x128xf32> to vector<16x128xf32>
    %1073 = arith.mulf %1071, %1072 : vector<16x128xf32>
    %1074 = arith.addf %1066, %1073 : vector<16x128xf32>
    %c4_484 = arith.constant 4 : index
    %c0_485 = arith.constant 0 : index
    %c0_486 = arith.constant 0 : index
    %1075 = vector.load %arg2[%c4_484, %c0_485, %c0_486] : memref<9x16x128xf32, #tpu.memory_space<vmem>>, vector<1x16x128xf32>
    %1076 = vector.shape_cast %1075 : vector<1x16x128xf32> to vector<16x128xf32>
    %1077 = vector.broadcast %1068 : vector<1x128xf32> to vector<16x128xf32>
    %1078 = arith.mulf %1076, %1077 : vector<16x128xf32>
    %1079 = arith.addf %1074, %1078 : vector<16x128xf32>
    %c5_487 = arith.constant 5 : index
    %c0_488 = arith.constant 0 : index
    %c0_489 = arith.constant 0 : index
    %1080 = vector.load %arg2[%c5_487, %c0_488, %c0_489] : memref<9x16x128xf32, #tpu.memory_space<vmem>>, vector<1x16x128xf32>
    %1081 = vector.shape_cast %1080 : vector<1x16x128xf32> to vector<16x128xf32>
    %1082 = vector.broadcast %1069 : vector<1x128xf32> to vector<16x128xf32>
    %1083 = arith.mulf %1081, %1082 : vector<16x128xf32>
    %1084 = arith.addf %1079, %1083 : vector<16x128xf32>
    %1085 = vector.extract_strided_slice %26 {offsets = [15, 0], sizes = [1, 128], strides = [1, 1]} : vector<16x128xf32> to vector<1x128xf32>
    %1086 = vector.extract_strided_slice %0 {offsets = [15, 0], sizes = [1, 128], strides = [1, 1]} : vector<16x128xf32> to vector<1x128xf32>
    %1087 = vector.extract_strided_slice %31 {offsets = [15, 0], sizes = [1, 128], strides = [1, 1]} : vector<16x128xf32> to vector<1x128xf32>
    %c6_490 = arith.constant 6 : index
    %c0_491 = arith.constant 0 : index
    %c0_492 = arith.constant 0 : index
    %1088 = vector.load %arg2[%c6_490, %c0_491, %c0_492] : memref<9x16x128xf32, #tpu.memory_space<vmem>>, vector<1x16x128xf32>
    %1089 = vector.shape_cast %1088 : vector<1x16x128xf32> to vector<16x128xf32>
    %1090 = vector.broadcast %1085 : vector<1x128xf32> to vector<16x128xf32>
    %1091 = arith.mulf %1089, %1090 : vector<16x128xf32>
    %1092 = arith.addf %1084, %1091 : vector<16x128xf32>
    %c7_493 = arith.constant 7 : index
    %c0_494 = arith.constant 0 : index
    %c0_495 = arith.constant 0 : index
    %1093 = vector.load %arg2[%c7_493, %c0_494, %c0_495] : memref<9x16x128xf32, #tpu.memory_space<vmem>>, vector<1x16x128xf32>
    %1094 = vector.shape_cast %1093 : vector<1x16x128xf32> to vector<16x128xf32>
    %1095 = vector.broadcast %1086 : vector<1x128xf32> to vector<16x128xf32>
    %1096 = arith.mulf %1094, %1095 : vector<16x128xf32>
    %1097 = arith.addf %1092, %1096 : vector<16x128xf32>
    %c8_496 = arith.constant 8 : index
    %c0_497 = arith.constant 0 : index
    %c0_498 = arith.constant 0 : index
    %1098 = vector.load %arg2[%c8_496, %c0_497, %c0_498] : memref<9x16x128xf32, #tpu.memory_space<vmem>>, vector<1x16x128xf32>
    %1099 = vector.shape_cast %1098 : vector<1x16x128xf32> to vector<16x128xf32>
    %1100 = vector.broadcast %1087 : vector<1x128xf32> to vector<16x128xf32>
    %1101 = arith.mulf %1099, %1100 : vector<16x128xf32>
    %1102 = arith.addf %1097, %1101 : vector<16x128xf32>
    %cst_499 = arith.constant 0.000000e+00 : f32
    %1103 = vector.broadcast %cst_499 : f32 to vector<16x128xf32>
    %1104 = arith.maximumf %1102, %1103 : vector<16x128xf32>
    %c1_i32_500 = arith.constant 1 : i32
    %1105 = tpu.dynamic_rotate %1104 by %c1_i32_500 dim 1 : vector<16x128xf32>, i32 -> vector<16x128xf32>
    %cst_501 = arith.constant 0.000000e+00 : f32
    %1106 = vector.shape_cast %19 : vector<1x128xi1> to vector<1x128xi1>
    %1107 = vector.broadcast %1106 : vector<1x128xi1> to vector<16x128xi1>
    %1108 = vector.broadcast %cst_501 : f32 to vector<16x128xf32>
    %1109 = arith.select %1107, %1105, %1108 : vector<16x128xi1>, vector<16x128xf32>
    %c127_i32_502 = arith.constant 127 : i32
    %1110 = tpu.dynamic_rotate %1104 by %c127_i32_502 dim 1 : vector<16x128xf32>, i32 -> vector<16x128xf32>
    %cst_503 = arith.constant 0.000000e+00 : f32
    %1111 = vector.shape_cast %21 : vector<1x128xi1> to vector<1x128xi1>
    %1112 = vector.broadcast %1111 : vector<1x128xi1> to vector<16x128xi1>
    %1113 = vector.broadcast %cst_503 : f32 to vector<16x128xf32>
    %1114 = arith.select %1112, %1110, %1113 : vector<16x128xi1>, vector<16x128xf32>
    %1115 = tpu.concatenate %1109, %1104, %1114 in 0 : vector<16x128xf32>, vector<16x128xf32>, vector<16x128xf32> -> vector<48x128xf32>
    %1116 = arith.truncf %1115 : vector<48x128xf32> to vector<48x128xbf16>
    %1117 = tpu.concatenate %968, %1042, %1116 in 0 : vector<48x128xbf16>, vector<48x128xbf16>, vector<48x128xbf16> -> vector<144x128xbf16>
    %cst_504 = arith.constant dense<0.000000e+00> : vector<32x128xf32>
    %1118 = tpu.matmul %34, %1117, %cst_504 {dimension_numbers = #tpu.dot_dimension_numbers<[1], [0], [0], [1], [0, 0, 1, 1], [], []>} : vector<32x144xbf16>, vector<144x128xbf16>, vector<32x128xf32> -> vector<32x128xf32>
    %1119 = arith.addf %1118, %33 : vector<32x128xf32>
    %cst_505 = arith.constant 0.000000e+00 : f32
    %1120 = vector.broadcast %cst_505 : f32 to vector<32x128xf32>
    %1121 = arith.maximumf %1119, %1120 : vector<32x128xf32>
    %1122 = arith.addf %1048, %1121 : vector<32x128xf32>
    %1123 = vector.extract_strided_slice %26 {offsets = [14, 0], sizes = [1, 128], strides = [1, 1]} : vector<16x128xf32> to vector<1x128xf32>
    %1124 = vector.extract_strided_slice %0 {offsets = [14, 0], sizes = [1, 128], strides = [1, 1]} : vector<16x128xf32> to vector<1x128xf32>
    %1125 = vector.extract_strided_slice %31 {offsets = [14, 0], sizes = [1, 128], strides = [1, 1]} : vector<16x128xf32> to vector<1x128xf32>
    %c0_506 = arith.constant 0 : index
    %c0_507 = arith.constant 0 : index
    %c0_508 = arith.constant 0 : index
    %1126 = vector.load %arg2[%c0_506, %c0_507, %c0_508] : memref<9x16x128xf32, #tpu.memory_space<vmem>>, vector<1x16x128xf32>
    %1127 = vector.shape_cast %1126 : vector<1x16x128xf32> to vector<16x128xf32>
    %1128 = vector.broadcast %1123 : vector<1x128xf32> to vector<16x128xf32>
    %1129 = arith.mulf %1127, %1128 : vector<16x128xf32>
    %1130 = arith.addf %32, %1129 : vector<16x128xf32>
    %c1_509 = arith.constant 1 : index
    %c0_510 = arith.constant 0 : index
    %c0_511 = arith.constant 0 : index
    %1131 = vector.load %arg2[%c1_509, %c0_510, %c0_511] : memref<9x16x128xf32, #tpu.memory_space<vmem>>, vector<1x16x128xf32>
    %1132 = vector.shape_cast %1131 : vector<1x16x128xf32> to vector<16x128xf32>
    %1133 = vector.broadcast %1124 : vector<1x128xf32> to vector<16x128xf32>
    %1134 = arith.mulf %1132, %1133 : vector<16x128xf32>
    %1135 = arith.addf %1130, %1134 : vector<16x128xf32>
    %c2_512 = arith.constant 2 : index
    %c0_513 = arith.constant 0 : index
    %c0_514 = arith.constant 0 : index
    %1136 = vector.load %arg2[%c2_512, %c0_513, %c0_514] : memref<9x16x128xf32, #tpu.memory_space<vmem>>, vector<1x16x128xf32>
    %1137 = vector.shape_cast %1136 : vector<1x16x128xf32> to vector<16x128xf32>
    %1138 = vector.broadcast %1125 : vector<1x128xf32> to vector<16x128xf32>
    %1139 = arith.mulf %1137, %1138 : vector<16x128xf32>
    %1140 = arith.addf %1135, %1139 : vector<16x128xf32>
    %1141 = vector.extract_strided_slice %26 {offsets = [15, 0], sizes = [1, 128], strides = [1, 1]} : vector<16x128xf32> to vector<1x128xf32>
    %1142 = vector.extract_strided_slice %0 {offsets = [15, 0], sizes = [1, 128], strides = [1, 1]} : vector<16x128xf32> to vector<1x128xf32>
    %1143 = vector.extract_strided_slice %31 {offsets = [15, 0], sizes = [1, 128], strides = [1, 1]} : vector<16x128xf32> to vector<1x128xf32>
    %c3_515 = arith.constant 3 : index
    %c0_516 = arith.constant 0 : index
    %c0_517 = arith.constant 0 : index
    %1144 = vector.load %arg2[%c3_515, %c0_516, %c0_517] : memref<9x16x128xf32, #tpu.memory_space<vmem>>, vector<1x16x128xf32>
    %1145 = vector.shape_cast %1144 : vector<1x16x128xf32> to vector<16x128xf32>
    %1146 = vector.broadcast %1141 : vector<1x128xf32> to vector<16x128xf32>
    %1147 = arith.mulf %1145, %1146 : vector<16x128xf32>
    %1148 = arith.addf %1140, %1147 : vector<16x128xf32>
    %c4_518 = arith.constant 4 : index
    %c0_519 = arith.constant 0 : index
    %c0_520 = arith.constant 0 : index
    %1149 = vector.load %arg2[%c4_518, %c0_519, %c0_520] : memref<9x16x128xf32, #tpu.memory_space<vmem>>, vector<1x16x128xf32>
    %1150 = vector.shape_cast %1149 : vector<1x16x128xf32> to vector<16x128xf32>
    %1151 = vector.broadcast %1142 : vector<1x128xf32> to vector<16x128xf32>
    %1152 = arith.mulf %1150, %1151 : vector<16x128xf32>
    %1153 = arith.addf %1148, %1152 : vector<16x128xf32>
    %c5_521 = arith.constant 5 : index
    %c0_522 = arith.constant 0 : index
    %c0_523 = arith.constant 0 : index
    %1154 = vector.load %arg2[%c5_521, %c0_522, %c0_523] : memref<9x16x128xf32, #tpu.memory_space<vmem>>, vector<1x16x128xf32>
    %1155 = vector.shape_cast %1154 : vector<1x16x128xf32> to vector<16x128xf32>
    %1156 = vector.broadcast %1143 : vector<1x128xf32> to vector<16x128xf32>
    %1157 = arith.mulf %1155, %1156 : vector<16x128xf32>
    %1158 = arith.addf %1153, %1157 : vector<16x128xf32>
    %cst_524 = arith.constant 0.000000e+00 : f32
    %1159 = vector.broadcast %cst_524 : f32 to vector<16x128xf32>
    %1160 = arith.maximumf %1158, %1159 : vector<16x128xf32>
    %c1_i32_525 = arith.constant 1 : i32
    %1161 = tpu.dynamic_rotate %1160 by %c1_i32_525 dim 1 : vector<16x128xf32>, i32 -> vector<16x128xf32>
    %cst_526 = arith.constant 0.000000e+00 : f32
    %1162 = vector.shape_cast %19 : vector<1x128xi1> to vector<1x128xi1>
    %1163 = vector.broadcast %1162 : vector<1x128xi1> to vector<16x128xi1>
    %1164 = vector.broadcast %cst_526 : f32 to vector<16x128xf32>
    %1165 = arith.select %1163, %1161, %1164 : vector<16x128xi1>, vector<16x128xf32>
    %c127_i32_527 = arith.constant 127 : i32
    %1166 = tpu.dynamic_rotate %1160 by %c127_i32_527 dim 1 : vector<16x128xf32>, i32 -> vector<16x128xf32>
    %cst_528 = arith.constant 0.000000e+00 : f32
    %1167 = vector.shape_cast %21 : vector<1x128xi1> to vector<1x128xi1>
    %1168 = vector.broadcast %1167 : vector<1x128xi1> to vector<16x128xi1>
    %1169 = vector.broadcast %cst_528 : f32 to vector<16x128xf32>
    %1170 = arith.select %1168, %1166, %1169 : vector<16x128xi1>, vector<16x128xf32>
    %1171 = tpu.concatenate %1165, %1160, %1170 in 0 : vector<16x128xf32>, vector<16x128xf32>, vector<16x128xf32> -> vector<48x128xf32>
    %1172 = arith.truncf %1171 : vector<48x128xf32> to vector<48x128xbf16>
    %1173 = tpu.concatenate %1042, %1116, %1172 in 0 : vector<48x128xbf16>, vector<48x128xbf16>, vector<48x128xbf16> -> vector<144x128xbf16>
    %cst_529 = arith.constant dense<0.000000e+00> : vector<32x128xf32>
    %1174 = tpu.matmul %34, %1173, %cst_529 {dimension_numbers = #tpu.dot_dimension_numbers<[1], [0], [0], [1], [0, 0, 1, 1], [], []>} : vector<32x144xbf16>, vector<144x128xbf16>, vector<32x128xf32> -> vector<32x128xf32>
    %1175 = arith.addf %1174, %33 : vector<32x128xf32>
    %cst_530 = arith.constant 0.000000e+00 : f32
    %1176 = vector.broadcast %cst_530 : f32 to vector<32x128xf32>
    %1177 = arith.maximumf %1175, %1176 : vector<32x128xf32>
    %1178 = arith.addf %1122, %1177 : vector<32x128xf32>
    %cst_531 = arith.constant 0.000000e+00 : bf16
    %1179 = vector.broadcast %cst_531 : bf16 to vector<48x128xbf16>
    %1180 = tpu.concatenate %1116, %1172, %1179 in 0 : vector<48x128xbf16>, vector<48x128xbf16>, vector<48x128xbf16> -> vector<144x128xbf16>
    %cst_532 = arith.constant dense<0.000000e+00> : vector<32x128xf32>
    %1181 = tpu.matmul %34, %1180, %cst_532 {dimension_numbers = #tpu.dot_dimension_numbers<[1], [0], [0], [1], [0, 0, 1, 1], [], []>} : vector<32x144xbf16>, vector<144x128xbf16>, vector<32x128xf32> -> vector<32x128xf32>
    %1182 = arith.addf %1181, %33 : vector<32x128xf32>
    %cst_533 = arith.constant 0.000000e+00 : f32
    %1183 = vector.broadcast %cst_533 : f32 to vector<32x128xf32>
    %1184 = arith.maximumf %1182, %1183 : vector<32x128xf32>
    %1185 = arith.addf %1178, %1184 : vector<32x128xf32>
    %c0_534 = arith.constant 0 : index
    %c0_535 = arith.constant 0 : index
    %1186 = vector.load %arg6[%c0_534, %c0_535] : memref<32x128xf32, #tpu.memory_space<vmem>>, vector<32x128xf32>
    %1187 = arith.mulf %1185, %1186 : vector<32x128xf32>
    %cst_536 = arith.constant dense<0.000000e+00> : vector<128xf32>
    %1188 = vector.multi_reduction <add>, %1187, %cst_536 [0] : vector<32x128xf32> to vector<128xf32>
    %1189 = vector.shape_cast %1188 : vector<128xf32> to vector<1x128xf32>
    %c0_537 = arith.constant 0 : index
    %c0_538 = arith.constant 0 : index
    %1190 = memref.load %arg7[%c0_537, %c0_538] : memref<1x1xf32, #tpu.memory_space<smem>>
    %1191 = vector.broadcast %1190 : f32 to vector<1x128xf32>
    %1192 = arith.addf %1189, %1191 : vector<1x128xf32>
    %1193 = vector.shape_cast %1192 : vector<1x128xf32> to vector<1x1x128xf32>
    %c0_539 = arith.constant 0 : index
    %c0_540 = arith.constant 0 : index
    %c0_541 = arith.constant 0 : index
    %1194 = vector.load %arg8[%c0_539, %c0_540, %c0_541] : memref<1x1x128xf32, #tpu.memory_space<vmem>>, vector<1x1x128xf32>
    tpu.vector_store %arg8[%c0_539, %c0_540, %c0_541], %1193 {strides = array<i32>} : memref<1x1x128xf32, #tpu.memory_space<vmem>>, vector<1x1x128xf32>,
    return
  }
  func.func @transform_0(%arg0: i32) -> (i32, i32) {
    %c0_i32 = arith.constant 0 : i32
    %c0_i32_0 = arith.constant 0 : i32
    return %c0_i32, %arg0 : i32, i32
  }
  func.func @transform_1(%arg0: i32) -> (i32, i32, i32) {
    %c0_i32 = arith.constant 0 : i32
    %c0_i32_0 = arith.constant 0 : i32
    %c0_i32_1 = arith.constant 0 : i32
    %c0_i32_2 = arith.constant 0 : i32
    return %c0_i32, %c0_i32_0, %c0_i32_1 : i32, i32, i32
  }
  func.func @transform_2(%arg0: i32) -> (i32, i32) {
    %c0_i32 = arith.constant 0 : i32
    %c0_i32_0 = arith.constant 0 : i32
    %c0_i32_1 = arith.constant 0 : i32
    return %c0_i32, %c0_i32_0 : i32, i32
  }
  func.func @transform_3(%arg0: i32) -> (i32, i32) {
    %c0_i32 = arith.constant 0 : i32
    %c0_i32_0 = arith.constant 0 : i32
    %c0_i32_1 = arith.constant 0 : i32
    return %c0_i32, %c0_i32_0 : i32, i32
  }
  func.func @transform_4(%arg0: i32) -> (i32, i32) {
    %c0_i32 = arith.constant 0 : i32
    %c0_i32_0 = arith.constant 0 : i32
    %c0_i32_1 = arith.constant 0 : i32
    return %c0_i32, %c0_i32_0 : i32, i32
  }
  func.func @transform_5(%arg0: i32) -> (i32, i32) {
    %c0_i32 = arith.constant 0 : i32
    %c0_i32_0 = arith.constant 0 : i32
    %c0_i32_1 = arith.constant 0 : i32
    return %c0_i32, %c0_i32_0 : i32, i32
  }
  func.func @transform_6(%arg0: i32) -> (i32, i32) {
    %c0_i32 = arith.constant 0 : i32
    %c0_i32_0 = arith.constant 0 : i32
    %c0_i32_1 = arith.constant 0 : i32
    return %c0_i32, %c0_i32_0 : i32, i32
  }
  func.func @transform_7(%arg0: i32) -> (i32, i32, i32) {
    %c0_i32 = arith.constant 0 : i32
    %c0_i32_0 = arith.constant 0 : i32
    %c0_i32_1 = arith.constant 0 : i32
    return %arg0, %c0_i32, %c0_i32_0 : i32, i32, i32
  }
}

</mosaic_0001>

<bundles_post_ra>
// kernel: cnn_pallas.1
= control target key start
LH: loop header
LB: loop body
LE: loop exit
PB: predicated region body
PF: predicated region fallthrough
CT: control target
= control target key end

     0   :  { %s5099_s0 = inlined_call_operand.vmem [shape: f32[16,256], index: 0, kind: input, shape index: {}]   ;;  %s5100_s1 = inlined_call_operand.vmem [shape: f32[9,16,128], index: 1, kind: input, shape index: {}]   ;;  %s5101_s2 = inlined_call_operand.vmem [shape: f32[16,128], index: 2, kind: input, shape index: {}]   ;;  %s5102_s3 = inlined_call_operand.vmem [shape: bf16[32,144], index: 3, kind: input, shape index: {}]   ;;  %s5103_s4 = inlined_call_operand.vmem [shape: f32[32,128], index: 4, kind: input, shape index: {}]   ;;  %s5104_s5 = inlined_call_operand.vmem [shape: f32[32,128], index: 5, kind: input, shape index: {}]   ;;  %s5105_s6 = inlined_call_operand.<no memory space> [shape: f32[1,1], index: 6, kind: input, shape index: {}]   ;;  %s5106_s7 = inlined_call_operand.vmem [shape: f32[2,1,128], index: 7, kind: output, shape index: {}]  }
   0x1   :  { %12 = sst [smem:[#allocation2]] %s5105_s6 }
   0x2   :  { %s3031_s26 = smov 0   ;;  %s3033_s27 = smov 0  }
   0x3   :  { %s3035_s28 = smov 0  }
   0x4 LB: > { %s2412_s6 = sadd.s32 4294967295, %s2983_s28   ;;  %s3048_s29 = sadd.s32 1, %s2983_s28   ;;  %s2983_s28 = sphi %s3035_s28, %s5383_s28   ;;  %s2979_s27 = sphi %s3033_s27, %s5382_s27   ;;  %s2975_s26 = sphi %s3031_s26, %s5381_s26  }
   0x5   : > { %s22_s30 = ssub.s32 %s2983_s28, %s3048_s29  ;;  %s25_s8 = sadd.s32 1, %s2979_s27 }
   0x6   : > { %p23_p0 = scmp.eq.s32.totalorder %s22_s30, 0  ;;  %p32_p1 = scmp.ne.s32.totalorder %s2979_s27, %s2975_s26 }
   0x7   : > { %p33_p2 = scmp.eq.s32.totalorder %s2983_s28, 0  ;;  %p2415_p4 = scmp.ge.s32.totalorder %s2983_s28, 2 }
   0x8   : > { %s3057_s9 = scalar_select %p23_p0, %s2979_s27, %s25_s8  }
   0x9   : > { %p34_p3 = por %p33_p2, %p32_p1  ;;  %228 = sbr.rel (%p2415_p4) target bundleno = 23 (0x17), region = 40 }
  0x10   : > { %231 = sbr.rel (!%p34_p3) target bundleno = 23 (0x17), region = 44  ;;  %s233_s10 = sand.u32 (%p34_p3), 1, %s2979_s27  }
  0x11   : > { %s2417_s11 = sshll.u32 (%p34_p3), %s2983_s28, 3  ;;  %s2416_s12 = sshll.u32 (%p34_p3), %s233_s10, 4 }
  0x12   : > { %s237_s15 = scalar_lea.vmem (%p34_p3), %s5099_s0, %s2417_s11  ;;  %s235_s16 = scalar_lea.vmem (%p34_p3), [#allocation3], %s2416_s12 }
  0x13   : > { %v267_v0 = vld [vmem:[%s237_s15] sm:$0xff] (%p34_p3)  ;;  %v269_v1 = vld [vmem:[%s237_s15 + $0x10] sm:$0xff] (%p34_p3) }
  0x14   : > { %268 = vst [vmem:[%s235_s16] sm:$0xff] (%p34_p3), %v267_v0  ;;  %270 = vst [vmem:[%s235_s16 + $0x8] sm:$0xff] (%p34_p3), %v269_v1 }
  0x17 PF: > { %p2418_p5 = scmp.ge.s32.totalorder %s2983_s28, 1  ;;  %p275_p6 = scmp.lt.s32.totalorder %s2983_s28, 3 }
  0x19   : > { %p276_p7 = pnand %p2418_p5, %p275_p6 }
  0x1b   : > { %279 = sbr.rel (%p276_p7) target bundleno = 853 (0x355), region = 82 }
  0x22   : > { %s282_s17 = sand.u32 1, %s2975_s26   ;;  %s2985_s20 = smov 1   ;;  %v5107_v3 = vmov 0   ;;  %v317_v4 = vlaneseq  ;;  %v3094_v10 = vld [vmem:[%s5100_s1 + $0x40] sm:$0xff]  ;;  %v3103_v13 = vld [vmem:[%s5100_s1 + $0x48] sm:$0xff]  ;;  %v3108_v14 = vld [vmem:[%s5100_s1 + $0x10] sm:$0xff] }
  0x23   : > { %s3068_s18 = sshll.u32 %s282_s17, 4  ;;  %s2986_s21 = smov 127   ;;  %540 = vmatprep.subr.bf16.mxu0 %v5107_v3  ;;  %662 = vmatprep.subr.bf16.mxu1 %v5107_v3  ;;  %5170 = vst [vmem:[#allocation6_spill] sm:$0xff] %v3094_v10  ;;  %5172 = vst [vmem:[#allocation8_spill] sm:$0xff] %v3103_v13  ;;  %v3113_v15 = vld [vmem:[%s5100_s1 + $0x18] sm:$0xff]  ;;  %v3122_v18 = vld [vmem:[%s5100_s1 + $0x70] sm:$0xff] }
  0x24   : > { %s284_s19 = scalar_lea.vmem [#allocation3], %s3068_s18  ;;  %541 = vmatpush1.bf16.msra.mxu0 %v5107_v3  ;;  %v363_v5 = vshrl.u32 %v317_v4, 7  ;;  %v318_v6 = vand.u32 127, %v317_v4  ;;  %5173 = vst [vmem:[#allocation9_spill] sm:$0xff] %v3108_v14  ;;  %5174 = vst [vmem:[#allocation10_spill] sm:$0xff] %v3113_v15  ;;  %v3127_v19 = vld [vmem:[%s5100_s1 + $0x78] sm:$0xff] }
  0x25   : > { %v3073_v2 = vld [vmem:[%s284_s19] sm:$0xff]  ;;  %542 = vmatprep.subr.bf16.mxu0 %v5107_v3  ;;  %5177 = vst [vmem:[#allocation13_spill] sm:$0xff] %v3122_v18  ;;  %5178 = vst [vmem:[#allocation14_spill] sm:$0xff] %v3127_v19  ;;  %v5182_v25 = vmov 0  ;;  %v5185_v42 = vmov 0  ;;  %vm533_vm2 = vcmask 130048  }
  0x26   : > { %333 = vrot.lane.b32.xlu0 %v3073_v2, %s2985_s20  ;;  %v3087_v7 = vsub.s32 0, %v363_v5  ;;  %v323_v8 = vand.u32 15, %v318_v6  ;;  %v3089_v9 = vsub.s32 1, %v363_v5  ;;  %v3098_v12 = vsub.s32 2, %v363_v5  ;;  %s2355_s16 = sld [smem:[#allocation2]]  ;;  %p311_p8 = scmp.lt.s32.totalorder %s2412_s6, 1 }
  0x27   : > { %v3115_v16 = vsub.s32 3, %v363_v5  ;;  %v3117_v17 = vsub.s32 4, %v363_v5  ;;  %v3131_v21 = vsub.s32 5, %v363_v5  ;;  %v3133_v22 = vsub.s32 6, %v363_v5 }
  0x28   : > { %543 = vmatpush1.bf16.msra.mxu0 %v5107_v3  ;;  %5168 = vst [vmem:[#allocation4_spill] sm:$0xff] %v3087_v7  ;;  %5169 = vst [vmem:[#allocation5_spill] sm:$0xff] %v3089_v9  ;;  %v376_v11 = vrot.slane %v3073_v2, %v3087_v7  ;;  %v409_v20 = vrot.slane %v3073_v2, %v3089_v9  ;;  %v3135_v23 = vsub.s32 7, %v363_v5  ;;  %vm3139_vm0 = vcmp.ne.s32.totalorder %v323_v8, 0  ;;  %s5385_s6 = smov (!%p311_p8, %s2412_s6), 1 }
  0x29   : > { %544 = vmatprep.subr.bf16.mxu0 %v5107_v3  ;;  %5171 = vst [vmem:[#allocation7_spill] sm:$0xff] %v3098_v12  ;;  %5175 = vst [vmem:[#allocation11_spill] sm:$0xff] %v3115_v16  ;;  %v485_v24 = vrot.slane %v3073_v2, %v3098_v12  ;;  %v5183_v25 = vsel %vm3139_vm0, 4294967295, %v5182_v25  ;;  %v632_v33 = vrot.slane %v3073_v2, %v3115_v16  ;;  %vm3189_vm1 = vcmp.ne.s32.totalorder %v323_v8, 15  ;;  %s313_s23 = scalar_lea.vmem %s5106_s7, %s5385_s6 }
  0x2a   : > { %341 = vrot.lane.b32.xlu0 %v3073_v2, %s2986_s21  ;;  %5176 = vst [vmem:[#allocation12_spill] sm:$0xff] %v3117_v17  ;;  %5179 = vst [vmem:[#allocation15_spill] sm:$0xff] %v3131_v21  ;;  %v3144_v26 = vmul.f32 %v3094_v10, %v376_v11  ;;  %v3147_v27 = vmul.f32 %v3103_v13, %v376_v11  ;;  %v3150_v28 = vmul.f32 %v3108_v14, %v376_v11 }
  0x2b   : > { %5180 = vst [vmem:[#allocation16_spill] sm:$0xff] %v3133_v22  ;;  %5181 = vst [vmem:[#allocation17_spill] sm:$0xff] %v3135_v23  ;;  %v3153_v29 = vmul.f32 %v3113_v15, %v376_v11  ;;  %v3156_v30 = vmul.f32 %v3122_v18, %v409_v20  ;;  %v3159_v31 = vmul.f32 %v3127_v19, %v409_v20  ;;  %v5186_v42 = vsel %vm3189_vm1, 4294967295, %v5185_v42 }
  0x2c   : > { %545 = vmatpush1.bf16.msra.mxu0 %v5107_v3  ;;  %5184 = vst [vmem:[#allocation18_spill] sm:$0xff] %v5183_v25  ;;  %v3162_v32 = vmul.f32 %v3094_v10, %v409_v20  ;;  %v3167_v34 = vmul.f32 %v3103_v13, %v409_v20  ;;  %v3170_v35 = vmul.f32 %v3108_v14, %v409_v20  ;;  %5187 = vst [vmem:[#allocation19_spill] sm:$0xff] %v5186_v42  ;;  %v3307_v25 = vld [vmem:[%s5100_s1 + $0x8] sm:$0xff] }
  0x2d   : > { %546 = vmatprep.subr.bf16.mxu0 %v5107_v3  ;;  %v3173_v36 = vmul.f32 %v3113_v15, %v409_v20  ;;  %v3176_v37 = vmul.f32 %v3094_v10, %v485_v24  ;;  %v3179_v38 = vmul.f32 %v3103_v13, %v485_v24  ;;  %v3182_v39 = vmul.f32 %v3108_v14, %v485_v24  ;;  %v3302_v3 = vld [vmem:[%s5100_s1] sm:$0xff]  ;;  %vm3778_vm3 = vmpackc.low %vm3139_vm0, %vm3139_vm0 }
  0x2e   : > { %v3185_v40 = vmul.f32 %v3113_v15, %v485_v24  ;;  %v754_v41 = vrot.slane %v3073_v2, %v3117_v17  ;;  %v3194_v43 = vmul.f32 %v3122_v18, %v485_v24  ;;  %v3197_v44 = vmul.f32 %v3127_v19, %v485_v24  ;;  %vm3849_vm4 = vmpackc.low %vm3189_vm1, %vm3189_vm1 }
  0x2f   : > { %v3200_v45 = vmul.f32 %v3122_v18, %v632_v33  ;;  %v3203_v46 = vmul.f32 %v3127_v19, %v632_v33  ;;  %v3206_v47 = vmul.f32 %v3094_v10, %v632_v33  ;;  %v3209_v48 = vmul.f32 %v3108_v14, %v632_v33 }
  0x30   : > { %v3212_v49 = vmul.f32 %v3113_v15, %v632_v33  ;;  %v876_v50 = vrot.slane %v3073_v2, %v3131_v21  ;;  %v3217_v51 = vmul.f32 %v3103_v13, %v632_v33  ;;  %v3220_v52 = vmul.f32 %v3122_v18, %v754_v41  ;;  %v3286_v33 = vld [vmem:[%s5100_s1 + $0x38] sm:$0xff] }
  0x31   : > { %5188 = vst [vmem:[#allocation20_spill] sm:$0xff] %v3209_v48  ;;  %v3223_v53 = vmul.f32 %v3127_v19, %v754_v41  ;;  %v998_v54 = vrot.slane %v3073_v2, %v3133_v22  ;;  %v3228_v55 = vmul.f32 %v3094_v10, %v754_v41  ;;  %v3231_v56 = vmul.f32 %v3103_v13, %v754_v41 }
  0x32   : > { %5189 = vst [vmem:[#allocation21_spill] sm:$0xff] %v3212_v49  ;;  %5190 = vst [vmem:[#allocation22_spill] sm:$0xff] %v3217_v51  ;;  %v3234_v57 = vmul.f32 %v3108_v14, %v754_v41  ;;  %v3237_v58 = vmul.f32 %v3113_v15, %v754_v41  ;;  %v3240_v59 = vmul.f32 %v3122_v18, %v876_v50 }
  0x33   : > { %5191 = vst [vmem:[#allocation23_spill] sm:$0xff] %v3220_v52  ;;  %5192 = vst [vmem:[#allocation24_spill] sm:$0xff] %v3223_v53  ;;  %v3243_v60 = vmul.f32 %v3127_v19, %v876_v50  ;;  %v3246_v61 = vmul.f32 %v3094_v10, %v876_v50  ;;  %v3249_v62 = vmul.f32 %v3103_v13, %v876_v50 }
  0x34   : > { %5193 = vst [vmem:[#allocation25_spill] sm:$0xff] %v3228_v55  ;;  %5194 = vst [vmem:[#allocation26_spill] sm:$0xff] %v3231_v56  ;;  %v3252_v63 = vmul.f32 %v3122_v18, %v998_v54  ;;  %v3255_v0 = vmul.f32 %v3108_v14, %v876_v50  ;;  %v3258_v1 = vmul.f32 %v3113_v15, %v876_v50 }
  0x35   : > { %5195 = vst [vmem:[#allocation27_spill] sm:$0xff] %v3234_v57  ;;  %5196 = vst [vmem:[#allocation28_spill] sm:$0xff] %v3237_v58  ;;  %v3262_v4 = vrot.slane %v3073_v2, %v3135_v23  ;;  %v3265_v6 = vmul.f32 %v3127_v19, %v998_v54  ;;  %v3268_v8 = vmul.f32 %v3094_v10, %v998_v54  ;;  %v3281_v2 = vld [vmem:[%s5100_s1 + $0x30] sm:$0xff] }
  0x36   : > { %5197 = vst [vmem:[#allocation29_spill] sm:$0xff] %v3240_v59  ;;  %5198 = vst [vmem:[#allocation30_spill] sm:$0xff] %v3243_v60  ;;  %v3271_v11 = vmul.f32 %v3103_v13, %v998_v54  ;;  %v3274_v20 = vmul.f32 %v3108_v14, %v998_v54 }
  0x37   : > { %5199 = vst [vmem:[#allocation31_spill] sm:$0xff] %v3246_v61  ;;  %5200 = vst [vmem:[#allocation32_spill] sm:$0xff] %v3249_v62  ;;  %v3290_v41 = vmul.f32 %v3122_v18, %v3262_v4  ;;  %v3294_v50 = vmul.f32 %v3127_v19, %v3262_v4  ;;  %v3320_v19 = vmul.f32 %v3094_v10, %v3262_v4  ;;  %v3341_v10 = vld [vmem:[%s5100_s1 + $0x68] sm:$0xff] }
  0x38   : > { %5201 = vst [vmem:[#allocation33_spill] sm:$0xff] %v3252_v63  ;;  %5202 = vst [vmem:[#allocation34_spill] sm:$0xff] %v3255_v0  ;;  %v3373_v0 = vld [vmem:[%s5100_s1 + $0x58] sm:$0xff] }
  0x39   : > { %5203 = vst [vmem:[#allocation35_spill] sm:$0xff] %v3258_v1  ;;  %5204 = vst [vmem:[#allocation36_spill] sm:$0xff] %v3262_v4 }
  0x3a   : > { %5205 = vst [vmem:[#allocation37_spill] sm:$0xff] %v3265_v6  ;;  %5206 = vst [vmem:[#allocation38_spill] sm:$0xff] %v3268_v8 }
  0x3b   : > { %5207 = vst [vmem:[#allocation39_spill] sm:$0xff] %v3271_v11  ;;  %5208 = vst [vmem:[#allocation40_spill] sm:$0xff] %v3274_v20 }
  0x3c   : > { %5209 = vst [vmem:[#allocation41_spill] sm:$0xff] %v3290_v41  ;;  %5210 = vst [vmem:[#allocation42_spill] sm:$0xff] %v3294_v50 }
  0x3d   : > { %5212 = vst [vmem:[#allocation44_spill] sm:$0xff] %v3320_v19 }
  0x98   : > { %v334_v5 = vpop.permute.xlu0 %333 }
  0x99   : > { %v339_v24 = vsel %vm3139_vm0, %v334_v5, 0.0  ;;  %v3297_v5 = vmul.f32 %v3113_v15, %v998_v54  ;;  %v3316_v54 = vld [vmem:[%s5100_s1 + $0x60] sm:$0xff]  ;;  %v3324_v15 = vmul.f32 %v3103_v13, %v3262_v4 }
  0x9a   : > { %v365_v18 = vrot.slane %v339_v24, %v3087_v7  ;;  %v3311_v41 = vrot.slane %v339_v24, %v3089_v9  ;;  %v3327_v50 = vrot.slane %v339_v24, %v3098_v12  ;;  %v3333_v20 = vrot.slane %v339_v24, %v3117_v17  ;;  %v3352_v4 = vld [vmem:[%s5101_s2] sm:$0xff] }
  0x9b   : > { %5211 = vst [vmem:[#allocation43_spill] sm:$0xff] %v3297_v5  ;;  %5213 = vst [vmem:[#allocation45_spill] sm:$0xff] %v3324_v15  ;;  %v3330_v5 = vrot.slane %v339_v24, %v3115_v16  ;;  %v3336_v14 = vrot.slane %v339_v24, %v3131_v21  ;;  %v3344_v13 = vrot.slane %v339_v24, %v3133_v22 }
  0x9c   : > { %v3347_v15 = vrot.slane %v339_v24, %v3135_v23  ;;  %v342_v19 = vpop.permute.xlu0 %341  ;;  %v366_v11 = vmul.f32 %v3281_v2, %v365_v18  ;;  %v367_v8 = vmul.f32 %v3286_v33, %v365_v18  ;;  %v444_v6 = vmul.f32 %v3302_v3, %v365_v18  ;;  %v3363_v24 = vld [vmem:[%s5101_s2 + $0x8] sm:$0xff] }
  0x9d   : > { %5214 = vst [vmem:[#allocation46_spill] sm:$0xff] %v3336_v14  ;;  %5215 = vst [vmem:[#allocation47_spill] sm:$0xff] %v3344_v13  ;;  %v445_v63 = vmul.f32 %v3307_v25, %v365_v18  ;;  %v347_v1 = vsel %vm3189_vm1, %v342_v19, 0.0  ;;  %v399_v18 = vmul.f32 %v3316_v54, %v3311_v41  ;;  %v400_v62 = vmul.f32 %v3341_v10, %v3311_v41 }
  0x9e   : > { %5216 = vst [vmem:[#allocation48_spill] sm:$0xff] %v3347_v15  ;;  %v3368_v15 = vld [vmem:[%s5100_s1 + $0x50] sm:$0xff]  ;;  %v387_v19 = vrot.slane %v347_v1, %v3087_v7  ;;  %v420_v42 = vrot.slane %v347_v1, %v3089_v9  ;;  %v462_v61 = vmul.f32 %v3281_v2, %v3311_v41  ;;  %v3384_v60 = vrot.slane %v347_v1, %v3098_v12  ;;  %v3398_v9 = vld [vmem:[%s5100_s1 + $0x20] sm:$0xff]  ;;  %v3403_v7 = vld [vmem:[%s5100_s1 + $0x28] sm:$0xff] }
  0x9f   : > { %v3387_v59 = vrot.slane %v347_v1, %v3115_v16  ;;  %v3390_v13 = vrot.slane %v347_v1, %v3117_v17  ;;  %v3393_v58 = vrot.slane %v347_v1, %v3131_v21  ;;  %v368_v12 = vadd.f32 %v366_v11, %v3352_v4  ;;  %v3412_v21 = vld [vmem:[%s5100_s1 + $0x80] sm:$0xff] }
  0xa0   : > { %v369_v16 = vadd.f32 %v367_v8, %v3363_v24  ;;  %v388_v17 = vmul.f32 %v3368_v15, %v387_v19  ;;  %v389_v57 = vmul.f32 %v3373_v0, %v387_v19  ;;  %v3420_v56 = vrot.slane %v347_v1, %v3133_v22 }
  0xa1   : > { %5217 = vst [vmem:[#allocation49_spill] sm:$0xff] %v3393_v58  ;;  %v3417_v58 = vld [vmem:[%s5100_s1 + $0x88] sm:$0xff]  ;;  %v3423_v11 = vrot.slane %v347_v1, %v3135_v23  ;;  %v446_v8 = vadd.f32 %v444_v6, %v3352_v4  ;;  %v447_v55 = vadd.f32 %v445_v63, %v3363_v24  ;;  %v379_v14 = vadd.f32 %v3144_v26, %v368_v12 }
  0xa2   : > { %5218 = vst [vmem:[#allocation50_spill] sm:$0xff] %v3420_v56  ;;  %v380_v53 = vadd.f32 %v3147_v27, %v369_v16  ;;  %v458_v52 = vmul.f32 %v3398_v9, %v387_v19  ;;  %v459_v49 = vmul.f32 %v3403_v7, %v387_v19  ;;  %v421_v48 = vmul.f32 %v3412_v21, %v420_v42 }
  0xa3   : > { %5219 = vst [vmem:[#allocation51_spill] sm:$0xff] %v3423_v11  ;;  %v422_v22 = vmul.f32 %v3417_v58, %v420_v42  ;;  %v453_v56 = vadd.f32 %v3150_v28, %v446_v8  ;;  %v454_v1 = vadd.f32 %v3153_v29, %v447_v55  ;;  %v390_v23 = vadd.f32 %v388_v17, %v379_v14 }
  0xa4   : > { %v391_v6 = vadd.f32 %v389_v57, %v380_v53  ;;  %v463_v63 = vmul.f32 %v3286_v33, %v3311_v41  ;;  %v470_v12 = vmul.f32 %v3368_v15, %v420_v42  ;;  %v471_v27 = vmul.f32 %v3373_v0, %v420_v42 }
  0xa5   : > { %v460_v16 = vadd.f32 %v458_v52, %v453_v56  ;;  %v461_v26 = vadd.f32 %v459_v49, %v454_v1  ;;  %v478_v19 = vmul.f32 %v3316_v54, %v3327_v50  ;;  %v401_v11 = vadd.f32 %v399_v18, %v390_v23 }
  0xa6   : > { %v402_v51 = vadd.f32 %v400_v62, %v391_v6  ;;  %v479_v28 = vmul.f32 %v3341_v10, %v3327_v50  ;;  %v597_v14 = vmul.f32 %v3302_v3, %v3311_v41  ;;  %v494_v53 = vmul.f32 %v3412_v21, %v3384_v60 }
  0xa7   : > { %v464_v17 = vadd.f32 %v462_v61, %v460_v16  ;;  %v465_v29 = vadd.f32 %v463_v63, %v461_v26  ;;  %v598_v49 = vmul.f32 %v3307_v25, %v3311_v41  ;;  %v412_v52 = vadd.f32 %v3156_v30, %v401_v11 }
  0xa8   : > { %v413_v55 = vadd.f32 %v3159_v31, %v402_v51  ;;  %v599_v23 = vadd.f32 %v597_v14, %v3352_v4  ;;  %v605_v56 = vmul.f32 %v3398_v9, %v420_v42  ;;  %v606_v18 = vmul.f32 %v3403_v7, %v420_v42 }
  0xa9   : > { %v468_v57 = vadd.f32 %v3162_v32, %v464_v17  ;;  %v469_v62 = vadd.f32 %v3167_v34, %v465_v29  ;;  %v600_v61 = vadd.f32 %v598_v49, %v3363_v24  ;;  %v3457_v8 = vadd.f32 %v421_v48, %v412_v52 }
  0xaa   : > { %v3459_v1 = vadd.f32 %v422_v22, %v413_v55  ;;  %v495_v30 = vmul.f32 %v3417_v58, %v3384_v60  ;;  %v603_v31 = vadd.f32 %v3170_v35, %v599_v23  ;;  %v609_v32 = vmul.f32 %v3281_v2, %v3327_v50 }
  0xab   : > { %v472_v51 = vadd.f32 %v470_v12, %v468_v57  ;;  %v473_v41 = vadd.f32 %v471_v27, %v469_v62  ;;  %v604_v11 = vadd.f32 %v3173_v36, %v600_v61  ;;  %v425_v34 = vmax.f32 %v3457_v8, 0.0 }
  0xac   : > { %v426_v42 = vmax.f32 %v3459_v1, 0.0  ;;  %v607_v48 = vadd.f32 %v605_v56, %v603_v31  ;;  %v610_v22 = vmul.f32 %v3286_v33, %v3327_v50  ;;  %v617_v35 = vmul.f32 %v3368_v15, %v3384_v60 }
  0xad   : > { %v480_v6 = vadd.f32 %v478_v19, %v472_v51  ;;  %v481_v63 = vadd.f32 %v479_v28, %v473_v41  ;;  %v608_v16 = vadd.f32 %v606_v18, %v604_v11  ;;  %v618_v26 = vmul.f32 %v3373_v0, %v3384_v60 }
  0xae   : > { %v2777_v36 = vpack.i.bf16 %v426_v42, %v425_v34  ;;  %v611_v12 = vadd.f32 %v609_v32, %v607_v48  ;;  %v625_v27 = vmul.f32 %v3316_v54, %v3330_v5  ;;  %v626_v29 = vmul.f32 %v3341_v10, %v3330_v5 }
  0xaf   : > { %v488_v14 = vadd.f32 %v3194_v43, %v480_v6  ;;  %v489_v19 = vadd.f32 %v3197_v44, %v481_v63  ;;  %v612_v28 = vadd.f32 %v610_v22, %v608_v16  ;;  %v719_v49 = vmul.f32 %v3327_v50, %v3302_v3 }
  0xb0   : > { %2778 = vrot.lane.b32.xlu1 %v2777_v36, %s2985_s20  ;;  %v615_v17 = vadd.f32 %v3176_v37, %v611_v12  ;;  %v720_v52 = vmul.f32 %v3327_v50, %v3307_v25  ;;  %v727_v44 = vmul.f32 %v3398_v9, %v3384_v60  ;;  %v728_v62 = vmul.f32 %v3403_v7, %v3384_v60 }
  0xb1   : > { %v3491_v55 = vadd.f32 %v494_v53, %v488_v14  ;;  %v3493_v23 = vadd.f32 %v495_v30, %v489_v19  ;;  %v616_v43 = vadd.f32 %v3179_v38, %v612_v28  ;;  %v721_v37 = vadd.f32 %v719_v49, %v3352_v4 }
  0xb2   : > { %v619_v56 = vadd.f32 %v617_v35, %v615_v17  ;;  %v722_v57 = vadd.f32 %v720_v52, %v3363_v24  ;;  %v641_v18 = vmul.f32 %v3412_v21, %v3387_v59  ;;  %v642_v30 = vmul.f32 %v3417_v58, %v3387_v59  ;;  %v5220_v17 = vld [vmem:[#allocation22_spill] sm:$0xff] }
  0xb3   : > { %v498_v61 = vmax.f32 %v3491_v55, 0.0  ;;  %v499_v50 = vmax.f32 %v3493_v23, 0.0  ;;  %v620_v53 = vadd.f32 %v618_v26, %v616_v43  ;;  %v725_v31 = vadd.f32 %v3182_v39, %v721_v37 }
  0xb4   : > { %2783 = vrot.lane.b32.xlu1 %v2777_v36, %s2986_s21  ;;  %v627_v38 = vadd.f32 %v625_v27, %v619_v56  ;;  %v726_v51 = vadd.f32 %v3185_v40, %v722_v57  ;;  %v731_v11 = vmul.f32 %v3281_v2, %v3330_v5  ;;  %v732_v32 = vmul.f32 %v3286_v33, %v3330_v5 }
  0xb5   : > { %v2787_v60 = vpack.i.bf16 %v499_v50, %v498_v61  ;;  %v628_v41 = vadd.f32 %v626_v29, %v620_v53  ;;  %v729_v22 = vadd.f32 %v727_v44, %v725_v31  ;;  %v739_v40 = vmul.f32 %v3368_v15, %v3387_v59  ;;  %v5221_v53 = vld [vmem:[#allocation20_spill] sm:$0xff] }
  0xb6   : > { %v635_v48 = vadd.f32 %v3200_v45, %v627_v38  ;;  %v730_v6 = vadd.f32 %v728_v62, %v726_v51  ;;  %v740_v63 = vmul.f32 %v3373_v0, %v3387_v59  ;;  %v747_v16 = vmul.f32 %v3316_v54, %v3333_v20  ;;  %v5222_v38 = vld [vmem:[#allocation21_spill] sm:$0xff] }
  0xb7   : > { %2788 = vrot.lane.b32.xlu0 %v2787_v60, %s2985_s20  ;;  %v636_v39 = vadd.f32 %v3203_v46, %v628_v41  ;;  %v733_v45 = vadd.f32 %v731_v11, %v729_v22  ;;  %v748_v12 = vmul.f32 %v3341_v10, %v3333_v20  ;;  %v763_v46 = vmul.f32 %v3412_v21, %v3390_v13 }
  0xb8   : > { %2793 = vrot.lane.b32.xlu1 %v2787_v60, %s2986_s21  ;;  %v3529_v35 = vadd.f32 %v641_v18, %v635_v48  ;;  %v734_v36 = vadd.f32 %v732_v32, %v730_v6  ;;  %v841_v27 = vmul.f32 %v3330_v5, %v3302_v3  ;;  %v842_v14 = vmul.f32 %v3330_v5, %v3307_v25  ;;  %v5223_v48 = vld [vmem:[#allocation23_spill] sm:$0xff]  ;;  %v5224_v6 = vld [vmem:[#allocation24_spill] sm:$0xff] }
  0xb9   : > { %v3533_v26 = vadd.f32 %v642_v30, %v636_v39  ;;  %v737_v28 = vadd.f32 %v3206_v47, %v733_v45  ;;  %v849_v49 = vmul.f32 %v3398_v9, %v3387_v59  ;;  %v850_v56 = vmul.f32 %v3403_v7, %v3387_v59 }
  0xba   : > { %v645_v19 = vmax.f32 %v3529_v35, 0.0  ;;  %v738_v29 = vadd.f32 %v5220_v17, %v734_v36  ;;  %v843_v43 = vadd.f32 %v841_v27, %v3352_v4  ;;  %v844_v44 = vadd.f32 %v842_v14, %v3363_v24 }
  0xbb   : > { %v646_v52 = vmax.f32 %v3533_v26, 0.0  ;;  %v741_v37 = vadd.f32 %v739_v40, %v737_v28  ;;  %v764_v57 = vmul.f32 %v3417_v58, %v3390_v13  ;;  %v853_v47 = vmul.f32 %v3281_v2, %v3333_v20  ;;  %v3573_v40 = vld [vmem:[%s284_s19 + $0x8] sm:$0xff] }
  0xbc   : > { %v742_v5 = vadd.f32 %v740_v63, %v738_v29  ;;  %v847_v18 = vadd.f32 %v5221_v53, %v843_v43  ;;  %v848_v30 = vadd.f32 %v5222_v38, %v844_v44  ;;  %v854_v51 = vmul.f32 %v3286_v33, %v3333_v20  ;;  %v5225_v63 = vld [vmem:[#allocation46_spill] sm:$0xff]  ;;  %v5226_v43 = vld [vmem:[#allocation25_spill] sm:$0xff]  ;;  %v5229_v38 = vld [vmem:[#allocation27_spill] sm:$0xff] }
  0xbd   : > { %v2797_v62 = vpack.i.bf16 %v646_v52, %v645_v19  ;;  %v749_v31 = vadd.f32 %v747_v16, %v741_v37  ;;  %v861_v60 = vmul.f32 %v3368_v15, %v3390_v13  ;;  %v862_v32 = vmul.f32 %v3373_v0, %v3390_v13 }
  0xbe   : > { %v750_v59 = vadd.f32 %v748_v12, %v742_v5  ;;  %v851_v41 = vadd.f32 %v849_v49, %v847_v18  ;;  %v852_v11 = vadd.f32 %v850_v56, %v848_v30  ;;  %v869_v16 = vmul.f32 %v3316_v54, %v5225_v63  ;;  %v5227_v56 = vld [vmem:[#allocation26_spill] sm:$0xff] }
  0xbf   : > { %2798 = vrot.lane.b32.xlu0 %v2797_v62, %s2985_s20  ;;  %2803 = vrot.lane.b32.xlu1 %v2797_v62, %s2986_s21  ;;  %v757_v22 = vadd.f32 %v5223_v48, %v749_v31  ;;  %v870_v45 = vmul.f32 %v3341_v10, %v5225_v63  ;;  %v963_v27 = vmul.f32 %v3333_v20, %v3302_v3  ;;  %v5230_v31 = vld [vmem:[#allocation28_spill] sm:$0xff] }
  0xc0   : > { %v758_v39 = vadd.f32 %v5224_v6, %v750_v59  ;;  %v855_v36 = vadd.f32 %v853_v47, %v851_v41  ;;  %v856_v12 = vadd.f32 %v854_v51, %v852_v11  ;;  %v964_v14 = vmul.f32 %v3333_v20, %v3307_v25  ;;  %v5228_v47 = vld [vmem:[#allocation49_spill] sm:$0xff] }
  0xc1   : > { %v3583_v28 = vadd.f32 %v763_v46, %v757_v22  ;;  %v971_v29 = vmul.f32 %v3398_v9, %v3390_v13  ;;  %v972_v49 = vmul.f32 %v3403_v7, %v3390_v13  ;;  %v965_v5 = vadd.f32 %v963_v27, %v3352_v4  ;;  %v5232_v27 = vld [vmem:[#allocation29_spill] sm:$0xff] }
  0xc2   : > { %v3585_v17 = vadd.f32 %v764_v57, %v758_v39  ;;  %v859_v44 = vadd.f32 %v5226_v43, %v855_v36  ;;  %v860_v37 = vadd.f32 %v5227_v56, %v856_v12  ;;  %v966_v20 = vadd.f32 %v964_v14, %v3363_v24  ;;  %v5231_v36 = vld [vmem:[#allocation47_spill] sm:$0xff]  ;;  %v5233_v43 = vld [vmem:[#allocation30_spill] sm:$0xff] }
  0xc3   : > { %335 = vrot.lane.b32.xlu1 %v3573_v40, %s2985_s20  ;;  %v767_v46 = vmax.f32 %v3583_v28, 0.0  ;;  %v885_v62 = vmul.f32 %v3412_v21, %v5228_v47  ;;  %v886_v13 = vmul.f32 %v3417_v58, %v5228_v47  ;;  %v969_v30 = vadd.f32 %v5229_v38, %v965_v5 }
  0xc4   : > { %v768_v57 = vmax.f32 %v3585_v17, 0.0  ;;  %v863_v53 = vadd.f32 %v861_v60, %v859_v44  ;;  %v864_v18 = vadd.f32 %v862_v32, %v860_v37  ;;  %v970_v59 = vadd.f32 %v5230_v31, %v966_v20  ;;  %v5234_v44 = vld [vmem:[#allocation50_spill] sm:$0xff] }
  0xc5   : > { %v975_v41 = vmul.f32 %v3281_v2, %v5225_v63  ;;  %v976_v11 = vmul.f32 %v3286_v33, %v5225_v63  ;;  %v973_v6 = vadd.f32 %v971_v29, %v969_v30  ;;  %v983_v32 = vmul.f32 %v3368_v15, %v5228_v47  ;;  %v5236_v30 = vld [vmem:[#allocation32_spill] sm:$0xff] }
  0xc6   : > { %v2807_v51 = vpack.i.bf16 %v768_v57, %v767_v46  ;;  %v871_v48 = vadd.f32 %v869_v16, %v863_v53  ;;  %v872_v22 = vadd.f32 %v870_v45, %v864_v18  ;;  %v974_v60 = vadd.f32 %v972_v49, %v970_v59  ;;  %v5235_v18 = vld [vmem:[#allocation31_spill] sm:$0xff] }
  0xc7   : > { %v984_v39 = vmul.f32 %v3373_v0, %v5228_v47  ;;  %v991_v12 = vmul.f32 %v3316_v54, %v5231_v36  ;;  %v977_v45 = vadd.f32 %v975_v41, %v973_v6  ;;  %v992_v49 = vmul.f32 %v3341_v10, %v5231_v36  ;;  %v5237_v6 = vld [vmem:[#allocation34_spill] sm:$0xff] }
  0xc8   : > { %2808 = vrot.lane.b32.xlu0 %v2807_v51, %s2985_s20  ;;  %2813 = vrot.lane.b32.xlu1 %v2807_v51, %s2986_s21  ;;  %v879_v14 = vadd.f32 %v5232_v27, %v871_v48  ;;  %v880_v16 = vadd.f32 %v5233_v43, %v872_v22  ;;  %v978_v29 = vadd.f32 %v976_v11, %v974_v60  ;;  %v5238_v27 = vld [vmem:[#allocation35_spill] sm:$0xff] }
  0xc9   : > { %v1007_v56 = vmul.f32 %v3412_v21, %v5234_v44  ;;  %v1085_v37 = vmul.f32 %v5225_v63, %v3302_v3  ;;  %v1086_v5 = vmul.f32 %v5225_v63, %v3307_v25  ;;  %v981_v38 = vadd.f32 %v5235_v18, %v977_v45  ;;  %v5239_v18 = vld [vmem:[#allocation33_spill] sm:$0xff] }
  0xca   : > { %v3631_v20 = vadd.f32 %v885_v62, %v879_v14  ;;  %v3633_v53 = vadd.f32 %v886_v13, %v880_v16  ;;  %v982_v31 = vadd.f32 %v5236_v30, %v978_v29  ;;  %v1093_v41 = vmul.f32 %v3398_v9, %v5228_v47  ;;  %v5240_v30 = vld [vmem:[#allocation37_spill] sm:$0xff] }
  0xcb   : > { %v1087_v59 = vadd.f32 %v1085_v37, %v3352_v4  ;;  %v1088_v51 = vadd.f32 %v1086_v5, %v3363_v24  ;;  %v1094_v63 = vmul.f32 %v3403_v7, %v5228_v47  ;;  %v985_v11 = vadd.f32 %v983_v32, %v981_v38  ;;  %v3656_v47 = vld [vmem:[%s5102_s3 + $0x4] ss:$8 sps:$4 sm:$0xff]  }
  0xcc   : > { %343 = vrot.lane.b32.xlu0 %v3573_v40, %s2986_s21  ;;  %v889_v62 = vmax.f32 %v3631_v20, 0.0  ;;  %v890_v13 = vmax.f32 %v3633_v53, 0.0  ;;  %v986_v48 = vadd.f32 %v984_v39, %v982_v31  ;;  %v1008_v22 = vmul.f32 %v3417_v58, %v5234_v44  ;;  %2452 = vmatprep.mubr.msk.bf16.mxu0 %vm533_vm2, %v3656_v47  ;;  %v5262_v20 = vld [vmem:[#allocation13_spill] sm:$0xff] }
  0xcd   : > { %v1091_v60 = vadd.f32 %v5237_v6, %v1087_v59  ;;  %v1092_v14 = vadd.f32 %v5238_v27, %v1088_v51  ;;  %v1097_v43 = vmul.f32 %v3281_v2, %v5231_v36  ;;  %v993_v39 = vadd.f32 %v991_v12, %v985_v11  ;;  %v5241_v51 = vld [vmem:[#allocation48_spill] sm:$0xff]  ;;  %2472 = vmatprep.mubr.msk.bf16.mxu1 %vm533_vm2, %v3656_v47  ;;  %v5242_v27 = vld [vmem:[#allocation38_spill] sm:$0xff] }
  0xce   : > { %v2817_v32 = vpack.i.bf16 %v890_v13, %v889_v62  ;;  %v994_v16 = vadd.f32 %v992_v49, %v986_v48  ;;  %v1098_v37 = vmul.f32 %v3286_v33, %v5231_v36  ;;  %v1105_v5 = vmul.f32 %v3368_v15, %v5234_v44 }
  0xcf   : > { %v1095_v45 = vadd.f32 %v1093_v41, %v1091_v60  ;;  %v1096_v29 = vadd.f32 %v1094_v63, %v1092_v14  ;;  %v1001_v38 = vadd.f32 %v5239_v18, %v993_v39  ;;  %v1106_v12 = vmul.f32 %v3373_v0, %v5234_v44 }
  0xd0   : > { %2818 = vrot.lane.b32.xlu0 %v2817_v32, %s2985_s20  ;;  %2823 = vrot.lane.b32.xlu1 %v2817_v32, %s2986_s21  ;;  %v1002_v31 = vadd.f32 %v5240_v30, %v994_v16  ;;  %v1113_v41 = vmul.f32 %v3316_v54, %v5241_v51  ;;  %v1114_v63 = vmul.f32 %v3341_v10, %v5241_v51  ;;  %v5244_v16 = vld [vmem:[#allocation51_spill] sm:$0xff]  ;;  %v5247_v30 = vld [vmem:[#allocation40_spill] sm:$0xff] }
  0xd1   : > { %v1099_v49 = vadd.f32 %v1097_v43, %v1095_v45  ;;  %v1100_v59 = vadd.f32 %v1098_v37, %v1096_v29  ;;  %v3678_v11 = vadd.f32 %v1007_v56, %v1001_v38  ;;  %v3684_v6 = vpack.c.bf16 %v426_v42, %v425_v34  ;;  %v5243_v56 = vld [vmem:[#allocation39_spill] sm:$0xff]  ;;  %v5246_v29 = vld [vmem:[#allocation9_spill] sm:$0xff] }
  0xd2   : > { %v1010_v48 = vadd.f32 %v1008_v22, %v1002_v31  ;;  %v3690_v60 = vpack.c.bf16 %v499_v50, %v498_v61  ;;  %v1207_v8 = vmul.f32 %v5231_v36, %v3302_v3  ;;  %v1208_v1 = vmul.f32 %v5231_v36, %v3307_v25  ;;  %v5245_v36 = vld [vmem:[#allocation36_spill] sm:$0xff] }
  0xd3   : > { %v1103_v14 = vadd.f32 %v5242_v27, %v1099_v49  ;;  %v1104_v43 = vadd.f32 %v5243_v56, %v1100_v59  ;;  %v1011_v34 = vmax.f32 %v3678_v11, 0.0  ;;  %v1215_v55 = vmul.f32 %v3398_v9, %v5234_v44  ;;  %v5248_v49 = vld [vmem:[#allocation43_spill] sm:$0xff]  ;;  %v5249_v11 = vld [vmem:[#allocation41_spill] sm:$0xff] }
  0xd4   : > { %v1012_v42 = vmax.f32 %v1010_v48, 0.0  ;;  %v1216_v23 = vmul.f32 %v3403_v7, %v5234_v44  ;;  %v1209_v22 = vadd.f32 %v1207_v8, %v3352_v4  ;;  %v1210_v32 = vadd.f32 %v1208_v1, %v3363_v24  ;;  %v5251_v1 = vld [vmem:[#allocation10_spill] sm:$0xff] }
  0xd5   : > { %v1107_v61 = vadd.f32 %v1105_v5, %v1103_v14  ;;  %v1108_v50 = vadd.f32 %v1106_v12, %v1104_v43  ;;  %v1129_v45 = vmul.f32 %v3412_v21, %v5244_v16  ;;  %v1333_v37 = vmul.f32 %v5246_v29, %v5245_v36 }
  0xd6   : > { %v2827_v39 = vpack.i.bf16 %v1012_v42, %v1011_v34  ;;  %v1213_v31 = vadd.f32 %v5247_v30, %v1209_v22  ;;  %v1214_v59 = vadd.f32 %v5248_v49, %v1210_v32  ;;  %v1130_v44 = vmul.f32 %v3417_v58, %v5244_v16 }
  0xd7   : > { %v1115_v18 = vadd.f32 %v1113_v41, %v1107_v61  ;;  %v1116_v38 = vadd.f32 %v1114_v63, %v1108_v50  ;;  %v1219_v5 = vmul.f32 %v3281_v2, %v5241_v51  ;;  %v1220_v12 = vmul.f32 %v3286_v33, %v5241_v51  ;;  %v5250_v63 = vld [vmem:[#allocation42_spill] sm:$0xff] }
  0xd8   : > { %2828 = vrot.lane.b32.xlu0 %v2827_v39, %s2985_s20  ;;  %2833 = vrot.lane.b32.xlu1 %v2827_v39, %s2986_s21  ;;  %v1217_v27 = vadd.f32 %v1215_v55, %v1213_v31  ;;  %v1218_v14 = vadd.f32 %v1216_v23, %v1214_v59  ;;  %v1227_v56 = vmul.f32 %v3368_v15, %v5244_v16 }
  0xd9   : > { %v1123_v41 = vadd.f32 %v5249_v11, %v1115_v18  ;;  %v1124_v48 = vadd.f32 %v5250_v63, %v1116_v38  ;;  %v3729_v43 = vpack.c.bf16 %v646_v52, %v645_v19  ;;  %v1329_v8 = vmul.f32 %v5241_v51, %v3302_v3  ;;  %v5252_v18 = vld [vmem:[#allocation44_spill] sm:$0xff] }
  0xda   : > { %v1334_v61 = vmul.f32 %v5251_v1, %v5245_v36  ;;  %v1221_v32 = vadd.f32 %v1219_v5, %v1217_v27  ;;  %v1222_v55 = vadd.f32 %v1220_v12, %v1218_v14  ;;  %v1228_v23 = vmul.f32 %v3373_v0, %v5244_v16  ;;  %v5253_v36 = vld [vmem:[#allocation45_spill] sm:$0xff]  ;;  %v5258_v27 = vld [vmem:[#allocation4_spill] sm:$0xff] }
  0xdb   : > { %v1131_v50 = vadd.f32 %v1129_v45, %v1123_v41  ;;  %v1132_v22 = vadd.f32 %v1130_v44, %v1124_v48  ;;  %v1330_v35 = vmul.f32 %v5241_v51, %v3307_v25  ;;  %v1331_v26 = vadd.f32 %v1329_v8, %v3352_v4 }
  0xdc   : > { %v1337_v19 = vmul.f32 %v3398_v9, %v5244_v16  ;;  %v1225_v38 = vadd.f32 %v5252_v18, %v1221_v32  ;;  %v1226_v45 = vadd.f32 %v5253_v36, %v1222_v55  ;;  %v1338_v49 = vmul.f32 %v3403_v7, %v5244_v16 }
  0xdd   : > { %v1133_v52 = vmax.f32 %v1131_v50, 0.0  ;;  %v1134_v39 = vmax.f32 %v1132_v22, 0.0  ;;  %v1332_v30 = vadd.f32 %v1330_v35, %v3363_v24  ;;  %v1335_v31 = vadd.f32 %v1333_v37, %v1331_v26  ;;  %v5266_v22 = vld [vmem:[#allocation8_spill] sm:$0xff] }
  0xde   : > { %v3747_v44 = vadd.f32 %v1227_v56, %v1225_v38  ;;  %v3749_v51 = vadd.f32 %v1228_v23, %v1226_v45  ;;  %v3761_v37 = vpack.c.bf16 %v768_v57, %v767_v46  ;;  %v3767_v16 = vpack.c.bf16 %v890_v13, %v889_v62  ;;  %v5263_v62 = vld [vmem:[#allocation14_spill] sm:$0xff] }
  0xdf   : > { %v2837_v59 = vpack.i.bf16 %v1134_v39, %v1133_v52  ;;  %v1336_v5 = vadd.f32 %v1334_v61, %v1332_v30  ;;  %v3751_v12 = vadd.f32 %v1337_v19, %v1335_v31  ;;  %v3769_v41 = vpack.c.bf16 %v1012_v42, %v1011_v34  ;;  %v5264_v34 = vld [vmem:[#allocation6_spill] sm:$0xff]  ;;  %v5265_v61 = vld [vmem:[#allocation5_spill] sm:$0xff]  ;;  %v5269_v19 = vld [vmem:[#allocation7_spill] sm:$0xff] }
  0xe0   : > { %5254 = vst [vmem:[#allocation22_spill] sm:$0xff] %v3761_v37  ;;  %5255 = vst [vmem:[#allocation20_spill] sm:$0xff] %v3767_v16  ;;  %v3771_v63 = vpack.c.bf16 %v1134_v39, %v1133_v52  ;;  %v1242_v14 = vrot.slane %v3573_v40, %v5258_v27  ;;  %v1364_v50 = vrot.slane %v3573_v40, %v5265_v61  ;;  %v5267_v35 = vmov 0   ;;  %v5270_v39 = vld [vmem:[#allocation11_spill] sm:$0xff] }
  0xe1   : > { %2838 = vrot.lane.b32.xlu0 %v2837_v59, %s2985_s20  ;;  %2843 = vrot.lane.b32.xlu1 %v2837_v59, %s2986_s21  ;;  %v3755_v11 = vadd.f32 %v1338_v49, %v1336_v5  ;;  %5256 = vst [vmem:[#allocation21_spill] sm:$0xff] %v3769_v41  ;;  %v1486_v52 = vrot.slane %v3573_v40, %v5269_v19 }
  0xe2   : > { %5257 = vst [vmem:[#allocation23_spill] sm:$0xff] %v3771_v63  ;;  %v3783_v53 = vmul.f32 %v5262_v20, %v1242_v14  ;;  %v3786_v13 = vmul.f32 %v5263_v62, %v1242_v14  ;;  %v3789_v42 = vmul.f32 %v5264_v34, %v1242_v14  ;;  %v3798_v32 = vmul.f32 %v5266_v22, %v1242_v14 }
  0xe3   : > { %v3801_v55 = vmul.f32 %v5246_v29, %v1242_v14  ;;  %v3804_v23 = vmul.f32 %v5251_v1, %v1242_v14  ;;  %v3809_v26 = vmul.f32 %v5262_v20, %v1364_v50  ;;  %v1608_v18 = vrot.slane %v3573_v40, %v5270_v39 }
  0xe4   : > { %v3816_v45 = vmul.f32 %v5263_v62, %v1364_v50  ;;  %v3819_v30 = vmul.f32 %v5264_v34, %v1364_v50  ;;  %v3822_v49 = vmul.f32 %v5266_v22, %v1364_v50  ;;  %v3825_v59 = vmul.f32 %v5262_v20, %v1486_v52 }
  0xe5   : > { %5268 = vst [vmem:[#allocation24_spill] sm:$0xff] %v3809_v26  ;;  %v3828_v5 = vmul.f32 %v5263_v62, %v1486_v52  ;;  %v3862_v41 = vmul.f32 %v5246_v29, %v1486_v52 }
  0xe6   : > { %5271 = vst [vmem:[#allocation46_spill] sm:$0xff] %v3816_v45  ;;  %5272 = vst [vmem:[#allocation25_spill] sm:$0xff] %v3819_v30 }
  0xe7   : > { %5273 = vst [vmem:[#allocation26_spill] sm:$0xff] %v3822_v49  ;;  %5274 = vst [vmem:[#allocation49_spill] sm:$0xff] %v3825_v59  ;;  %v5290_v59 = vld [vmem:[#allocation15_spill] sm:$0xff] }
  0xe8   : > { %5275 = vst [vmem:[#allocation27_spill] sm:$0xff] %v3828_v5  ;;  %5285 = vst [vmem:[#allocation32_spill] sm:$0xff] %v3862_v41  ;;  %v3870_v5 = vmul.f32 %v5264_v34, %v1608_v18  ;;  %v5299_v41 = vld [vmem:[#allocation16_spill] sm:$0xff] }
  0xea   : > { %5288 = vst [vmem:[#allocation35_spill] sm:$0xff] %v3870_v5 }
 0x122   : > { %v2779_v48 = vpop.permute.xlu1 %2778 }
 0x123   : > { %v2781_v56 = vunpack.i.h.bf16 %v2779_v48  ;;  %v2780_v28 = vunpack.i.l.bf16 %v2779_v48  ;;  %v3831_v48 = vmul.f32 %v5246_v29, %v1364_v50 }
 0x125   : > { %v2441_v46 = vpack.c.bf16 %v2781_v56, %v2780_v28  ;;  %5276 = vst [vmem:[#allocation28_spill] sm:$0xff] %v3831_v48  ;;  %v3838_v56 = vmul.f32 %v5251_v1, %v1364_v50  ;;  %v3841_v28 = vmul.f32 %v5264_v34, %v1486_v52  ;;  %v3859_v50 = vmul.f32 %v5263_v62, %v1608_v18 }
 0x126   : > { %v2784_v57 = vpop.permute.xlu1 %2783  ;;  %v3867_v48 = vmul.f32 %v5251_v1, %v1486_v52 }
 0x127   : > { %2442 = vmatpush1.bf16.msk.msra.mxu0 %vm3778_vm3, %v2441_v46  ;;  %2456 = vmatpush1.bf16.msk.msra.mxu1 %vm3778_vm3, %v2441_v46  ;;  %v2786_v38 = vunpack.i.h.bf16 %v2784_v57  ;;  %v2785_v36 = vunpack.i.l.bf16 %v2784_v57  ;;  %5277 = vst [vmem:[#allocation47_spill] sm:$0xff] %v3838_v56  ;;  %5278 = vst [vmem:[#allocation29_spill] sm:$0xff] %v3841_v28  ;;  %v3844_v46 = vmul.f32 %v5266_v22, %v1486_v52  ;;  %v5286_v28 = vld [vmem:[#allocation12_spill] sm:$0xff] }
 0x128   : > { %548 = vmatprep.subr.bf16.mxu0 %v5267_v35  ;;  %664 = vmatprep.subr.bf16.mxu1 %v5267_v35  ;;  %5284 = vst [vmem:[#allocation31_spill] sm:$0xff] %v3859_v50  ;;  %v1730_v56 = vrot.slane %v3573_v40, %v5286_v28  ;;  %5287 = vst [vmem:[#allocation34_spill] sm:$0xff] %v3867_v48  ;;  %v1852_v50 = vrot.slane %v3573_v40, %v5290_v59 }
 0x129   : > { %v2789_v31 = vpop.permute.xlu0 %2788  ;;  %5279 = vst [vmem:[#allocation30_spill] sm:$0xff] %v3844_v46  ;;  %v2444_v16 = vpack.c.bf16 %v2786_v38, %v2785_v36  ;;  %v3888_v36 = vmul.f32 %v5246_v29, %v1608_v18 }
 0x12a   : > { %v3833_v14 = vpop.permute.xlu1 %2793  ;;  %v2791_v37 = vunpack.i.h.bf16 %v2789_v31  ;;  %v2790_v46 = vunpack.i.l.bf16 %v2789_v31  ;;  %v3882_v38 = vmul.f32 %v5262_v20, %v1730_v56  ;;  %v3885_v52 = vmul.f32 %v5263_v62, %v1730_v56 }
 0x12b   : > { %549 = vmatpush1.bf16.msra.mxu0 %v3684_v6  ;;  %665 = vmatpush1.bf16.msra.mxu1 %v3684_v6  ;;  %v3856_v6 = vmul.f32 %v5262_v20, %v1608_v18  ;;  %5293 = vst [vmem:[#allocation38_spill] sm:$0xff] %v3888_v36  ;;  %v3893_v31 = vmul.f32 %v5251_v1, %v1608_v18 }
 0x12c   : > { %550 = vmatprep.subr.bf16.mxu0 %v5267_v35  ;;  %666 = vmatprep.subr.bf16.mxu1 %v5267_v35  ;;  %5291 = vst [vmem:[#allocation37_spill] sm:$0xff] %v3882_v38  ;;  %5292 = vst [vmem:[#allocation48_spill] sm:$0xff] %v3885_v52  ;;  %v3901_v38 = vpack.c.bf16 %v2791_v37, %v2790_v46  ;;  %v3904_v48 = vmul.f32 %v5262_v20, %v1852_v50 }
 0x12d   : > { %5283 = vst [vmem:[#allocation50_spill] sm:$0xff] %v3856_v6  ;;  %v3873_v6 = vmul.f32 %v5266_v22, %v1608_v18  ;;  %5294 = vst [vmem:[#allocation39_spill] sm:$0xff] %v3893_v31  ;;  %v3907_v36 = vmul.f32 %v5263_v62, %v1852_v50  ;;  %v1974_v18 = vrot.slane %v3573_v40, %v5299_v41 }
 0x12e   : > { %5297 = vst [vmem:[#allocation9_spill] sm:$0xff] %v3904_v48  ;;  %v3912_v31 = vmul.f32 %v5246_v29, %v1730_v56  ;;  %v3918_v37 = vmul.f32 %v5246_v29, %v1852_v50  ;;  %v3921_v46 = vmul.f32 %v5251_v1, %v1852_v50  ;;  %v5306_v48 = vld [vmem:[#allocation17_spill] sm:$0xff] }
 0x12f   : > { %5289 = vst [vmem:[#allocation33_spill] sm:$0xff] %v3873_v6  ;;  %2445 = vmatpush1.bf16.msk.msra.mxu0 %vm3849_vm4, %v2444_v16  ;;  %2459 = vmatpush1.bf16.msk.msra.mxu1 %vm3849_vm4, %v2444_v16  ;;  %v3896_v6 = vmul.f32 %v5264_v34, %v1730_v56  ;;  %v3899_v16 = vmul.f32 %v5266_v22, %v1730_v56  ;;  %5298 = vst [vmem:[#allocation40_spill] sm:$0xff] %v3907_v36 }
 0x130   : > { %552 = vmatprep.subr.bf16.mxu0 %v5267_v35  ;;  %668 = vmatprep.subr.bf16.mxu1 %v5267_v35  ;;  %5300 = vst [vmem:[#allocation43_spill] sm:$0xff] %v3912_v31  ;;  %5302 = vst [vmem:[#allocation42_spill] sm:$0xff] %v3918_v37  ;;  %v3930_v36 = vmul.f32 %v5264_v34, %v1852_v50  ;;  %v2096_v37 = vrot.slane %v3573_v40, %v5306_v48 }
 0x131   : > { %5295 = vst [vmem:[#allocation51_spill] sm:$0xff] %v3896_v6  ;;  %5296 = vst [vmem:[#allocation36_spill] sm:$0xff] %v3899_v16  ;;  %v2799_v5 = vpop.permute.xlu0 %2798  ;;  %v2804_v52 = vpop.permute.xlu1 %2803  ;;  %v3915_v6 = vmul.f32 %v5251_v1, %v1730_v56  ;;  %v3933_v56 = vmul.f32 %v5266_v22, %v1852_v50  ;;  %v3942_v30 = vmul.f32 %v5262_v20, %v1974_v18 }
 0x132   : > { %5303 = vst [vmem:[#allocation10_spill] sm:$0xff] %v3921_v46  ;;  %5304 = vst [vmem:[#allocation44_spill] sm:$0xff] %v3930_v36  ;;  %v2795_v46 = vunpack.i.l.bf16 %v3833_v14  ;;  %v2801_v31 = vunpack.i.h.bf16 %v2799_v5  ;;  %v2800_v16 = vunpack.i.l.bf16 %v2799_v5  ;;  %v3945_v50 = vmul.f32 %v5263_v62, %v1974_v18 }
 0x133   : > { %5301 = vst [vmem:[#allocation41_spill] sm:$0xff] %v3915_v6  ;;  %2448 = vmatpush1.bf16.msk.msra.mxu0 %vm3778_vm3, %v3901_v38  ;;  %2462 = vmatpush1.bf16.msk.msra.mxu1 %vm3778_vm3, %v3901_v38  ;;  %5305 = vst [vmem:[#allocation45_spill] sm:$0xff] %v3933_v56  ;;  %v2796_v6 = vunpack.i.h.bf16 %v3833_v14  ;;  %v3948_v56 = vmul.f32 %v5264_v34, %v1974_v18  ;;  %v3951_v40 = vmul.f32 %v5266_v22, %v1974_v18 }
 0x134   : > { %554 = vmatprep.subr.bf16.mxu0 %v5267_v35  ;;  %670 = vmatprep.subr.bf16.mxu1 %v5267_v35  ;;  %5307 = vst [vmem:[#allocation4_spill] sm:$0xff] %v3942_v30  ;;  %5308 = vst [vmem:[#allocation18_spill] sm:$0xff] %v3945_v50  ;;  %v2806_v14 = vunpack.i.h.bf16 %v2804_v52  ;;  %v2805_v36 = vunpack.i.l.bf16 %v2804_v52  ;;  %v3956_v45 = vmul.f32 %v5246_v29, %v1974_v18 }
 0x135   : > { %v336_v49 = vpop.permute.xlu1 %335  ;;  %5309 = vst [vmem:[#allocation13_spill] sm:$0xff] %v3948_v56  ;;  %5310 = vst [vmem:[#allocation14_spill] sm:$0xff] %v3951_v40  ;;  %v3961_v50 = vmul.f32 %v5262_v20, %v2096_v37  ;;  %v3964_v56 = vmul.f32 %v5263_v62, %v2096_v37  ;;  %v3967_v40 = vmul.f32 %v5251_v1, %v1974_v18 }
 0x136   : > { %v340_v5 = vsel %vm3139_vm0, %v336_v49, 0.0  ;;  %5311 = vst [vmem:[#allocation6_spill] sm:$0xff] %v3956_v45  ;;  %v3969_v52 = vpack.c.bf16 %v2796_v6, %v2795_v46  ;;  %v3971_v8 = vpack.c.bf16 %v2801_v31, %v2800_v16  ;;  %v3975_v29 = vmul.f32 %v5264_v34, %v2096_v37 }
 0x137   : > { %v1234_v26 = vrot.slane %v340_v5, %v5258_v27  ;;  %555 = vmatpush1.bf16.msra.mxu0 %v3690_v60  ;;  %5312 = vst [vmem:[#allocation5_spill] sm:$0xff] %v3961_v50  ;;  %5313 = vst [vmem:[#allocation8_spill] sm:$0xff] %v3964_v56  ;;  %671 = vmatpush1.bf16.msra.mxu1 %v3690_v60  ;;  %v3978_v49 = vmul.f32 %v5266_v22, %v2096_v37  ;;  %v3996_v22 = vld [vmem:[%s5102_s3] ss:$8 sps:$4 sm:$0xff]  }
 0x138   : > { %5314 = vst [vmem:[#allocation7_spill] sm:$0xff] %v3967_v40  ;;  %5315 = vst [vmem:[#allocation11_spill] sm:$0xff] %v3975_v29  ;;  %556 = vmatprep.subr.bf16.mxu0 %v5267_v35  ;;  %672 = vmatprep.subr.bf16.mxu1 %v5267_v35  ;;  %v3985_v6 = vpack.c.bf16 %v2806_v14, %v2805_v36  ;;  %v3988_v16 = vrot.slane %v340_v5, %v5265_v61 }
 0x139   : > { %5316 = vst [vmem:[#allocation19_spill] sm:$0xff] %v3978_v49  ;;  %v1235_v20 = vmul.f32 %v3316_v54, %v1234_v26  ;;  %v1236_v1 = vmul.f32 %v3341_v10, %v1234_v26  ;;  %v1341_v62 = vmul.f32 %v3281_v2, %v1234_v26  ;;  %v3991_v34 = vrot.slane %v340_v5, %v5269_v19  ;;  %v4015_v49 = vld [vmem:[%s5102_s3 + $0x14] ss:$8 sps:$4 sm:$0xff]  }
 0x13a   : > { %v2809_v31 = vpop.permute.xlu0 %2808  ;;  %v1342_v18 = vmul.f32 %v3286_v33, %v1234_v26  ;;  %v4000_v37 = vrot.slane %v340_v5, %v5270_v39  ;;  %v4003_v36 = vrot.slane %v340_v5, %v5286_v28  ;;  %v4006_v46 = vrot.slane %v340_v5, %v5290_v59  ;;  %v2814_v29 = vpop.permute.xlu1 %2813 }
 0x13b   : > { %2451 = vmatpush1.bf16.msk.msra.mxu0 %vm3849_vm4, %v3969_v52  ;;  %v1451_v14 = vmul.f32 %v1234_v26, %v3302_v3  ;;  %2465 = vmatpush1.bf16.msk.msra.mxu1 %vm3849_vm4, %v3969_v52  ;;  %v1237_v56 = vadd.f32 %v1235_v20, %v3747_v44  ;;  %v1238_v50 = vadd.f32 %v1236_v1, %v3749_v51  ;;  %v2811_v45 = vunpack.i.h.bf16 %v2809_v31 }
 0x13c   : > { %5317 = vst [vmem:[#allocation12_spill] sm:$0xff] %v4000_v37  ;;  %5318 = vst [vmem:[#allocation15_spill] sm:$0xff] %v4003_v36  ;;  %784 = vmatprep.subr.bf16.mxu0 %v5267_v35  ;;  %v1343_v40 = vadd.f32 %v1341_v62, %v3751_v12  ;;  %v2810_v3 = vunpack.i.l.bf16 %v2809_v31  ;;  %674 = vmatprep.subr.bf16.mxu1 %v5267_v35  ;;  %v1344_v30 = vadd.f32 %v1342_v18, %v3755_v11 }
 0x13d   : > { %5319 = vst [vmem:[#allocation16_spill] sm:$0xff] %v4006_v46  ;;  %v1452_v46 = vmul.f32 %v1234_v26, %v3307_v25  ;;  %v4028_v36 = vrot.slane %v340_v5, %v5299_v41  ;;  %v1245_v44 = vadd.f32 %v3783_v53, %v1237_v56  ;;  %v1246_v51 = vadd.f32 %v3786_v13, %v1238_v50 }
 0x13e   : > { %v344_v37 = vpop.permute.xlu0 %343  ;;  %573 = vmatmul.mubr.bf16.vlgmr.msra.gmra.mrb[0].mxu0 %v3996_v22  ;;  %v1347_v12 = vadd.f32 %v3789_v42, %v1343_v40  ;;  %v2816_v1 = vunpack.i.h.bf16 %v2814_v29  ;;  %v2815_v11 = vunpack.i.l.bf16 %v2814_v29  ;;  %v1348_v25 = vadd.f32 %v3798_v32, %v1344_v30 }
 0x13f   : > { %v4036_v20 = vsel %vm3189_vm1, %v344_v37, 0.0  ;;  %2476 = vmatpush1.bf16.msk.msra.mxu0 %vm3778_vm3, %v3901_v38  ;;  %2453 = vmatprep.mubr.msk.bf16.mxu0 %vm533_vm2, %v4015_v49  ;;  %v4045_v53 = vrot.slane %v340_v5, %v5306_v48  ;;  %v1453_v42 = vadd.f32 %v1451_v14, %v3352_v4  ;;  %v1454_v26 = vadd.f32 %v1452_v46, %v3363_v24 }
 0x140   : > { %v1250_v13 = vrot.slane %v4036_v20, %v5258_v27  ;;  %2468 = vmatpush1.bf16.msk.msra.mxu1 %vm3778_vm3, %v3971_v8  ;;  %v4054_v57 = vpack.c.bf16 %v2811_v45, %v2810_v3  ;;  %v4058_v32 = vrot.slane %v4036_v20, %v5265_v61  ;;  %v1357_v30 = vmul.f32 %v3316_v54, %v3988_v16  ;;  %v4073_v61 = vld [vmem:[%s5102_s3 + $0x10] ss:$8 sps:$4 sm:$0xff]   ;;  %v5320_v3 = vld [vmem:[#allocation24_spill] sm:$0xff] }
 0x141   : > { %676 = vmatprep.subr.bf16.mxu1 %v5267_v35  ;;  %v1358_v27 = vmul.f32 %v3341_v10, %v3988_v16  ;;  %786 = vmatprep.subr.bf16.mxu0 %v5267_v35  ;;  %v4077_v54 = vrot.slane %v4036_v20, %v5269_v19  ;;  %v4081_v10 = vrot.slane %v4036_v20, %v5270_v39 }
 0x142   : > { %v1251_v38 = vmul.f32 %v3412_v21, %v1250_v13  ;;  %v1252_v4 = vmul.f32 %v3417_v58, %v1250_v13  ;;  %v1349_v24 = vmul.f32 %v3368_v15, %v1250_v13  ;;  %v1350_v45 = vmul.f32 %v3373_v0, %v1250_v13  ;;  %v4096_v5 = vpop.permute.xlu0 %2818 }
 0x143   : > { %v4083_v56 = vpack.c.bf16 %v2816_v1, %v2815_v11  ;;  %787 = vmatpush1.bf16.msra.mxu0 %v3690_v60  ;;  %v1463_v50 = vmul.f32 %v3281_v2, %v3988_v16  ;;  %v4090_v40 = vrot.slane %v4036_v20, %v5286_v28  ;;  %v1457_v19 = vadd.f32 %v3801_v55, %v1453_v42 }
 0x144   : > { %677 = vmatpush1.bf16.msra.mxu1 %v3729_v43  ;;  %788 = vmatprep.subr.bf16.mxu0 %v5267_v35  ;;  %v1458_v39 = vadd.f32 %v3804_v23, %v1454_v26  ;;  %v4098_v29 = vadd.f32 %v1251_v38, %v1245_v44  ;;  %v4100_v60 = vadd.f32 %v1252_v4, %v1246_v51  ;;  %v5321_v51 = vld [vmem:[#allocation46_spill] sm:$0xff]  ;;  %v2820_v42 = vunpack.i.l.bf16 %v4096_v5 }
 0x145   : > { %678 = vmatprep.subr.bf16.mxu1 %v5267_v35  ;;  %v1351_v2 = vadd.f32 %v1349_v24, %v1347_v12  ;;  %v1352_v62 = vadd.f32 %v1350_v45, %v1348_v25  ;;  %v1373_v28 = vmul.f32 %v3412_v21, %v4058_v32  ;;  %v1374_v31 = vmul.f32 %v3417_v58, %v4058_v32  ;;  %v2824_v58 = vpop.permute.xlu1 %2823 }
 0x146   : > { %v1459_v55 = vmul.f32 %v3398_v9, %v1250_v13  ;;  %v1460_v23 = vmul.f32 %v3403_v7, %v1250_v13  ;;  %581 = vmatmul.mubr.bf16.gmra.mrb[4].mxu0 %v4073_v61  ;;  %v5161_v18 = vmax.f32 %v4098_v29, 0.0  ;;  %v5160_v37 = vmax.f32 %v4100_v60, 0.0 }
 0x147   : > { %2479 = vmatpush1.bf16.msk.msra.mxu0 %vm3849_vm4, %v3969_v52  ;;  %v1359_v46 = vadd.f32 %v1357_v30, %v1351_v2  ;;  %v1360_v14 = vadd.f32 %v1358_v27, %v1352_v62  ;;  %2492 = vmatprep.mubr.msk.bf16.mxu0 %vm533_vm2, %v3656_v47  ;;  %v1464_v21 = vmul.f32 %v3286_v33, %v3988_v16  ;;  %v2821_v13 = vunpack.i.h.bf16 %v4096_v5 }
 0x148   : > { %2471 = vmatpush1.bf16.msk.msra.mxu1 %vm3849_vm4, %v3985_v6  ;;  %790 = vmatprep.subr.bf16.mxu0 %v5267_v35  ;;  %v1461_v7 = vadd.f32 %v1459_v55, %v1457_v19  ;;  %v1462_v9 = vadd.f32 %v1460_v23, %v1458_v39  ;;  %v2852_v52 = vpack.i.bf16 %v5160_v37, %v5161_v18  ;;  %v2825_v38 = vunpack.i.l.bf16 %v2824_v58  ;;  %v5323_v39 = vld [vmem:[#allocation26_spill] sm:$0xff]  ;;  %v5335_v37 = vld [vmem:[#allocation15_spill] sm:$0xff] }
 0x149   : > { %v1367_v44 = vadd.f32 %v5320_v3, %v1359_v46  ;;  %v1368_v12 = vadd.f32 %v5321_v51, %v1360_v14  ;;  %906 = vmatprep.subr.bf16.mxu1 %v5267_v35  ;;  %v4132_v1 = vrot.slane %v4036_v20, %v5290_v59  ;;  %v4136_v11 = vrot.slane %v4036_v20, %v5299_v41  ;;  %v4212_v3 = vld [vmem:[%s5101_s2] sm:$0xff] }
 0x14a   : > { %v1465_v33 = vadd.f32 %v1463_v50, %v1461_v7  ;;  %v1466_v25 = vadd.f32 %v1464_v21, %v1462_v9  ;;  %v2829_v26 = vpop.permute.xlu0 %2828  ;;  %2853 = vrot.lane.b32.xlu1 %v2852_v52, %s2986_s21  ;;  %2848 = vrot.lane.b32.xlu0 %v2852_v52, %s2985_s20  ;;  %v2826_v59 = vunpack.i.h.bf16 %v2824_v58  ;;  %v1471_v41 = vmul.f32 %v3368_v15, %v4058_v32  ;;  %v5322_v50 = vld [vmem:[#allocation25_spill] sm:$0xff]  ;;  %v4165_v15 = vld [vmem:[%s5100_s1 + $0x60] sm:$0xff] }
 0x14b   : > { %v4142_v30 = vadd.f32 %v1373_v28, %v1367_v44  ;;  %v4144_v27 = vadd.f32 %v1374_v31, %v1368_v12  ;;  %695 = vmatmul.mubr.bf16.vlgmr.msra.gmra.mrb[0].mxu1 %v3996_v22  ;;  %2482 = vmatpush1.bf16.msk.msra.mxu0 %vm3778_vm3, %v3971_v8  ;;  %v1472_v4 = vmul.f32 %v3373_v0, %v4058_v32  ;;  %v2831_v2 = vunpack.i.h.bf16 %v2829_v26  ;;  %v4193_v7 = vld [vmem:[%s5100_s1] sm:$0xff]  ;;  %v4200_v21 = vld [vmem:[%s5100_s1 + $0x8] sm:$0xff] }
 0x14c   : > { %2496 = vmatpush1.bf16.msk.msra.mxu1 %vm3778_vm3, %v3971_v8  ;;  %v1469_v19 = vadd.f32 %v5322_v50, %v1465_v33  ;;  %v1470_v5 = vadd.f32 %v5323_v39, %v1466_v25  ;;  %792 = vmatprep.subr.bf16.mxu0 %v5267_v35  ;;  %v2830_v62 = vunpack.i.l.bf16 %v2829_v26  ;;  %v1479_v0 = vmul.f32 %v4165_v15, %v3991_v34  ;;  %v4172_v8 = vld [vmem:[%s5100_s1 + $0x68] sm:$0xff]  ;;  %v4224_v12 = vld [vmem:[%s5100_s1 + $0x20] sm:$0xff] }
 0x14d   : > { %v5157_v24 = vmax.f32 %v4142_v30, 0.0  ;;  %v5156_v45 = vmax.f32 %v4144_v27, 0.0  ;;  %v1480_v28 = vmul.f32 %v4172_v8, %v3991_v34  ;;  %908 = vmatprep.subr.bf16.mxu1 %v5267_v35  ;;  %2473 = vmatprep.mubr.msk.bf16.mxu1 %vm533_vm2, %v4015_v49  ;;  %v4185_v46 = vrot.slane %v4036_v20, %v5306_v48  ;;  %v4231_v33 = vld [vmem:[%s5100_s1 + $0x28] sm:$0xff] }
 0x14e   : > { %v1473_v55 = vadd.f32 %v1471_v41, %v1469_v19  ;;  %v1474_v23 = vadd.f32 %v1472_v4, %v1470_v5  ;;  %v4187_v14 = vpack.c.bf16 %v2821_v13, %v2820_v42  ;;  %v1573_v9 = vmul.f32 %v4193_v7, %v3988_v16  ;;  %v5324_v42 = vld [vmem:[#allocation49_spill] sm:$0xff]  ;;  %v4242_v41 = vld [vmem:[%s5100_s1 + $0x80] sm:$0xff]  ;;  %v5327_v5 = vld [vmem:[#allocation47_spill] sm:$0xff] }
 0x14f   : > { %v2862_v31 = vpack.i.bf16 %v5156_v45, %v5157_v24  ;;  %793 = vmatpush1.bf16.msra.mxu0 %v3729_v43  ;;  %v1574_v48 = vmul.f32 %v4200_v21, %v3988_v16  ;;  %v4204_v20 = vpack.c.bf16 %v2826_v59, %v2825_v38  ;;  %v4218_v16 = vld [vmem:[%s5101_s2 + $0x8] sm:$0xff]  ;;  %v1582_v25 = vmul.f32 %v4231_v33, %v4058_v32  ;;  %v5325_v59 = vld [vmem:[#allocation27_spill] sm:$0xff]  ;;  %v5326_v19 = vld [vmem:[#allocation28_spill] sm:$0xff] }
 0x150   : > { %v1481_v58 = vadd.f32 %v1479_v0, %v1473_v55  ;;  %v1482_v52 = vadd.f32 %v1480_v28, %v1474_v23  ;;  %909 = vmatpush1.bf16.msra.mxu1 %v3729_v43  ;;  %v1575_v44 = vadd.f32 %v4212_v3, %v1573_v9  ;;  %v1581_v43 = vmul.f32 %v4224_v12, %v4058_v32  ;;  %v4250_v32 = vld [vmem:[%s5100_s1 + $0x88] sm:$0xff]  ;;  %v4267_v28 = vld [vmem:[%s5100_s1 + $0x38] sm:$0xff]  ;;  %v4274_v55 = vld [vmem:[%s5100_s1 + $0x50] sm:$0xff] }
 0x151   : > { %2863 = vrot.lane.b32.xlu1 %v2862_v31, %s2986_s21  ;;  %2858 = vrot.lane.b32.xlu0 %v2862_v31, %s2985_s20  ;;  %v1576_v51 = vadd.f32 %v4218_v16, %v1574_v48  ;;  %v4235_v13 = vpack.c.bf16 %v2831_v2, %v2830_v62  ;;  %v1495_v4 = vmul.f32 %v4242_v41, %v4077_v54  ;;  %v4259_v62 = vld [vmem:[%s5100_s1 + $0x30] sm:$0xff]  ;;  %v4281_v9 = vld [vmem:[%s5100_s1 + $0x58] sm:$0xff] }
 0x152   : > { %v1489_v26 = vadd.f32 %v5324_v42, %v1481_v58  ;;  %v1490_v38 = vadd.f32 %v5325_v59, %v1482_v52  ;;  %794 = vmatprep.subr.bf16.mxu0 %v5267_v35  ;;  %v1496_v50 = vmul.f32 %v4250_v32, %v4077_v54  ;;  %v1579_v39 = vadd.f32 %v5326_v19, %v1575_v44  ;;  %v5330_v42 = vld [vmem:[#allocation12_spill] sm:$0xff] }
 0x153   : > { %v1580_v2 = vadd.f32 %v5327_v5, %v1576_v51  ;;  %v1585_v0 = vmul.f32 %v4259_v62, %v3991_v34  ;;  %910 = vmatprep.subr.bf16.mxu1 %v5267_v35  ;;  %v1586_v31 = vmul.f32 %v4267_v28, %v3991_v34  ;;  %v1593_v23 = vmul.f32 %v4274_v55, %v4077_v54 }
 0x154   : > { %v1594_v48 = vmul.f32 %v4281_v9, %v4077_v54  ;;  %2485 = vmatpush1.bf16.msk.msra.mxu0 %vm3849_vm4, %v3985_v6  ;;  %703 = vmatmul.mubr.bf16.gmra.mrb[4].mxu1 %v4073_v61  ;;  %v4289_v58 = vadd.f32 %v1495_v4, %v1489_v26  ;;  %v4291_v52 = vadd.f32 %v1496_v50, %v1490_v38 }
 0x155   : > { %v1583_v44 = vadd.f32 %v1581_v43, %v1579_v39  ;;  %v1584_v51 = vadd.f32 %v1582_v25, %v1580_v2  ;;  %2499 = vmatpush1.bf16.msk.msra.mxu1 %vm3849_vm4, %v3985_v6  ;;  %v1601_v59 = vmul.f32 %v4165_v15, %v5330_v42  ;;  %v1602_v19 = vmul.f32 %v4172_v8, %v5330_v42 }
 0x156   : > { %5328 = vst [vmem:[#allocation17_spill] sm:$0xff] %v4289_v58  ;;  %5329 = vst [vmem:[#allocation24_spill] sm:$0xff] %v4291_v52  ;;  %v1617_v5 = vmul.f32 %v4242_v41, %v4081_v10  ;;  %v1618_v26 = vmul.f32 %v4250_v32, %v4081_v10  ;;  %796 = vmatprep.subr.bf16.mxu0 %v5267_v35  ;;  %v5159_v43 = vmax.f32 %v4289_v58, 0.0  ;;  %v5158_v25 = vmax.f32 %v4291_v52, 0.0 }
 0x157   : > { %v1587_v38 = vadd.f32 %v1585_v0, %v1583_v44  ;;  %v1588_v6 = vadd.f32 %v1586_v31, %v1584_v51  ;;  %912 = vmatprep.subr.bf16.mxu1 %v5267_v35  ;;  %2512 = vmatprep.mubr.msk.bf16.mxu1 %vm533_vm2, %v3656_v47  ;;  %v1695_v4 = vmul.f32 %v4193_v7, %v3991_v34  ;;  %v5331_v0 = vld [vmem:[#allocation29_spill] sm:$0xff]  ;;  %v5332_v44 = vld [vmem:[#allocation30_spill] sm:$0xff] }
 0x158   : > { %v1696_v50 = vmul.f32 %v4200_v21, %v3991_v34  ;;  %v1703_v39 = vmul.f32 %v4224_v12, %v4077_v54  ;;  %v1704_v2 = vmul.f32 %v4231_v33, %v4077_v54  ;;  %2488 = vmatpush1.bf16.msk.msra.mxu0 %vm3778_vm3, %v4054_v57  ;;  %v2872_v47 = vpack.i.bf16 %v5158_v25, %v5159_v43 }
 0x159   : > { %v1591_v31 = vadd.f32 %v5331_v0, %v1587_v38  ;;  %v1592_v51 = vadd.f32 %v5332_v44, %v1588_v6  ;;  %2502 = vmatpush1.bf16.msk.msra.mxu1 %vm3778_vm3, %v4054_v57  ;;  %v1697_v34 = vadd.f32 %v4212_v3, %v1695_v4  ;;  %v1707_v45 = vmul.f32 %v4259_v62, %v5330_v42  ;;  %v5333_v4 = vld [vmem:[#allocation32_spill] sm:$0xff] }
 0x15a   : > { %v1698_v54 = vadd.f32 %v4218_v16, %v1696_v50  ;;  %v1708_v24 = vmul.f32 %v4267_v28, %v5330_v42  ;;  %798 = vmatprep.subr.bf16.mxu0 %v5267_v35  ;;  %2873 = vrot.lane.b32.xlu1 %v2872_v47, %s2986_s21  ;;  %v1715_v0 = vmul.f32 %v4274_v55, %v4081_v10  ;;  %v5334_v50 = vld [vmem:[#allocation34_spill] sm:$0xff] }
 0x15b   : > { %2868 = vrot.lane.b32.xlu0 %v2872_v47, %s2985_s20  ;;  %v1595_v38 = vadd.f32 %v1593_v23, %v1591_v31  ;;  %v1596_v6 = vadd.f32 %v1594_v48, %v1592_v51  ;;  %v1701_v44 = vadd.f32 %v5333_v4, %v1697_v34  ;;  %v1716_v43 = vmul.f32 %v4281_v9, %v4081_v10  ;;  %v5336_v47 = vld [vmem:[#allocation22_spill] sm:$0xff] }
 0x15c   : > { %v1702_v25 = vadd.f32 %v5334_v50, %v1698_v54  ;;  %v1723_v18 = vmul.f32 %v4165_v15, %v5335_v37  ;;  %914 = vmatprep.subr.bf16.mxu1 %v5267_v35  ;;  %v1724_v23 = vmul.f32 %v4172_v8, %v5335_v37  ;;  %v1739_v48 = vmul.f32 %v4242_v41, %v4090_v40 }
 0x15d   : > { %v1603_v52 = vadd.f32 %v1601_v59, %v1595_v38  ;;  %v1604_v58 = vadd.f32 %v1602_v19, %v1596_v6  ;;  %799 = vmatpush1.bf16.msra.mxu0 %v5336_v47  ;;  %v1705_v31 = vadd.f32 %v1703_v39, %v1701_v44  ;;  %v1740_v34 = vmul.f32 %v4250_v32, %v4090_v40  ;;  %v5337_v59 = vld [vmem:[#allocation50_spill] sm:$0xff]  ;;  %v5338_v38 = vld [vmem:[#allocation31_spill] sm:$0xff] }
 0x15e   : > { %v1706_v51 = vadd.f32 %v1704_v2, %v1702_v25  ;;  %v1817_v54 = vmul.f32 %v4193_v7, %v5330_v42  ;;  %915 = vmatpush1.bf16.msra.mxu1 %v5336_v47  ;;  %v1818_v4 = vmul.f32 %v4200_v21, %v5330_v42  ;;  %v1825_v50 = vmul.f32 %v4224_v12, %v4081_v10 }
 0x15f   : > { %v1611_v19 = vadd.f32 %v5337_v59, %v1603_v52  ;;  %v1612_v6 = vadd.f32 %v5338_v38, %v1604_v58  ;;  %800 = vmatprep.subr.bf16.mxu0 %v5267_v35  ;;  %v1709_v25 = vadd.f32 %v1707_v45, %v1705_v31  ;;  %v1826_v44 = vmul.f32 %v4231_v33, %v4081_v10  ;;  %v5340_v31 = vld [vmem:[#allocation33_spill] sm:$0xff]  ;;  %v5341_v10 = vld [vmem:[#allocation38_spill] sm:$0xff]  ;;  %v5342_v38 = vld [vmem:[#allocation39_spill] sm:$0xff] }
 0x160   : > { %v1710_v39 = vadd.f32 %v1708_v24, %v1706_v51  ;;  %v1819_v2 = vadd.f32 %v4212_v3, %v1817_v54  ;;  %916 = vmatprep.subr.bf16.mxu1 %v5267_v35  ;;  %v1820_v42 = vadd.f32 %v4218_v16, %v1818_v4  ;;  %v1829_v59 = vmul.f32 %v4259_v62, %v5335_v37  ;;  %v5339_v24 = vld [vmem:[#allocation35_spill] sm:$0xff] }
 0x161   : > { %v4369_v52 = vadd.f32 %v1617_v5, %v1611_v19  ;;  %v4371_v58 = vadd.f32 %v1618_v26, %v1612_v6  ;;  %2491 = vmatpush1.bf16.msk.msra.mxu0 %vm3849_vm4, %v4083_v56  ;;  %v1713_v45 = vadd.f32 %v5339_v24, %v1709_v25  ;;  %v1830_v5 = vmul.f32 %v4267_v28, %v5335_v37 }
 0x162   : > { %v1714_v51 = vadd.f32 %v5340_v31, %v1710_v39  ;;  %v1823_v54 = vadd.f32 %v5341_v10, %v1819_v2  ;;  %2505 = vmatpush1.bf16.msk.msra.mxu1 %vm3849_vm4, %v4083_v56  ;;  %v1824_v6 = vadd.f32 %v5342_v38, %v1820_v42  ;;  %v1837_v4 = vmul.f32 %v4274_v55, %v4090_v40  ;;  %v5343_v10 = vld [vmem:[#allocation16_spill] sm:$0xff] }
 0x163   : > { %v1621_v26 = vmax.f32 %v4369_v52, 0.0  ;;  %v1622_v19 = vmax.f32 %v4371_v58, 0.0  ;;  %918 = vmatprep.subr.bf16.mxu1 %v5267_v35  ;;  %1028 = vmatprep.subr.bf16.mxu0 %v5267_v35  ;;  %v1717_v25 = vadd.f32 %v1715_v0, %v1713_v45  ;;  %v1838_v24 = vmul.f32 %v4281_v9, %v4090_v40 }
 0x164   : > { %v1718_v39 = vadd.f32 %v1716_v43, %v1714_v51  ;;  %v1827_v2 = vadd.f32 %v1825_v50, %v1823_v54  ;;  %817 = vmatmul.mubr.bf16.vlgmr.msra.gmra.mrb[8].mxu0 %v3996_v22  ;;  %v1828_v31 = vadd.f32 %v1826_v44, %v1824_v6  ;;  %v1845_v38 = vmul.f32 %v4165_v15, %v5343_v10  ;;  %v5346_v6 = vld [vmem:[#allocation51_spill] sm:$0xff] }
 0x165   : > { %v2882_v42 = vpack.i.bf16 %v1622_v19, %v1621_v26  ;;  %2516 = vmatpush1.bf16.msk.msra.mxu0 %vm3778_vm3, %v4054_v57  ;;  %v1725_v43 = vadd.f32 %v1723_v18, %v1717_v25  ;;  %v1846_v45 = vmul.f32 %v4172_v8, %v5343_v10  ;;  %v1861_v51 = vmul.f32 %v4242_v41, %v4132_v1  ;;  %v5344_v18 = vld [vmem:[#allocation37_spill] sm:$0xff] }
 0x166   : > { %v1726_v0 = vadd.f32 %v1724_v23, %v1718_v39  ;;  %v1831_v50 = vadd.f32 %v1829_v59, %v1827_v2  ;;  %2508 = vmatpush1.bf16.msk.msra.mxu1 %vm3778_vm3, %v4187_v14  ;;  %v1832_v44 = vadd.f32 %v1830_v5, %v1828_v31  ;;  %v1862_v57 = vmul.f32 %v4250_v32, %v4132_v1  ;;  %v5345_v59 = vld [vmem:[#allocation48_spill] sm:$0xff] }
 0x167   : > { %2883 = vrot.lane.b32.xlu1 %v2882_v42, %s2986_s21  ;;  %2878 = vrot.lane.b32.xlu0 %v2882_v42, %s2985_s20  ;;  %v1733_v23 = vadd.f32 %v5344_v18, %v1725_v43  ;;  %v1939_v39 = vmul.f32 %v4193_v7, %v5335_v37  ;;  %v5347_v2 = vld [vmem:[#allocation36_spill] sm:$0xff]  ;;  %v1940_v5 = vmul.f32 %v4200_v21, %v5335_v37 }
 0x168   : > { %v1734_v54 = vadd.f32 %v5345_v59, %v1726_v0  ;;  %v1835_v25 = vadd.f32 %v5346_v6, %v1831_v50  ;;  %920 = vmatprep.subr.bf16.mxu1 %v5267_v35  ;;  %v1836_v42 = vadd.f32 %v5347_v2, %v1832_v44  ;;  %v1947_v31 = vmul.f32 %v4224_v12, %v4090_v40  ;;  %v5348_v6 = vld [vmem:[#allocation20_spill] sm:$0xff] }
 0x169   : > { %v1948_v43 = vmul.f32 %v4231_v33, %v4090_v40  ;;  %1030 = vmatprep.subr.bf16.mxu0 %v5267_v35  ;;  %v4431_v0 = vadd.f32 %v1739_v48, %v1733_v23  ;;  %v1941_v59 = vadd.f32 %v4212_v3, %v1939_v39  ;;  %v1942_v37 = vadd.f32 %v4218_v16, %v1940_v5  ;;  %v5349_v23 = vld [vmem:[#allocation43_spill] sm:$0xff]  ;;  %v5351_v5 = vld [vmem:[#allocation9_spill] sm:$0xff] }
 0x16a   : > { %v4433_v50 = vadd.f32 %v1740_v34, %v1734_v54  ;;  %v1839_v18 = vadd.f32 %v1837_v4, %v1835_v25  ;;  %921 = vmatpush1.bf16.msra.mxu1 %v5348_v6  ;;  %v1840_v44 = vadd.f32 %v1838_v24, %v1836_v42  ;;  %v1951_v2 = vmul.f32 %v4259_v62, %v5343_v10  ;;  %v5350_v25 = vld [vmem:[#allocation41_spill] sm:$0xff] }
 0x16b   : > { %v1952_v40 = vmul.f32 %v4267_v28, %v5343_v10  ;;  %1031 = vmatpush1.bf16.msra.mxu0 %v5336_v47  ;;  %v5167_v48 = vmax.f32 %v4431_v0, 0.0  ;;  %v1945_v54 = vadd.f32 %v5349_v23, %v1941_v59  ;;  %922 = vmatprep.subr.bf16.mxu1 %v5267_v35  ;;  %v1946_v39 = vadd.f32 %v5350_v25, %v1942_v37 }
 0x16c   : > { %v5164_v34 = vmax.f32 %v4433_v50, 0.0  ;;  %v1847_v4 = vadd.f32 %v1845_v38, %v1839_v18  ;;  %1032 = vmatprep.subr.bf16.mxu0 %v5267_v35  ;;  %v1848_v24 = vadd.f32 %v1846_v45, %v1840_v44  ;;  %v1959_v42 = vmul.f32 %v4274_v55, %v4132_v1  ;;  %2493 = vmatprep.mubr.msk.bf16.mxu0 %vm533_vm2, %v4015_v49  ;;  %v5352_v45 = vld [vmem:[#allocation40_spill] sm:$0xff] }
 0x16d   : > { %v1960_v47 = vmul.f32 %v4281_v9, %v4132_v1  ;;  %v1949_v59 = vadd.f32 %v1947_v31, %v1945_v54  ;;  %v1950_v37 = vadd.f32 %v1948_v43, %v1946_v39  ;;  %v1967_v23 = vmul.f32 %v4165_v15, %v4028_v36  ;;  %825 = vmatmul.mubr.bf16.gmra.mrb[12].mxu0 %v4073_v61 }
 0x16e   : > { %v2892_v38 = vpack.i.bf16 %v5164_v34, %v5167_v48  ;;  %v1855_v18 = vadd.f32 %v5351_v5, %v1847_v4  ;;  %2511 = vmatpush1.bf16.msk.msra.mxu1 %vm3849_vm4, %v4204_v20  ;;  %v1856_v44 = vadd.f32 %v5352_v45, %v1848_v24  ;;  %v1968_v25 = vmul.f32 %v4172_v8, %v4028_v36 }
 0x16f   : > { %2519 = vmatpush1.bf16.msk.msra.mxu0 %vm3849_vm4, %v4083_v56  ;;  %v1953_v4 = vadd.f32 %v1951_v2, %v1949_v59  ;;  %v1983_v43 = vmul.f32 %v4242_v41, %v4136_v11  ;;  %v1954_v24 = vadd.f32 %v1952_v40, %v1950_v37  ;;  %v1984_v39 = vmul.f32 %v4250_v32, %v4136_v11 }
 0x170   : > { %2893 = vrot.lane.b32.xlu1 %v2892_v38, %s2986_s21  ;;  %2888 = vrot.lane.b32.xlu0 %v2892_v38, %s2985_s20  ;;  %v4473_v31 = vadd.f32 %v1861_v51, %v1855_v18  ;;  %v4477_v54 = vadd.f32 %v1862_v57, %v1856_v44  ;;  %v2061_v5 = vmul.f32 %v4193_v7, %v5343_v10  ;;  %v5353_v38 = vld [vmem:[#allocation44_spill] sm:$0xff]  ;;  %v5354_v18 = vld [vmem:[#allocation45_spill] sm:$0xff] }
 0x171   : > { %939 = vmatmul.mubr.bf16.vlgmr.msra.gmra.mrb[8].mxu1 %v3996_v22  ;;  %v1957_v51 = vadd.f32 %v5353_v38, %v1953_v4  ;;  %v2062_v2 = vmul.f32 %v4200_v21, %v5343_v10  ;;  %v2069_v57 = vmul.f32 %v4224_v12, %v4132_v1  ;;  %1034 = vmatprep.subr.bf16.mxu0 %v5267_v35  ;;  %v5355_v38 = vld [vmem:[#allocation42_spill] sm:$0xff] }
 0x172   : > { %v5166_v56 = vmax.f32 %v4473_v31, 0.0  ;;  %1150 = vmatprep.subr.bf16.mxu1 %v5267_v35  ;;  %v5165_v40 = vmax.f32 %v4477_v54, 0.0  ;;  %v1958_v59 = vadd.f32 %v5354_v18, %v1954_v24  ;;  %v2063_v45 = vadd.f32 %v4212_v3, %v2061_v5  ;;  %2513 = vmatprep.mubr.msk.bf16.mxu1 %vm533_vm2, %v4015_v49 }
 0x173   : > { %v2070_v44 = vmul.f32 %v4231_v33, %v4132_v1  ;;  %2522 = vmatpush1.bf16.msk.msra.mxu0 %vm3778_vm3, %v4187_v14  ;;  %2536 = vmatpush1.bf16.msk.msra.mxu1 %vm3778_vm3, %v4187_v14  ;;  %v1961_v10 = vadd.f32 %v1959_v42, %v1957_v51  ;;  %v2064_v37 = vadd.f32 %v4218_v16, %v2062_v2  ;;  %v5356_v42 = vld [vmem:[#allocation10_spill] sm:$0xff] }
 0x174   : > { %v2073_v4 = vmul.f32 %v4259_v62, %v4028_v36  ;;  %v2074_v24 = vmul.f32 %v4267_v28, %v4028_v36  ;;  %1036 = vmatprep.subr.bf16.mxu0 %v5267_v35  ;;  %v2902_v1 = vpack.i.bf16 %v5165_v40, %v5166_v56  ;;  %v1962_v5 = vadd.f32 %v1960_v47, %v1958_v59  ;;  %v5358_v40 = vld [vmem:[#allocation18_spill] sm:$0xff] }
 0x175   : > { %v2067_v18 = vadd.f32 %v5355_v38, %v2063_v45  ;;  %1152 = vmatprep.subr.bf16.mxu1 %v5267_v35  ;;  %v1969_v14 = vadd.f32 %v1967_v23, %v1961_v10  ;;  %v2068_v51 = vadd.f32 %v5356_v42, %v2064_v37  ;;  %v2081_v2 = vmul.f32 %v4274_v55, %v4136_v11  ;;  %v5357_v23 = vld [vmem:[#allocation4_spill] sm:$0xff] }
 0x176   : > { %v2082_v34 = vmul.f32 %v4281_v9, %v4136_v11  ;;  %2903 = vrot.lane.b32.xlu1 %v2902_v1, %s2986_s21  ;;  %2898 = vrot.lane.b32.xlu0 %v2902_v1, %s2985_s20  ;;  %v1970_v47 = vadd.f32 %v1968_v25, %v1962_v5  ;;  %v2089_v45 = vmul.f32 %v4165_v15, %v4045_v53 }
 0x177   : > { %v2071_v59 = vadd.f32 %v2069_v57, %v2067_v18  ;;  %v1977_v10 = vadd.f32 %v5357_v23, %v1969_v14  ;;  %v2072_v37 = vadd.f32 %v2070_v44, %v2068_v51  ;;  %v2090_v38 = vmul.f32 %v4172_v8, %v4045_v53  ;;  %1037 = vmatpush1.bf16.msra.mxu0 %v5348_v6  ;;  %v2834_v14 = vpop.permute.xlu1 %2833 }
 0x178   : > { %v2105_v42 = vmul.f32 %v4242_v41, %v4185_v46  ;;  %v1978_v56 = vadd.f32 %v5358_v40, %v1970_v47  ;;  %v2106_v25 = vmul.f32 %v4250_v32, %v4185_v46  ;;  %v2183_v15 = vmul.f32 %v4193_v7, %v4028_v36  ;;  %1153 = vmatpush1.bf16.msra.mxu1 %v5348_v6 }
 0x179   : > { %v2075_v48 = vadd.f32 %v2073_v4, %v2071_v59  ;;  %v1985_v57 = vadd.f32 %v1983_v43, %v1977_v10  ;;  %v2076_v44 = vadd.f32 %v2074_v24, %v2072_v37  ;;  %v2184_v8 = vmul.f32 %v4200_v21, %v4028_v36  ;;  %v5359_v4 = vld [vmem:[#allocation13_spill] sm:$0xff]  ;;  %1038 = vmatprep.subr.bf16.mxu0 %v5267_v35  ;;  %v5360_v43 = vld [vmem:[#allocation14_spill] sm:$0xff]  ;;  %v5368_v37 = vld [vmem:[#allocation8_spill] sm:$0xff] }
 0x17a   : > { %v2191_v41 = vmul.f32 %v4224_v12, %v4136_v11  ;;  %v1986_v40 = vadd.f32 %v1984_v39, %v1978_v56  ;;  %v2185_v32 = vadd.f32 %v4212_v3, %v2183_v15  ;;  %v2192_v7 = vmul.f32 %v4231_v33, %v4136_v11  ;;  %1154 = vmatprep.subr.bf16.mxu1 %v5267_v35  ;;  %v5361_v3 = vld [vmem:[#allocation6_spill] sm:$0xff]  ;;  %v5362_v33 = vld [vmem:[#allocation7_spill] sm:$0xff] }
 0x17b   : > { %v2079_v1 = vadd.f32 %v5359_v4, %v2075_v48  ;;  %v1987_v6 = vmax.f32 %v1985_v57, 0.0  ;;  %v2080_v24 = vadd.f32 %v5360_v43, %v2076_v44  ;;  %v2186_v36 = vadd.f32 %v4218_v16, %v2184_v8  ;;  %947 = vmatmul.mubr.bf16.gmra.mrb[12].mxu1 %v4073_v61  ;;  %2525 = vmatpush1.bf16.msk.msra.mxu0 %vm3849_vm4, %v4204_v20  ;;  %v5371_v57 = vld [vmem:[#allocation24_spill] sm:$0xff] }
 0x17c   : > { %v2195_v21 = vmul.f32 %v4259_v62, %v4045_v53  ;;  %v1988_v12 = vmax.f32 %v1986_v40, 0.0  ;;  %v2189_v39 = vadd.f32 %v5361_v3, %v2185_v32  ;;  %v2196_v11 = vmul.f32 %v4267_v28, %v4045_v53  ;;  %2539 = vmatpush1.bf16.msk.msra.mxu1 %vm3849_vm4, %v4204_v20  ;;  %1040 = vmatprep.subr.bf16.mxu0 %v5267_v35  ;;  %v4573_v20 = vld [vmem:[%s5102_s3 + $0x4] ss:$8 sps:$4 sm:$0xff]   ;;  %v5374_v32 = vld [vmem:[#allocation19_spill] sm:$0xff] }
 0x17d   : > { %v2083_v48 = vadd.f32 %v2081_v2, %v2079_v1  ;;  %v2084_v16 = vadd.f32 %v2082_v34, %v2080_v24  ;;  %v2190_v62 = vadd.f32 %v5362_v33, %v2186_v36  ;;  %v2203_v56 = vmul.f32 %v4274_v55, %v4185_v46  ;;  %1156 = vmatprep.subr.bf16.mxu1 %v5267_v35  ;;  %v5365_v34 = vld [vmem:[#allocation5_spill] sm:$0xff] }
 0x17e   : > { %v2204_v5 = vmul.f32 %v4281_v9, %v4185_v46  ;;  %v2912_v53 = vpack.i.bf16 %v1988_v12, %v1987_v6  ;;  %v2193_v18 = vadd.f32 %v2191_v41, %v2189_v39  ;;  %2532 = vmatprep.mubr.msk.bf16.mxu0 %vm533_vm2, %v4573_v20  ;;  %2552 = vmatprep.mubr.msk.bf16.mxu1 %vm533_vm2, %v4573_v20  ;;  %v5363_v46 = vmax.f32 %v4098_v29, 0.0  ;;  %v5373_v41 = vld [vmem:[#allocation11_spill] sm:$0xff] }
 0x17f   : > { %v2091_v28 = vadd.f32 %v2089_v45, %v2083_v48  ;;  %v2092_v51 = vadd.f32 %v2090_v38, %v2084_v16  ;;  %v2194_v2 = vadd.f32 %v2192_v7, %v2190_v62  ;;  %v5364_v55 = vmax.f32 %v4100_v60, 0.0  ;;  %2528 = vmatpush1.bf16.msk.msra.mxu0 %vm3778_vm3, %v4235_v13  ;;  %v5369_v60 = vld [vmem:[#allocation17_spill] sm:$0xff] }
 0x180   : > { %2913 = vrot.lane.b32.xlu1 %v2912_v53, %s2986_s21  ;;  %2908 = vrot.lane.b32.xlu0 %v2912_v53, %s2985_s20  ;;  %v2197_v59 = vadd.f32 %v2195_v21, %v2193_v18  ;;  %v5366_v45 = vmax.f32 %v4142_v30, 0.0  ;;  %v5367_v23 = vmax.f32 %v4144_v27, 0.0  ;;  %v5370_v15 = vmax.f32 %v5369_v60, 0.0  ;;  %v5380_v18 = vld [vmem:[#allocation23_spill] sm:$0xff] }
 0x181   : > { %v4583_v9 = vpack.c.bf16 %v5364_v55, %v5363_v46  ;;  %v2099_v47 = vadd.f32 %v5365_v34, %v2091_v28  ;;  %v2100_v38 = vadd.f32 %v5368_v37, %v2092_v51  ;;  %v2198_v29 = vadd.f32 %v2196_v11, %v2194_v2  ;;  %2542 = vmatpush1.bf16.msk.msra.mxu1 %vm3778_vm3, %v4235_v13  ;;  %v5379_v11 = vld [vmem:[#allocation21_spill] sm:$0xff] }
 0x182   : > { %v4592_v10 = vpack.c.bf16 %v5367_v23, %v5366_v45  ;;  %v5372_v44 = vmax.f32 %v5371_v57, 0.0  ;;  %v2836_v27 = vunpack.i.h.bf16 %v2834_v14  ;;  %v2201_v40 = vadd.f32 %v5373_v41, %v2197_v59  ;;  %1042 = vmatprep.subr.bf16.mxu0 %v5267_v35  ;;  %1158 = vmatprep.subr.bf16.mxu1 %v5267_v35 }
 0x183   : > { %v2107_v8 = vadd.f32 %v2105_v42, %v2099_v47  ;;  %v4614_v4 = vpack.c.bf16 %v1622_v19, %v1621_v26  ;;  %v2108_v1 = vadd.f32 %v2106_v25, %v2100_v38  ;;  %v2202_v7 = vadd.f32 %v5374_v32, %v2198_v29  ;;  %v2839_v19 = vpop.permute.xlu0 %2838  ;;  %1043 = vmatpush1.bf16.msra.mxu0 %v5379_v11 }
 0x184   : > { %v4605_v30 = vpack.c.bf16 %v5372_v44, %v5370_v15  ;;  %v5375_v43 = vmax.f32 %v4431_v0, 0.0  ;;  %v5376_v24 = vmax.f32 %v4433_v50, 0.0  ;;  %v5377_v36 = vmax.f32 %v4473_v31, 0.0  ;;  %1044 = vmatprep.subr.bf16.mxu0 %v5267_v35 }
 0x185   : > { %v5378_v21 = vmax.f32 %v4477_v54, 0.0  ;;  %v2835_v52 = vunpack.i.l.bf16 %v2834_v14  ;;  %v2109_v3 = vmax.f32 %v2107_v8, 0.0  ;;  %v2205_v58 = vadd.f32 %v2203_v56, %v2201_v40  ;;  %1159 = vmatpush1.bf16.msra.mxu1 %v5379_v11 }
 0x186   : > { %v4621_v42 = vpack.c.bf16 %v5376_v24, %v5375_v43  ;;  %v4629_v26 = vpack.c.bf16 %v1988_v12, %v1987_v6  ;;  %v2110_v25 = vmax.f32 %v2108_v1, 0.0  ;;  %v2206_v39 = vadd.f32 %v2204_v5, %v2202_v7  ;;  %1160 = vmatprep.subr.bf16.mxu1 %v5267_v35  ;;  %v2844_v5 = vpop.permute.xlu1 %2843  ;;  %v4773_v43 = vld [vmem:[%s5102_s3] ss:$8 sps:$4 sm:$0xff]  }
 0x187   : > { %v4627_v48 = vpack.c.bf16 %v5378_v21, %v5377_v36  ;;  %v2207_v0 = vmax.f32 %v2205_v58, 0.0  ;;  %v2530_v16 = vpack.c.bf16 %v2836_v27, %v2835_v52  ;;  %v2841_v33 = vunpack.i.h.bf16 %v2839_v19  ;;  %v4785_v21 = vld [vmem:[%s5102_s3 + $0x14] ss:$8 sps:$4 sm:$0xff]  }
 0x188   : > { %v2922_v50 = vpack.i.bf16 %v2110_v25, %v2109_v3  ;;  %v2208_v31 = vmax.f32 %v2206_v39, 0.0  ;;  %v4635_v54 = vpack.c.bf16 %v2110_v25, %v2109_v3  ;;  %v2840_v6 = vunpack.i.l.bf16 %v2839_v19  ;;  %v4796_v3 = vld [vmem:[%s5102_s3 + $0x10] ss:$8 sps:$4 sm:$0xff]  }
 0x189   : > { %2531 = vmatpush1.bf16.msk.msra.mxu0 %vm3849_vm4, %v2530_v16  ;;  %2545 = vmatpush1.bf16.msk.msra.mxu1 %vm3849_vm4, %v2530_v16  ;;  %v2846_v53 = vunpack.i.h.bf16 %v2844_v5  ;;  %v2845_v28 = vunpack.i.l.bf16 %v2844_v5 }
 0x18a   : > { %2923 = vrot.lane.b32.xlu1 %v2922_v50, %s2986_s21  ;;  %2918 = vrot.lane.b32.xlu0 %v2922_v50, %s2985_s20  ;;  %v2932_v12 = vpack.i.bf16 %v2208_v31, %v2207_v0  ;;  %v4639_v62 = vpack.c.bf16 %v2208_v31, %v2207_v0  ;;  %v2547_v56 = vpack.c.bf16 %v2841_v33, %v2840_v6 }
 0x18b   : > { %1162 = vmatprep.subr.bf16.mxu1 %v5267_v35  ;;  %1272 = vmatprep.subr.bf16.mxu0 %v5267_v35  ;;  %v2550_v14 = vpack.c.bf16 %v2846_v53, %v2845_v28 }
 0x18c   : > { %1061 = vmatmul.mubr.bf16.vlgmr.msra.gmra.mrb[16].mxu0 %v3996_v22 }
 0x18d   : > { %2548 = vmatpush1.bf16.msk.msra.mxu1 %vm3778_vm3, %v2547_v56  ;;  %2556 = vmatpush1.bf16.msk.msra.mxu0 %vm3778_vm3, %v4235_v13 }
 0x18e   : > { %2933 = vrot.lane.b32.xlu1 %v2932_v12, %s2986_s21  ;;  %2928 = vrot.lane.b32.xlu0 %v2932_v12, %s2985_s20 }
 0x18f   : > { %1164 = vmatprep.subr.bf16.mxu1 %v5267_v35  ;;  %1274 = vmatprep.subr.bf16.mxu0 %v5267_v35 }
 0x190   : > { %2533 = vmatprep.mubr.msk.bf16.mxu0 %vm533_vm2, %v4015_v49 }
 0x191   : > { %1165 = vmatpush1.bf16.msra.mxu1 %v5380_v18  ;;  %1275 = vmatpush1.bf16.msra.mxu0 %v5379_v11 }
 0x192   : > { %1166 = vmatprep.subr.bf16.mxu1 %v5267_v35  ;;  %1276 = vmatprep.subr.bf16.mxu0 %v5267_v35 }
 0x194   : > { %1069 = vmatmul.mubr.bf16.gmra.mrb[20].mxu0 %v4073_v61 }
 0x195   : > { %2551 = vmatpush1.bf16.msk.msra.mxu1 %vm3849_vm4, %v2550_v14  ;;  %2559 = vmatpush1.bf16.msk.msra.mxu0 %vm3849_vm4, %v2530_v16 }
 0x196   : > { %1394 = vmatprep.subr.bf16.mxu1 %v5267_v35  ;;  %1278 = vmatprep.subr.bf16.mxu0 %v5267_v35 }
 0x197   : > { %2572 = vmatprep.mubr.msk.bf16.mxu0 %vm533_vm2, %v4573_v20 }
 0x198   : > { %1183 = vmatmul.mubr.bf16.vlgmr.msra.gmra.mrb[16].mxu1 %v3996_v22 }
 0x199   : > { %2576 = vmatpush1.bf16.msk.msra.mxu1 %vm3778_vm3, %v2547_v56  ;;  %2553 = vmatprep.mubr.msk.bf16.mxu1 %vm533_vm2, %v4015_v49 }
 0x19a   : > { %2562 = vmatpush1.bf16.msk.msra.mxu0 %vm3778_vm3, %v2547_v56  ;;  %1396 = vmatprep.subr.bf16.mxu1 %v5267_v35 }
 0x19b   : > { %1280 = vmatprep.subr.bf16.mxu0 %v5267_v35 }
 0x19d   : > { %1397 = vmatpush1.bf16.msra.mxu1 %v5380_v18 }
 0x19e   : > { %1281 = vmatpush1.bf16.msra.mxu0 %v5380_v18  ;;  %1398 = vmatprep.subr.bf16.mxu1 %v5267_v35 }
 0x19f   : > { %1282 = vmatprep.subr.bf16.mxu0 %v5267_v35 }
 0x1a0   : > { %1191 = vmatmul.mubr.bf16.gmra.mrb[20].mxu1 %v4073_v61 }
 0x1a1   : > { %2579 = vmatpush1.bf16.msk.msra.mxu1 %vm3849_vm4, %v2550_v14  ;;  %2592 = vmatprep.mubr.msk.bf16.mxu1 %vm533_vm2, %v4573_v20 }
 0x1a2   : > { %2565 = vmatpush1.bf16.msk.msra.mxu0 %vm3849_vm4, %v2550_v14  ;;  %1400 = vmatprep.subr.bf16.mxu1 %v5267_v35  ;;  %v4857_v14 = vld [vmem:[%s5103_s4] sm:$0xff] }
 0x1a3   : > { %1284 = vmatprep.subr.bf16.mxu0 %v5267_v35 }
 0x1bc   : > { %v2849_v13 = vpop.permute.xlu0 %2848  ;;  %v2854_v55 = vpop.permute.xlu1 %2853 }
 0x1bd   : > { %v2851_v51 = vunpack.i.h.bf16 %v2849_v13  ;;  %v2850_v2 = vunpack.i.l.bf16 %v2849_v13  ;;  %v2856_v34 = vunpack.i.h.bf16 %v2854_v55  ;;  %v2855_v47 = vunpack.i.l.bf16 %v2854_v55 }
 0x1bf   : > { %v2567_v46 = vpack.c.bf16 %v2851_v51, %v2850_v2  ;;  %v2570_v45 = vpack.c.bf16 %v2856_v34, %v2855_v47  ;;  %v4866_v2 = vld [vmem:[%s5103_s4 + $0x8] sm:$0xff] }
 0x1c1   : > { %2568 = vmatpush1.bf16.msk.msra.mxu0 %vm3778_vm3, %v2567_v46  ;;  %2582 = vmatpush1.bf16.msk.msra.mxu1 %vm3778_vm3, %v2567_v46 }
 0x1c2   : > { %1286 = vmatprep.subr.bf16.mxu0 %v5267_v35  ;;  %1402 = vmatprep.subr.bf16.mxu1 %v5267_v35 }
 0x1c3   : > { %v2859_v59 = vpop.permute.xlu0 %2858  ;;  %v2864_v29 = vpop.permute.xlu1 %2863 }
 0x1c4   : > { %v2861_v23 = vunpack.i.h.bf16 %v2859_v59  ;;  %v2860_v37 = vunpack.i.l.bf16 %v2859_v59  ;;  %v2866_v60 = vunpack.i.h.bf16 %v2864_v29  ;;  %v2865_v15 = vunpack.i.l.bf16 %v2864_v29 }
 0x1c5   : > { %1287 = vmatpush1.bf16.msra.mxu0 %v4583_v9  ;;  %1403 = vmatpush1.bf16.msra.mxu1 %v4583_v9 }
 0x1c6   : > { %1288 = vmatprep.subr.bf16.mxu0 %v5267_v35  ;;  %1404 = vmatprep.subr.bf16.mxu1 %v5267_v35  ;;  %v2587_v38 = vpack.c.bf16 %v2861_v23, %v2860_v37  ;;  %v2590_v57 = vpack.c.bf16 %v2866_v60, %v2865_v15 }
 0x1c9   : > { %2571 = vmatpush1.bf16.msk.msra.mxu0 %vm3849_vm4, %v2570_v45  ;;  %2585 = vmatpush1.bf16.msk.msra.mxu1 %vm3849_vm4, %v2570_v45 }
 0x1ca   : > { %1406 = vmatprep.subr.bf16.mxu1 %v5267_v35  ;;  %1516 = vmatprep.subr.bf16.mxu0 %v5267_v35 }
 0x1cc   : > { %1305 = vmatmul.mubr.bf16.vlgmr.msra.gmra.mrb[24].mxu0 %v3996_v22 }
 0x1cd   : > { %2588 = vmatpush1.bf16.msk.msra.mxu1 %vm3778_vm3, %v2587_v38  ;;  %2596 = vmatpush1.bf16.msk.msra.mxu0 %vm3778_vm3, %v2567_v46 }
 0x1ce   : > { %1408 = vmatprep.subr.bf16.mxu1 %v5267_v35  ;;  %1518 = vmatprep.subr.bf16.mxu0 %v5267_v35 }
 0x1cf   : > { %2573 = vmatprep.mubr.msk.bf16.mxu0 %vm533_vm2, %v4015_v49 }
 0x1d1   : > { %1409 = vmatpush1.bf16.msra.mxu1 %v4592_v10  ;;  %1519 = vmatpush1.bf16.msra.mxu0 %v4583_v9  ;;  %v2869_v9 = vpop.permute.xlu0 %2868 }
 0x1d2   : > { %1410 = vmatprep.subr.bf16.mxu1 %v5267_v35  ;;  %1520 = vmatprep.subr.bf16.mxu0 %v5267_v35  ;;  %v2870_v44 = vunpack.i.l.bf16 %v2869_v9 }
 0x1d4   : > { %1313 = vmatmul.mubr.bf16.gmra.mrb[28].mxu0 %v4073_v61 }
 0x1d5   : > { %2591 = vmatpush1.bf16.msk.msra.mxu1 %vm3849_vm4, %v2590_v57  ;;  %2599 = vmatpush1.bf16.msk.msra.mxu0 %vm3849_vm4, %v2570_v45 }
 0x1d6   : > { %1522 = vmatprep.subr.bf16.mxu0 %v5267_v35  ;;  %1638 = vmatprep.subr.bf16.mxu1 %v5267_v35 }
 0x1d7   : > { %2612 = vmatprep.mubr.msk.bf16.mxu0 %vm533_vm2, %v4573_v20 }
 0x1d8   : > { %1427 = vmatmul.mubr.bf16.vlgmr.msra.gmra.mrb[24].mxu1 %v3996_v22  ;;  %v2871_v22 = vunpack.i.h.bf16 %v2869_v9 }
 0x1d9   : > { %2602 = vmatpush1.bf16.msk.msra.mxu0 %vm3778_vm3, %v2587_v38  ;;  %2616 = vmatpush1.bf16.msk.msra.mxu1 %vm3778_vm3, %v2587_v38  ;;  %v2879_v8 = vpop.permute.xlu0 %2878 }
 0x1da   : > { %1524 = vmatprep.subr.bf16.mxu0 %v5267_v35  ;;  %1640 = vmatprep.subr.bf16.mxu1 %v5267_v35  ;;  %v2881_v40 = vunpack.i.h.bf16 %v2879_v8  ;;  %v2880_v1 = vunpack.i.l.bf16 %v2879_v8 }
 0x1db   : > { %2593 = vmatprep.mubr.msk.bf16.mxu1 %vm533_vm2, %v4015_v49  ;;  %v2607_v49 = vpack.c.bf16 %v2871_v22, %v2870_v44 }
 0x1dc   : > { %v2627_v32 = vpack.c.bf16 %v2881_v40, %v2880_v1 }
 0x1dd   : > { %1525 = vmatpush1.bf16.msra.mxu0 %v4592_v10  ;;  %1641 = vmatpush1.bf16.msra.mxu1 %v4592_v10  ;;  %v2874_v10 = vpop.permute.xlu1 %2873 }
 0x1de   : > { %1526 = vmatprep.subr.bf16.mxu0 %v5267_v35  ;;  %1642 = vmatprep.subr.bf16.mxu1 %v5267_v35  ;;  %v2875_v27 = vunpack.i.l.bf16 %v2874_v10 }
 0x1e0   : > { %1435 = vmatmul.mubr.bf16.gmra.mrb[28].mxu1 %v4073_v61  ;;  %v2876_v61 = vunpack.i.h.bf16 %v2874_v10 }
 0x1e1   : > { %2605 = vmatpush1.bf16.msk.msra.mxu0 %vm3849_vm4, %v2590_v57  ;;  %2619 = vmatpush1.bf16.msk.msra.mxu1 %vm3849_vm4, %v2590_v57  ;;  %v2884_v7 = vpop.permute.xlu1 %2883  ;;  %v4889_v57 = vld [vmem:[%s5103_s4 + $0x10] sm:$0xff] }
 0x1e2   : > { %1528 = vmatprep.subr.bf16.mxu0 %v5267_v35  ;;  %1644 = vmatprep.subr.bf16.mxu1 %v5267_v35  ;;  %v2610_v41 = vpack.c.bf16 %v2876_v61, %v2875_v27  ;;  %v2886_v24 = vunpack.i.h.bf16 %v2884_v7  ;;  %v2885_v36 = vunpack.i.l.bf16 %v2884_v7 }
 0x1e3   : > { %2632 = vmatprep.mubr.msk.bf16.mxu1 %vm533_vm2, %v4573_v20 }
 0x1e4   : > { %v2630_v52 = vpack.c.bf16 %v2886_v24, %v2885_v36 }
 0x1e5   : > { %2608 = vmatpush1.bf16.msk.msra.mxu0 %vm3778_vm3, %v2607_v49  ;;  %2622 = vmatpush1.bf16.msk.msra.mxu1 %vm3778_vm3, %v2607_v49 }
 0x1e6   : > { %1530 = vmatprep.subr.bf16.mxu0 %v5267_v35  ;;  %1646 = vmatprep.subr.bf16.mxu1 %v5267_v35 }
 0x1e9   : > { %1531 = vmatpush1.bf16.msra.mxu0 %v4605_v30  ;;  %1647 = vmatpush1.bf16.msra.mxu1 %v4605_v30 }
 0x1ea   : > { %1532 = vmatprep.subr.bf16.mxu0 %v5267_v35  ;;  %1648 = vmatprep.subr.bf16.mxu1 %v5267_v35 }
 0x1ed   : > { %2611 = vmatpush1.bf16.msk.msra.mxu0 %vm3849_vm4, %v2610_v41  ;;  %2625 = vmatpush1.bf16.msk.msra.mxu1 %vm3849_vm4, %v2610_v41 }
 0x1ee   : > { %1650 = vmatprep.subr.bf16.mxu1 %v5267_v35  ;;  %1760 = vmatprep.subr.bf16.mxu0 %v5267_v35 }
 0x1f0   : > { %1549 = vmatmul.mubr.bf16.vlgmr.msra.gmra.mrb[32].mxu0 %v4773_v43 }
 0x1f1   : > { %2628 = vmatpush1.bf16.msk.msra.mxu1 %vm3778_vm3, %v2627_v32  ;;  %2636 = vmatpush1.bf16.msk.msra.mxu0 %vm3778_vm3, %v2607_v49  ;;  %v4900_v49 = vld [vmem:[%s5103_s4 + $0x18] sm:$0xff] }
 0x1f2   : > { %1652 = vmatprep.subr.bf16.mxu1 %v5267_v35  ;;  %1762 = vmatprep.subr.bf16.mxu0 %v5267_v35 }
 0x1f3   : > { %2613 = vmatprep.mubr.msk.bf16.mxu0 %vm533_vm2, %v4785_v21 }
 0x1f5   : > { %1653 = vmatpush1.bf16.msra.mxu1 %v4614_v4  ;;  %1763 = vmatpush1.bf16.msra.mxu0 %v4605_v30  ;;  %v2889_v30 = vpop.permute.xlu0 %2888 }
 0x1f6   : > { %1654 = vmatprep.subr.bf16.mxu1 %v5267_v35  ;;  %1764 = vmatprep.subr.bf16.mxu0 %v5267_v35  ;;  %v2891_v58 = vunpack.i.h.bf16 %v2889_v30  ;;  %v2890_v19 = vunpack.i.l.bf16 %v2889_v30 }
 0x1f8   : > { %1557 = vmatmul.mubr.bf16.gmra.mrb[36].mxu0 %v4796_v3  ;;  %v2647_v25 = vpack.c.bf16 %v2891_v58, %v2890_v19 }
 0x1f9   : > { %2631 = vmatpush1.bf16.msk.msra.mxu1 %vm3849_vm4, %v2630_v52  ;;  %2639 = vmatpush1.bf16.msk.msra.mxu0 %vm3849_vm4, %v2610_v41  ;;  %v2899_v0 = vpop.permute.xlu0 %2898 }
 0x1fa   : > { %1766 = vmatprep.subr.bf16.mxu0 %v5267_v35  ;;  %1882 = vmatprep.subr.bf16.mxu1 %v5267_v35  ;;  %v2901_v31 = vunpack.i.h.bf16 %v2899_v0  ;;  %v2900_v16 = vunpack.i.l.bf16 %v2899_v0 }
 0x1fb   : > { %2652 = vmatprep.mubr.msk.bf16.mxu0 %vm533_vm2, %v4573_v20 }
 0x1fc   : > { %1671 = vmatmul.mubr.bf16.vlgmr.msra.gmra.mrb[32].mxu1 %v4773_v43  ;;  %v2667_v56 = vpack.c.bf16 %v2901_v31, %v2900_v16 }
 0x1fd   : > { %2642 = vmatpush1.bf16.msk.msra.mxu0 %vm3778_vm3, %v2627_v32  ;;  %2656 = vmatpush1.bf16.msk.msra.mxu1 %vm3778_vm3, %v2627_v32  ;;  %v2909_v10 = vpop.permute.xlu0 %2908 }
 0x1fe   : > { %1768 = vmatprep.subr.bf16.mxu0 %v5267_v35  ;;  %1884 = vmatprep.subr.bf16.mxu1 %v5267_v35  ;;  %v2911_v41 = vunpack.i.h.bf16 %v2909_v10  ;;  %v2910_v40 = vunpack.i.l.bf16 %v2909_v10 }
 0x1ff   : > { %2633 = vmatprep.mubr.msk.bf16.mxu1 %vm533_vm2, %v4785_v21 }
 0x200   : > { %v2687_v19 = vpack.c.bf16 %v2911_v41, %v2910_v40 }
 0x201   : > { %1769 = vmatpush1.bf16.msra.mxu0 %v4614_v4  ;;  %1885 = vmatpush1.bf16.msra.mxu1 %v4614_v4  ;;  %v2894_v4 = vpop.permute.xlu1 %2893  ;;  %v2919_v31 = vpop.permute.xlu0 %2918 }
 0x202   : > { %1770 = vmatprep.subr.bf16.mxu0 %v5267_v35  ;;  %1886 = vmatprep.subr.bf16.mxu1 %v5267_v35  ;;  %v2896_v39 = vunpack.i.h.bf16 %v2894_v4  ;;  %v2895_v11 = vunpack.i.l.bf16 %v2894_v4 }
 0x204   : > { %1679 = vmatmul.mubr.bf16.gmra.mrb[36].mxu1 %v4796_v3  ;;  %v2650_v50 = vpack.c.bf16 %v2896_v39, %v2895_v11 }
 0x205   : > { %2645 = vmatpush1.bf16.msk.msra.mxu0 %vm3849_vm4, %v2630_v52  ;;  %2659 = vmatpush1.bf16.msk.msra.mxu1 %vm3849_vm4, %v2630_v52  ;;  %v2904_v53 = vpop.permute.xlu1 %2903 }
 0x206   : > { %1772 = vmatprep.subr.bf16.mxu0 %v5267_v35  ;;  %1888 = vmatprep.subr.bf16.mxu1 %v5267_v35  ;;  %v2906_v28 = vunpack.i.h.bf16 %v2904_v53  ;;  %v2905_v18 = vunpack.i.l.bf16 %v2904_v53 }
 0x207   : > { %2672 = vmatprep.mubr.msk.bf16.mxu1 %vm533_vm2, %v4573_v20 }
 0x208   : > { %v2670_v55 = vpack.c.bf16 %v2906_v28, %v2905_v18 }
 0x209   : > { %2648 = vmatpush1.bf16.msk.msra.mxu0 %vm3778_vm3, %v2647_v25  ;;  %2662 = vmatpush1.bf16.msk.msra.mxu1 %vm3778_vm3, %v2647_v25 }
 0x20a   : > { %1774 = vmatprep.subr.bf16.mxu0 %v5267_v35  ;;  %1890 = vmatprep.subr.bf16.mxu1 %v5267_v35 }
 0x20d   : > { %1775 = vmatpush1.bf16.msra.mxu0 %v4621_v42  ;;  %1891 = vmatpush1.bf16.msra.mxu1 %v4621_v42 }
 0x20e   : > { %1776 = vmatprep.subr.bf16.mxu0 %v5267_v35  ;;  %1892 = vmatprep.subr.bf16.mxu1 %v5267_v35 }
 0x211   : > { %v574_v33 = vpop.f32.mrb[0].mxu0  ;;  %2651 = vmatpush1.bf16.msk.msra.mxu0 %vm3849_vm4, %v2650_v50  ;;  %2665 = vmatpush1.bf16.msk.msra.mxu1 %vm3849_vm4, %v2650_v50 }
 0x212   : > { %v576_v6 = vpop.f32.mrb[1].mxu0  ;;  %1894 = vmatprep.subr.bf16.mxu1 %v5267_v35  ;;  %2004 = vmatprep.subr.bf16.mxu0 %v5267_v35  ;;  %v575_v34 = vadd.f32 %v574_v33, %v4857_v14  ;;  %v2921_v33 = vunpack.i.h.bf16 %v2919_v31 }
 0x213   : > { %v577_v12 = vpop.f32.mrb[2].mxu0  ;;  %v2920_v6 = vunpack.i.l.bf16 %v2919_v31 }
 0x214   : > { %v579_v5 = vpop.f32.mrb[3].mxu0  ;;  %1793 = vmatmul.mubr.bf16.vlgmr.msra.gmra.mrb[40].mxu0 %v4773_v43  ;;  %v589_v45 = vmax.f32 %v575_v34, 0.0 }
 0x215   : > { %2668 = vmatpush1.bf16.msk.msra.mxu1 %vm3778_vm3, %v2667_v56  ;;  %2676 = vmatpush1.bf16.msk.msra.mxu0 %vm3778_vm3, %v2647_v25  ;;  %v2914_v25 = vpop.permute.xlu1 %2913 }
 0x216   : > { %1896 = vmatprep.subr.bf16.mxu1 %v5267_v35  ;;  %2006 = vmatprep.subr.bf16.mxu0 %v5267_v35  ;;  %v2916_v0 = vunpack.i.h.bf16 %v2914_v25 }
 0x217   : > { %2653 = vmatprep.mubr.msk.bf16.mxu0 %vm533_vm2, %v4785_v21 }
 0x219   : > { %v582_v13 = vpop.f32.mrb[4].mxu0  ;;  %1897 = vmatpush1.bf16.msra.mxu1 %v4627_v48  ;;  %2007 = vmatpush1.bf16.msra.mxu0 %v4621_v42  ;;  %v578_v42 = vadd.f32 %v577_v12, %v4866_v2  ;;  %v2707_v12 = vpack.c.bf16 %v2921_v33, %v2920_v6  ;;  %v2924_v5 = vpop.permute.xlu1 %2923 }
 0x21a   : > { %v584_v51 = vpop.f32.mrb[5].mxu0  ;;  %1898 = vmatprep.subr.bf16.mxu1 %v5267_v35  ;;  %2008 = vmatprep.subr.bf16.mxu0 %v5267_v35  ;;  %v583_v61 = vadd.f32 %v582_v13, %v4889_v57  ;;  %v2925_v34 = vunpack.i.l.bf16 %v2924_v5 }
 0x21b   : > { %v585_v46 = vpop.f32.mrb[6].mxu0  ;;  %v590_v60 = vmax.f32 %v578_v42, 0.0 }
 0x21c   : > { %v587_v47 = vpop.f32.mrb[7].mxu0  ;;  %1801 = vmatmul.mubr.bf16.gmra.mrb[44].mxu0 %v4796_v3  ;;  %v586_v8 = vadd.f32 %v585_v46, %v4900_v49  ;;  %v591_v32 = vmax.f32 %v583_v61, 0.0 }
 0x21d   : > { %2671 = vmatpush1.bf16.msk.msra.mxu1 %vm3849_vm4, %v2670_v55  ;;  %2679 = vmatpush1.bf16.msk.msra.mxu0 %vm3849_vm4, %v2650_v50  ;;  %v2915_v50 = vunpack.i.l.bf16 %v2914_v25 }
 0x21e   : > { %2010 = vmatprep.subr.bf16.mxu0 %v5267_v35  ;;  %2126 = vmatprep.subr.bf16.mxu1 %v5267_v35  ;;  %v696_v59 = vpop.f32.mrb[0].mxu1  ;;  %v592_v36 = vmax.f32 %v586_v8, 0.0 }
 0x21f   : > { %v697_v23 = vadd.f32 %v696_v59, %v4857_v14  ;;  %v698_v37 = vpop.f32.mrb[1].mxu1  ;;  %2692 = vmatprep.mubr.msk.bf16.mxu0 %vm533_vm2, %v4573_v20  ;;  %v2690_v16 = vpack.c.bf16 %v2916_v0, %v2915_v50 }
 0x220   : > { %1915 = vmatmul.mubr.bf16.vlgmr.msra.gmra.mrb[40].mxu1 %v4773_v43  ;;  %v699_v38 = vpop.f32.mrb[2].mxu1 }
 0x221   : > { %2682 = vmatpush1.bf16.msk.msra.mxu0 %vm3778_vm3, %v2667_v56  ;;  %2696 = vmatpush1.bf16.msk.msra.mxu1 %vm3778_vm3, %v2667_v56  ;;  %v711_v29 = vmax.f32 %v697_v23, 0.0  ;;  %v700_v15 = vadd.f32 %v699_v38, %v4866_v2  ;;  %v701_v9 = vpop.f32.mrb[3].mxu1 }
 0x222   : > { %2012 = vmatprep.subr.bf16.mxu0 %v5267_v35  ;;  %2128 = vmatprep.subr.bf16.mxu1 %v5267_v35  ;;  %v2929_v9 = vpop.permute.xlu0 %2928 }
 0x223   : > { %2673 = vmatprep.mubr.msk.bf16.mxu1 %vm533_vm2, %v4785_v21  ;;  %v4895_v22 = vadd.f32 %v711_v29, %v589_v45  ;;  %v712_v44 = vmax.f32 %v700_v15, 0.0  ;;  %v2931_v8 = vunpack.i.h.bf16 %v2929_v9  ;;  %v2930_v41 = vunpack.i.l.bf16 %v2929_v9 }
 0x225   : > { %2013 = vmatpush1.bf16.msra.mxu0 %v4627_v48  ;;  %2129 = vmatpush1.bf16.msra.mxu1 %v4627_v48  ;;  %v4905_v27 = vadd.f32 %v712_v44, %v590_v60 }
 0x226   : > { %2014 = vmatprep.subr.bf16.mxu0 %v5267_v35  ;;  %2130 = vmatprep.subr.bf16.mxu1 %v5267_v35 }
 0x227   : > { %v704_v1 = vpop.f32.mrb[4].mxu1 }
 0x228   : > { %1923 = vmatmul.mubr.bf16.gmra.mrb[44].mxu1 %v4796_v3  ;;  %v705_v7 = vadd.f32 %v704_v1, %v4889_v57  ;;  %v706_v24 = vpop.f32.mrb[5].mxu1 }
 0x229   : > { %2685 = vmatpush1.bf16.msk.msra.mxu0 %vm3849_vm4, %v2670_v55  ;;  %2699 = vmatpush1.bf16.msk.msra.mxu1 %vm3849_vm4, %v2670_v55  ;;  %v707_v48 = vpop.f32.mrb[6].mxu1  ;;  %v2926_v55 = vunpack.i.h.bf16 %v2924_v5 }
 0x22a   : > { %2016 = vmatprep.subr.bf16.mxu0 %v5267_v35  ;;  %2132 = vmatprep.subr.bf16.mxu1 %v5267_v35  ;;  %v713_v52 = vmax.f32 %v705_v7, 0.0  ;;  %v708_v30 = vadd.f32 %v707_v48, %v4900_v49  ;;  %v709_v58 = vpop.f32.mrb[7].mxu1 }
 0x22b   : > { %2712 = vmatprep.mubr.msk.bf16.mxu1 %vm533_vm2, %v4573_v20  ;;  %v2710_v45 = vpack.c.bf16 %v2926_v55, %v2925_v34 }
 0x22c   : > { %v4921_v4 = vadd.f32 %v713_v52, %v591_v32  ;;  %v714_v39 = vmax.f32 %v708_v30, 0.0  ;;  %v2934_v30 = vpop.permute.xlu1 %2933 }
 0x22d   : > { %2688 = vmatpush1.bf16.msk.msra.mxu0 %vm3778_vm3, %v2687_v19  ;;  %2702 = vmatpush1.bf16.msk.msra.mxu1 %vm3778_vm3, %v2687_v19  ;;  %v2936_v50 = vunpack.i.h.bf16 %v2934_v30 }
 0x22e   : > { %2018 = vmatprep.subr.bf16.mxu0 %v5267_v35  ;;  %2134 = vmatprep.subr.bf16.mxu1 %v5267_v35  ;;  %v4929_v11 = vadd.f32 %v714_v39, %v592_v36  ;;  %v2727_v36 = vpack.c.bf16 %v2931_v8, %v2930_v41 }
 0x231   : > { %2019 = vmatpush1.bf16.msra.mxu0 %v4629_v26  ;;  %2135 = vmatpush1.bf16.msra.mxu1 %v4629_v26 }
 0x232   : > { %2020 = vmatprep.subr.bf16.mxu0 %v5267_v35  ;;  %2136 = vmatprep.subr.bf16.mxu1 %v5267_v35 }
 0x235   : > { %2691 = vmatpush1.bf16.msk.msra.mxu0 %vm3849_vm4, %v2690_v16  ;;  %2705 = vmatpush1.bf16.msk.msra.mxu1 %vm3849_vm4, %v2690_v16 }
 0x236   : > { %2138 = vmatprep.subr.bf16.mxu1 %v5267_v35  ;;  %2224 = vmatprep.subr.bf16.mxu0 %v5267_v35 }
 0x237   : > { %v818_v56 = vpop.f32.mrb[8].mxu0 }
 0x238   : > { %2037 = vmatmul.mubr.bf16.vlgmr.msra.gmra.mrb[48].mxu0 %v4773_v43  ;;  %v819_v53 = vadd.f32 %v818_v56, %v4857_v14  ;;  %v820_v28 = vpop.f32.mrb[9].mxu0 }
 0x239   : > { %2708 = vmatpush1.bf16.msk.msra.mxu1 %vm3778_vm3, %v2707_v12  ;;  %2716 = vmatpush1.bf16.msk.msra.mxu0 %vm3778_vm3, %v2687_v19  ;;  %v821_v18 = vpop.f32.mrb[10].mxu0 }
 0x23a   : > { %2140 = vmatprep.subr.bf16.mxu1 %v5267_v35  ;;  %2226 = vmatprep.subr.bf16.mxu0 %v5267_v35  ;;  %v833_v13 = vmax.f32 %v819_v53, 0.0  ;;  %v822_v51 = vadd.f32 %v821_v18, %v4866_v2  ;;  %v823_v46 = vpop.f32.mrb[11].mxu0 }
 0x23b   : > { %2693 = vmatprep.mubr.msk.bf16.mxu0 %vm533_vm2, %v4785_v21 }
 0x23c   : > { %v837_v47 = vadd.f32 %v833_v13, %v4895_v22  ;;  %v834_v42 = vmax.f32 %v822_v51, 0.0 }
 0x23d   : > { %2141 = vmatpush1.bf16.msra.mxu1 %v4635_v54  ;;  %2227 = vmatpush1.bf16.msra.mxu0 %v4629_v26 }
 0x23e   : > { %v838_v59 = vadd.f32 %v834_v42, %v4905_v27  ;;  %2142 = vmatprep.subr.bf16.mxu1 %v5267_v35  ;;  %2228 = vmatprep.subr.bf16.mxu0 %v5267_v35 }
 0x240   : > { %2045 = vmatmul.mubr.bf16.gmra.mrb[52].mxu0 %v4796_v3  ;;  %v826_v10 = vpop.f32.mrb[12].mxu0 }
 0x241   : > { %2711 = vmatpush1.bf16.msk.msra.mxu1 %vm3849_vm4, %v2710_v45  ;;  %2719 = vmatpush1.bf16.msk.msra.mxu0 %vm3849_vm4, %v2690_v16  ;;  %v827_v61 = vadd.f32 %v826_v10, %v4889_v57  ;;  %v828_v27 = vpop.f32.mrb[13].mxu0 }
 0x242   : > { %2230 = vmatprep.subr.bf16.mxu0 %v5267_v35  ;;  %2281 = vmatprep.subr.bf16.mxu1 %v5267_v35  ;;  %v829_v1 = vpop.f32.mrb[14].mxu0 }
 0x243   : > { %2732 = vmatprep.mubr.msk.bf16.mxu0 %vm533_vm2, %v4573_v20  ;;  %v835_v32 = vmax.f32 %v827_v61, 0.0  ;;  %v830_v7 = vadd.f32 %v829_v1, %v4900_v49  ;;  %v831_v24 = vpop.f32.mrb[15].mxu0 }
 0x244   : > { %2159 = vmatmul.mubr.bf16.vlgmr.msra.gmra.mrb[48].mxu1 %v4773_v43  ;;  %v940_v26 = vpop.f32.mrb[8].mxu1 }
 0x245   : > { %2722 = vmatpush1.bf16.msk.msra.mxu0 %vm3778_vm3, %v2707_v12  ;;  %2736 = vmatpush1.bf16.msk.msra.mxu1 %vm3778_vm3, %v2707_v12  ;;  %v941_v23 = vadd.f32 %v940_v26, %v4857_v14  ;;  %v942_v37 = vpop.f32.mrb[9].mxu1  ;;  %v836_v48 = vmax.f32 %v830_v7, 0.0 }
 0x246   : > { %2232 = vmatprep.subr.bf16.mxu0 %v5267_v35  ;;  %2283 = vmatprep.subr.bf16.mxu1 %v5267_v35  ;;  %v943_v38 = vpop.f32.mrb[10].mxu1 }
 0x247   : > { %v955_v29 = vmax.f32 %v941_v23, 0.0  ;;  %v944_v60 = vadd.f32 %v943_v38, %v4866_v2  ;;  %2713 = vmatprep.mubr.msk.bf16.mxu1 %vm533_vm2, %v4785_v21  ;;  %v945_v15 = vpop.f32.mrb[11].mxu1  ;;  %v840_v58 = vadd.f32 %v836_v48, %v4929_v11  ;;  %v2935_v11 = vunpack.i.l.bf16 %v2934_v30 }
 0x249   : > { %v4978_v22 = vadd.f32 %v955_v29, %v837_v47  ;;  %2233 = vmatpush1.bf16.msra.mxu0 %v4635_v54  ;;  %2284 = vmatpush1.bf16.msra.mxu1 %v4635_v54  ;;  %v956_v44 = vmax.f32 %v944_v60, 0.0  ;;  %v839_v54 = vadd.f32 %v835_v32, %v4921_v4  ;;  %v2730_v17 = vpack.c.bf16 %v2936_v50, %v2935_v11 }
 0x24a   : > { %2234 = vmatprep.subr.bf16.mxu0 %v5267_v35  ;;  %2285 = vmatprep.subr.bf16.mxu1 %v5267_v35 }
 0x24b   : > { %v960_v40 = vadd.f32 %v956_v44, %v838_v59 }
 0x24c   : > { %2167 = vmatmul.mubr.bf16.gmra.mrb[52].mxu1 %v4796_v3 }
 0x24d   : > { %2725 = vmatpush1.bf16.msk.msra.mxu0 %vm3849_vm4, %v2710_v45  ;;  %2739 = vmatpush1.bf16.msk.msra.mxu1 %vm3849_vm4, %v2710_v45 }
 0x24e   : > { %2236 = vmatprep.subr.bf16.mxu0 %v5267_v35  ;;  %2287 = vmatprep.subr.bf16.mxu1 %v5267_v35  ;;  %v948_v52 = vpop.f32.mrb[12].mxu1 }
 0x24f   : > { %2746 = vmatprep.mubr.msk.bf16.mxu1 %vm533_vm2, %v4573_v20  ;;  %v949_v19 = vadd.f32 %v948_v52, %v4889_v57  ;;  %v950_v25 = vpop.f32.mrb[13].mxu1 }
 0x250   : > { %v951_v4 = vpop.f32.mrb[14].mxu1 }
 0x251   : > { %2728 = vmatpush1.bf16.msk.msra.mxu0 %vm3778_vm3, %v2727_v36  ;;  %2742 = vmatpush1.bf16.msk.msra.mxu1 %vm3778_vm3, %v2727_v36  ;;  %v957_v39 = vmax.f32 %v949_v19, 0.0  ;;  %v952_v0 = vadd.f32 %v951_v4, %v4900_v49  ;;  %v953_v20 = vpop.f32.mrb[15].mxu1 }
 0x252   : > { %2238 = vmatprep.subr.bf16.mxu0 %v5267_v35  ;;  %2289 = vmatprep.subr.bf16.mxu1 %v5267_v35 }
 0x253   : > { %v961_v31 = vadd.f32 %v957_v39, %v839_v54  ;;  %v958_v16 = vmax.f32 %v952_v0, 0.0 }
 0x255   : > { %2239 = vmatpush1.bf16.msra.mxu0 %v4639_v62  ;;  %2290 = vmatpush1.bf16.msra.mxu1 %v4639_v62  ;;  %v962_v33 = vadd.f32 %v958_v16, %v840_v58 }
 0x256   : > { %2240 = vmatprep.subr.bf16.mxu0 %v5267_v35  ;;  %2291 = vmatprep.subr.bf16.mxu1 %v5267_v35 }
 0x259   : > { %2731 = vmatpush1.bf16.msk.msra.mxu0 %vm3849_vm4, %v2730_v17  ;;  %2745 = vmatpush1.bf16.msk.msra.mxu1 %vm3849_vm4, %v2730_v17 }
 0x25c   : > { %2257 = vmatmul.mubr.bf16.vlgmr.msra.gmra.mrb[56].mxu0 %v4773_v43  ;;  %2314 = vmatmul.mubr.bf16.vlgmr.msra.gmra.mrb[56].mxu1 %v4773_v43 }
 0x25d   : > { %2733 = vmatprep.mubr.msk.bf16.mxu0 %vm533_vm2, %v4785_v21  ;;  %2747 = vmatprep.mubr.msk.bf16.mxu1 %vm533_vm2, %v4785_v21 }
 0x25f   : > { %v1062_v62 = vpop.f32.mrb[16].mxu0 }
 0x260   : > { %v1063_v35 = vadd.f32 %v1062_v62, %v4857_v14  ;;  %v1064_v6 = vpop.f32.mrb[17].mxu0 }
 0x261   : > { %v1065_v12 = vpop.f32.mrb[18].mxu0 }
 0x262   : > { %v1077_v63 = vmax.f32 %v1063_v35, 0.0  ;;  %v1066_v56 = vadd.f32 %v1065_v12, %v4866_v2  ;;  %v1067_v5 = vpop.f32.mrb[19].mxu0 }
 0x264   : > { %2265 = vmatmul.mubr.bf16.gmra.mrb[60].mxu0 %v4796_v3  ;;  %2322 = vmatmul.mubr.bf16.gmra.mrb[60].mxu1 %v4796_v3  ;;  %v1081_v43 = vadd.f32 %v1077_v63, %v4978_v22  ;;  %v1078_v53 = vmax.f32 %v1066_v56, 0.0 }
 0x266   : > { %v1082_v28 = vadd.f32 %v1078_v53, %v960_v40 }
 0x267   : > { %v1070_v18 = vpop.f32.mrb[20].mxu0 }
 0x268   : > { %v1071_v21 = vadd.f32 %v1070_v18, %v4889_v57  ;;  %v1072_v13 = vpop.f32.mrb[21].mxu0 }
 0x269   : > { %v1073_v51 = vpop.f32.mrb[22].mxu0 }
 0x26a   : > { %v1079_v46 = vmax.f32 %v1071_v21, 0.0  ;;  %v1074_v55 = vadd.f32 %v1073_v51, %v4900_v49  ;;  %v1075_v47 = vpop.f32.mrb[23].mxu0 }
 0x26b   : > { %v1184_v34 = vpop.f32.mrb[16].mxu1 }
 0x26c   : > { %v1185_v3 = vadd.f32 %v1184_v34, %v4857_v14  ;;  %v1186_v42 = vpop.f32.mrb[17].mxu1  ;;  %v1083_v59 = vadd.f32 %v1079_v46, %v961_v31  ;;  %v1080_v45 = vmax.f32 %v1074_v55, 0.0 }
 0x26d   : > { %v1187_v26 = vpop.f32.mrb[18].mxu1 }
 0x26e   : > { %v1199_v23 = vmax.f32 %v1185_v3, 0.0  ;;  %v1188_v37 = vadd.f32 %v1187_v26, %v4866_v2  ;;  %v1189_v38 = vpop.f32.mrb[19].mxu1  ;;  %v1084_v29 = vadd.f32 %v1080_v45, %v962_v33 }
 0x270   : > { %v1203_v60 = vadd.f32 %v1199_v23, %v1081_v43  ;;  %v1200_v15 = vmax.f32 %v1188_v37, 0.0 }
 0x272   : > { %v1204_v9 = vadd.f32 %v1200_v15, %v1082_v28 }
 0x273   : > { %v1192_v22 = vpop.f32.mrb[20].mxu1 }
 0x274   : > { %v1193_v44 = vadd.f32 %v1192_v22, %v4889_v57  ;;  %v1194_v10 = vpop.f32.mrb[21].mxu1 }
 0x275   : > { %v1195_v61 = vpop.f32.mrb[22].mxu1 }
 0x276   : > { %v1201_v27 = vmax.f32 %v1193_v44, 0.0  ;;  %v1196_v8 = vadd.f32 %v1195_v61, %v4900_v49  ;;  %v1197_v41 = vpop.f32.mrb[23].mxu1 }
 0x278   : > { %v1205_v40 = vadd.f32 %v1201_v27, %v1083_v59  ;;  %v1202_v1 = vmax.f32 %v1196_v8, 0.0 }
 0x27a   : > { %v1206_v32 = vadd.f32 %v1202_v1, %v1084_v29 }
 0x29f   : > { %v1306_v7 = vpop.f32.mrb[24].mxu0 }
 0x2a0   : > { %v1307_v24 = vadd.f32 %v1306_v7, %v4857_v14  ;;  %v1308_v54 = vpop.f32.mrb[25].mxu0 }
 0x2a1   : > { %v1309_v48 = vpop.f32.mrb[26].mxu0 }
 0x2a2   : > { %v1321_v36 = vmax.f32 %v1307_v24, 0.0  ;;  %v1310_v52 = vadd.f32 %v1309_v48, %v4866_v2  ;;  %v1311_v30 = vpop.f32.mrb[27].mxu0 }
 0x2a4   : > { %v1325_v58 = vadd.f32 %v1321_v36, %v1203_v60  ;;  %v1322_v19 = vmax.f32 %v1310_v52, 0.0 }
 0x2a6   : > { %v1326_v25 = vadd.f32 %v1322_v19, %v1204_v9 }
 0x2a7   : > { %v1314_v4 = vpop.f32.mrb[28].mxu0 }
 0x2a8   : > { %v1315_v39 = vadd.f32 %v1314_v4, %v4889_v57  ;;  %v1316_v0 = vpop.f32.mrb[29].mxu0 }
 0x2a9   : > { %v1317_v20 = vpop.f32.mrb[30].mxu0 }
 0x2aa   : > { %v1323_v50 = vmax.f32 %v1315_v39, 0.0  ;;  %v1318_v11 = vadd.f32 %v1317_v20, %v4900_v49  ;;  %v1319_v31 = vpop.f32.mrb[31].mxu0 }
 0x2ab   : > { %v1428_v16 = vpop.f32.mrb[24].mxu1 }
 0x2ac   : > { %v1327_v33 = vadd.f32 %v1323_v50, %v1205_v40  ;;  %v1324_v17 = vmax.f32 %v1318_v11, 0.0  ;;  %v1429_v62 = vadd.f32 %v1428_v16, %v4857_v14  ;;  %v1430_v35 = vpop.f32.mrb[25].mxu1 }
 0x2ad   : > { %v1431_v6 = vpop.f32.mrb[26].mxu1 }
 0x2ae   : > { %v1328_v12 = vadd.f32 %v1324_v17, %v1206_v32  ;;  %v1443_v63 = vmax.f32 %v1429_v62, 0.0  ;;  %v1432_v56 = vadd.f32 %v1431_v6, %v4866_v2  ;;  %v1433_v5 = vpop.f32.mrb[27].mxu1 }
 0x2b0   : > { %v1447_v43 = vadd.f32 %v1443_v63, %v1325_v58  ;;  %v1444_v53 = vmax.f32 %v1432_v56, 0.0 }
 0x2b2   : > { %v1448_v28 = vadd.f32 %v1444_v53, %v1326_v25 }
 0x2b3   : > { %v1436_v18 = vpop.f32.mrb[28].mxu1 }
 0x2b4   : > { %v1437_v21 = vadd.f32 %v1436_v18, %v4889_v57  ;;  %v1438_v13 = vpop.f32.mrb[29].mxu1 }
 0x2b5   : > { %v1439_v51 = vpop.f32.mrb[30].mxu1 }
 0x2b6   : > { %v1445_v46 = vmax.f32 %v1437_v21, 0.0  ;;  %v1440_v55 = vadd.f32 %v1439_v51, %v4900_v49  ;;  %v1441_v34 = vpop.f32.mrb[31].mxu1 }
 0x2b8   : > { %v1449_v47 = vadd.f32 %v1445_v46, %v1327_v33  ;;  %v1446_v3 = vmax.f32 %v1440_v55, 0.0 }
 0x2ba   : > { %v1450_v42 = vadd.f32 %v1446_v3, %v1328_v12 }
 0x2c3   : > { %v1550_v59 = vpop.f32.mrb[32].mxu0 }
 0x2c4   : > { %v1551_v45 = vadd.f32 %v1550_v59, %v4857_v14  ;;  %v1552_v26 = vpop.f32.mrb[33].mxu0 }
 0x2c5   : > { %v1553_v23 = vpop.f32.mrb[34].mxu0 }
 0x2c6   : > { %v1565_v37 = vmax.f32 %v1551_v45, 0.0  ;;  %v1554_v38 = vadd.f32 %v1553_v23, %v4866_v2  ;;  %v1555_v29 = vpop.f32.mrb[35].mxu0 }
 0x2c8   : > { %v1569_v60 = vadd.f32 %v1565_v37, %v1447_v43  ;;  %v1566_v15 = vmax.f32 %v1554_v38, 0.0 }
 0x2ca   : > { %v1570_v9 = vadd.f32 %v1566_v15, %v1448_v28 }
 0x2cb   : > { %v1558_v22 = vpop.f32.mrb[36].mxu0 }
 0x2cc   : > { %v1559_v44 = vadd.f32 %v1558_v22, %v4889_v57  ;;  %v1560_v10 = vpop.f32.mrb[37].mxu0 }
 0x2cd   : > { %v1561_v61 = vpop.f32.mrb[38].mxu0 }
 0x2ce   : > { %v1567_v27 = vmax.f32 %v1559_v44, 0.0  ;;  %v1562_v8 = vadd.f32 %v1561_v61, %v4900_v49  ;;  %v1563_v41 = vpop.f32.mrb[39].mxu0 }
 0x2cf   : > { %v1672_v40 = vpop.f32.mrb[32].mxu1 }
 0x2d0   : > { %v1571_v1 = vadd.f32 %v1567_v27, %v1449_v47  ;;  %v1568_v32 = vmax.f32 %v1562_v8, 0.0  ;;  %v1673_v7 = vadd.f32 %v1672_v40, %v4857_v14  ;;  %v1674_v24 = vpop.f32.mrb[33].mxu1 }
 0x2d1   : > { %v1675_v54 = vpop.f32.mrb[34].mxu1 }
 0x2d2   : > { %v1572_v48 = vadd.f32 %v1568_v32, %v1450_v42  ;;  %v1687_v36 = vmax.f32 %v1673_v7, 0.0  ;;  %v1676_v52 = vadd.f32 %v1675_v54, %v4866_v2  ;;  %v1677_v30 = vpop.f32.mrb[35].mxu1 }
 0x2d4   : > { %v1691_v58 = vadd.f32 %v1687_v36, %v1569_v60  ;;  %v1688_v19 = vmax.f32 %v1676_v52, 0.0 }
 0x2d6   : > { %v1692_v25 = vadd.f32 %v1688_v19, %v1570_v9 }
 0x2d7   : > { %v1680_v4 = vpop.f32.mrb[36].mxu1 }
 0x2d8   : > { %v1681_v39 = vadd.f32 %v1680_v4, %v4889_v57  ;;  %v1682_v0 = vpop.f32.mrb[37].mxu1 }
 0x2d9   : > { %v1683_v20 = vpop.f32.mrb[38].mxu1 }
 0x2da   : > { %v1689_v50 = vmax.f32 %v1681_v39, 0.0  ;;  %v1684_v11 = vadd.f32 %v1683_v20, %v4900_v49  ;;  %v1685_v31 = vpop.f32.mrb[39].mxu1 }
 0x2dc   : > { %v1693_v16 = vadd.f32 %v1689_v50, %v1571_v1  ;;  %v1690_v33 = vmax.f32 %v1684_v11, 0.0 }
 0x2de   : > { %v1694_v17 = vadd.f32 %v1690_v33, %v1572_v48 }
 0x2e7   : > { %v1794_v62 = vpop.f32.mrb[40].mxu0 }
 0x2e8   : > { %v1795_v35 = vadd.f32 %v1794_v62, %v4857_v14  ;;  %v1796_v6 = vpop.f32.mrb[41].mxu0 }
 0x2e9   : > { %v1797_v12 = vpop.f32.mrb[42].mxu0 }
 0x2ea   : > { %v1809_v63 = vmax.f32 %v1795_v35, 0.0  ;;  %v1798_v56 = vadd.f32 %v1797_v12, %v4866_v2  ;;  %v1799_v5 = vpop.f32.mrb[43].mxu0 }
 0x2ec   : > { %v1813_v43 = vadd.f32 %v1809_v63, %v1691_v58  ;;  %v1810_v53 = vmax.f32 %v1798_v56, 0.0 }
 0x2ee   : > { %v1814_v28 = vadd.f32 %v1810_v53, %v1692_v25 }
 0x2ef   : > { %v1802_v18 = vpop.f32.mrb[44].mxu0 }
 0x2f0   : > { %v1803_v21 = vadd.f32 %v1802_v18, %v4889_v57  ;;  %v1804_v13 = vpop.f32.mrb[45].mxu0 }
 0x2f1   : > { %v1805_v51 = vpop.f32.mrb[46].mxu0 }
 0x2f2   : > { %v1811_v46 = vmax.f32 %v1803_v21, 0.0  ;;  %v1806_v55 = vadd.f32 %v1805_v51, %v4900_v49  ;;  %v1807_v34 = vpop.f32.mrb[47].mxu0 }
 0x2f3   : > { %v1916_v47 = vpop.f32.mrb[40].mxu1 }
 0x2f4   : > { %v1815_v3 = vadd.f32 %v1811_v46, %v1693_v16  ;;  %v1812_v42 = vmax.f32 %v1806_v55, 0.0  ;;  %v1917_v59 = vadd.f32 %v1916_v47, %v4857_v14  ;;  %v1918_v45 = vpop.f32.mrb[41].mxu1 }
 0x2f5   : > { %v1919_v26 = vpop.f32.mrb[42].mxu1 }
 0x2f6   : > { %v1816_v23 = vadd.f32 %v1812_v42, %v1694_v17  ;;  %v1931_v37 = vmax.f32 %v1917_v59, 0.0  ;;  %v1920_v38 = vadd.f32 %v1919_v26, %v4866_v2  ;;  %v1921_v29 = vpop.f32.mrb[43].mxu1 }
 0x2f8   : > { %v1935_v60 = vadd.f32 %v1931_v37, %v1813_v43  ;;  %v1932_v15 = vmax.f32 %v1920_v38, 0.0 }
 0x2fa   : > { %v1936_v9 = vadd.f32 %v1932_v15, %v1814_v28 }
 0x2fb   : > { %v1924_v22 = vpop.f32.mrb[44].mxu1 }
 0x2fc   : > { %v1925_v44 = vadd.f32 %v1924_v22, %v4889_v57  ;;  %v1926_v10 = vpop.f32.mrb[45].mxu1 }
 0x2fd   : > { %v1927_v61 = vpop.f32.mrb[46].mxu1 }
 0x2fe   : > { %v1933_v27 = vmax.f32 %v1925_v44, 0.0  ;;  %v1928_v8 = vadd.f32 %v1927_v61, %v4900_v49  ;;  %v1929_v41 = vpop.f32.mrb[47].mxu1 }
 0x300   : > { %v1937_v40 = vadd.f32 %v1933_v27, %v1815_v3  ;;  %v1934_v1 = vmax.f32 %v1928_v8, 0.0 }
 0x302   : > { %v1938_v32 = vadd.f32 %v1934_v1, %v1816_v23 }
 0x30b   : > { %v2038_v7 = vpop.f32.mrb[48].mxu0 }
 0x30c   : > { %v2039_v24 = vadd.f32 %v2038_v7, %v4857_v14  ;;  %v2040_v54 = vpop.f32.mrb[49].mxu0 }
 0x30d   : > { %v2041_v48 = vpop.f32.mrb[50].mxu0 }
 0x30e   : > { %v2053_v36 = vmax.f32 %v2039_v24, 0.0  ;;  %v2042_v52 = vadd.f32 %v2041_v48, %v4866_v2  ;;  %v2043_v30 = vpop.f32.mrb[51].mxu0 }
 0x310   : > { %v2057_v58 = vadd.f32 %v2053_v36, %v1935_v60  ;;  %v2054_v19 = vmax.f32 %v2042_v52, 0.0 }
 0x312   : > { %v2058_v25 = vadd.f32 %v2054_v19, %v1936_v9 }
 0x313   : > { %v2046_v4 = vpop.f32.mrb[52].mxu0 }
 0x314   : > { %v2047_v39 = vadd.f32 %v2046_v4, %v4889_v57  ;;  %v2048_v0 = vpop.f32.mrb[53].mxu0 }
 0x315   : > { %v2049_v20 = vpop.f32.mrb[54].mxu0 }
 0x316   : > { %v2055_v50 = vmax.f32 %v2047_v39, 0.0  ;;  %v2050_v11 = vadd.f32 %v2049_v20, %v4900_v49  ;;  %v2051_v31 = vpop.f32.mrb[55].mxu0 }
 0x317   : > { %v2160_v16 = vpop.f32.mrb[48].mxu1 }
 0x318   : > { %v2059_v33 = vadd.f32 %v2055_v50, %v1937_v40  ;;  %v2056_v17 = vmax.f32 %v2050_v11, 0.0  ;;  %v2161_v62 = vadd.f32 %v2160_v16, %v4857_v14  ;;  %v2162_v35 = vpop.f32.mrb[49].mxu1  ;;  %v2338_v40 = vld [vmem:[%s5104_s5] sm:$0xff] }
 0x319   : > { %v2163_v6 = vpop.f32.mrb[50].mxu1 }
 0x31a   : > { %v2060_v12 = vadd.f32 %v2056_v17, %v1938_v32  ;;  %v2175_v63 = vmax.f32 %v2161_v62, 0.0  ;;  %v2164_v56 = vadd.f32 %v2163_v6, %v4866_v2  ;;  %v2165_v5 = vpop.f32.mrb[51].mxu1  ;;  %v2339_v32 = vld [vmem:[%s5104_s5 + $0x8] sm:$0xff]  ;;  %v2341_v6 = vld [vmem:[%s5104_s5 + $0x18] sm:$0xff] }
 0x31c   : > { %v2179_v43 = vadd.f32 %v2175_v63, %v2057_v58  ;;  %v2176_v53 = vmax.f32 %v2164_v56, 0.0 }
 0x31e   : > { %v2180_v28 = vadd.f32 %v2176_v53, %v2058_v25 }
 0x31f   : > { %v2168_v18 = vpop.f32.mrb[52].mxu1 }
 0x320   : > { %v2169_v21 = vadd.f32 %v2168_v18, %v4889_v57  ;;  %v2170_v13 = vpop.f32.mrb[53].mxu1 }
 0x321   : > { %v2171_v51 = vpop.f32.mrb[54].mxu1  ;;  %v2356_v13 = vstv %s2355_s16 }
 0x322   : > { %v2177_v46 = vmax.f32 %v2169_v21, 0.0  ;;  %v2172_v55 = vadd.f32 %v2171_v51, %v4900_v49  ;;  %v2173_v34 = vpop.f32.mrb[55].mxu1 }
 0x324   : > { %v2181_v47 = vadd.f32 %v2177_v46, %v2059_v33  ;;  %v2178_v3 = vmax.f32 %v2172_v55, 0.0 }
 0x326   : > { %v2182_v42 = vadd.f32 %v2178_v3, %v2060_v12 }
 0x32f   : > { %v2258_v59 = vpop.f32.mrb[56].mxu0  ;;  %v2315_v45 = vpop.f32.mrb[56].mxu1 }
 0x330   : > { %v2259_v26 = vadd.f32 %v2258_v59, %v4857_v14  ;;  %v2316_v23 = vadd.f32 %v2315_v45, %v4857_v14  ;;  %v2260_v37 = vpop.f32.mrb[57].mxu0  ;;  %v2317_v38 = vpop.f32.mrb[57].mxu1 }
 0x331   : > { %v2261_v29 = vpop.f32.mrb[58].mxu0  ;;  %v2318_v60 = vpop.f32.mrb[58].mxu1 }
 0x332   : > { %v2273_v15 = vmax.f32 %v2259_v26, 0.0  ;;  %v2330_v9 = vmax.f32 %v2316_v23, 0.0  ;;  %v2262_v22 = vadd.f32 %v2261_v29, %v4866_v2  ;;  %v2319_v44 = vadd.f32 %v2318_v60, %v4866_v2  ;;  %v2263_v10 = vpop.f32.mrb[59].mxu0  ;;  %v2320_v61 = vpop.f32.mrb[59].mxu1 }
 0x334   : > { %v2277_v27 = vadd.f32 %v2273_v15, %v2179_v43  ;;  %v2274_v8 = vmax.f32 %v2262_v22, 0.0  ;;  %v2331_v1 = vmax.f32 %v2319_v44, 0.0 }
 0x336   : > { %v2334_v41 = vadd.f32 %v2330_v9, %v2277_v27  ;;  %v2278_v14 = vadd.f32 %v2274_v8, %v2180_v28 }
 0x337   : > { %v2266_v7 = vpop.f32.mrb[60].mxu0  ;;  %v2323_v24 = vpop.f32.mrb[60].mxu1 }
 0x338   : > { %v2335_v54 = vadd.f32 %v2331_v1, %v2278_v14  ;;  %v2267_v2 = vadd.f32 %v2266_v7, %v4889_v57  ;;  %v2324_v48 = vadd.f32 %v2323_v24, %v4889_v57  ;;  %v2268_v36 = vpop.f32.mrb[61].mxu0  ;;  %v2325_v52 = vpop.f32.mrb[61].mxu1  ;;  %v2342_v30 = vmul.f32 %v2338_v40, %v2334_v41  ;;  %v2340_v57 = vld [vmem:[%s5104_s5 + $0x10] sm:$0xff] }
 0x339   : > { %v2269_v58 = vpop.f32.mrb[62].mxu0  ;;  %v2326_v19 = vpop.f32.mrb[62].mxu1 }
 0x33a   : > { %v2343_v25 = vmul.f32 %v2339_v32, %v2335_v54  ;;  %v2275_v4 = vmax.f32 %v2267_v2, 0.0  ;;  %v2332_v39 = vmax.f32 %v2324_v48, 0.0  ;;  %v2270_v0 = vadd.f32 %v2269_v58, %v4900_v49  ;;  %v2271_v20 = vpop.f32.mrb[63].mxu0  ;;  %v2328_v50 = vpop.f32.mrb[63].mxu1 }
 0x33b   : > { %v2327_v11 = vadd.f32 %v2326_v19, %v4900_v49 }
 0x33c   : > { %v2346_v31 = vadd.f32 %v2343_v25, %v2342_v30  ;;  %v2279_v16 = vadd.f32 %v2275_v4, %v2181_v47  ;;  %v2276_v33 = vmax.f32 %v2270_v0, 0.0 }
 0x33d   : > { %v2333_v35 = vmax.f32 %v2327_v11, 0.0 }
 0x33e   : > { %v2336_v17 = vadd.f32 %v2332_v39, %v2279_v16  ;;  %v2280_v62 = vadd.f32 %v2276_v33, %v2182_v42 }
 0x340   : > { %v2344_v12 = vmul.f32 %v2340_v57, %v2336_v17  ;;  %v2337_v63 = vadd.f32 %v2333_v35, %v2280_v62 }
 0x342   : > { %v2347_v56 = vadd.f32 %v2346_v31, %v2344_v12  ;;  %v2345_v49 = vmul.f32 %v2341_v6, %v2337_v63 }
 0x344   : > { %v2348_v5 = vadd.f32 %v2347_v56, %v2345_v49 }
 0x346   : > { %v2349_v43 = vrot.slane %v2348_v5, 4 }
 0x348   : > { %v2350_v53 = vadd.f32 %v2349_v43, %v2348_v5 }
 0x34a   : > { %v2351_v28 = vrot.slane %v2350_v53, 2 }
 0x34c   : > { %v2352_v18 = vadd.f32 %v2351_v28, %v2350_v53 }
 0x34e   : > { %v2353_v21 = vrot.slane %v2352_v18, 1 }
 0x350   : > { %v2354_v51 = vadd.f32 %v2353_v21, %v2352_v18 }
 0x352   : > { %v2357_v46 = vadd.f32 %v2356_v13, %v2354_v51 }
 0x354   : > { %2358 = vst [vmem:[%s313_s23] sm:$0x1] %v2357_v46 }
 0x355 PF: > { %p15_p9 = scmp.ge.s32.totalorder %s3048_s29, 4   ;;  %s5381_s26 = smov %s2979_s27 }
 0x356   : > { %s5382_s27 = smov %s3057_s9  ;;  %s5383_s28 = smov %s3048_s29 }
 0x357   :  { %17 = sbr.rel (!%p15_p9) target bundleno = 4 (0x4), region = 129 }

</bundles_post_ra>
